<compile_context>
chip_gen: v7x
topology: tpu7x:2x2x1
jax: 0.10.0
libtpu: 0.0.40
codegen_flags: <defaults>
</compile_context>

<pallas_src>
import jax
import jax.numpy as jnp
from jax.experimental import pallas as pl
from jax.experimental.pallas import tpu as pltpu

HIDDEN = 4096
EPS = 1e-5
LANE = 128


def projector_kernel(
    x_ref,        # (B, D_in)                bf16  resident (constant index map)
    w1_ref,       # (D_in, TK)               bf16  streamed column tile of W1
    g1_ref,       # (1, TK)                  f32   bn1 gamma tile
    be1_ref,      # (1, TK)                  f32   bn1 beta  tile
    w2_ref,       # (TK, D_out_pad) streamed | (HIDDEN, D_out_pad) resident, bf16
    g2_ref,       # (1, D_out_pad)           f32   bn2 gamma (resident)
    be2_ref,      # (1, D_out_pad)           f32   bn2 beta  (resident)
    o_ref,        # (B, D_out_pad)           f32   output block == lin2 accumulator
):
    k = pl.program_id(0)
    tk = w1_ref.shape[1]

    @pl.when(k == 0)
    def _init():
        o_ref[...] = jnp.zeros_like(o_ref)

    inv_b = 1.0 / x_ref.shape[0]

    # ---- lin1 tile on the MXU: (B, D_in)bf16 @ (D_in, TK)bf16 -> f32 ----
    h = jnp.dot(x_ref[...], w1_ref[...], preferred_element_type=jnp.float32)

    # ---- bn1 (training mode), single-pass sum / sum-of-squares ----
    # Stats are per HIDDEN feature over the batch -> fully independent per tile.
    s = jnp.sum(h, axis=0, keepdims=True)
    ss = jnp.sum(h * h, axis=0, keepdims=True)
    mu = s * inv_b
    var = jnp.maximum(ss * inv_b - mu * mu, 0.0)          # biased variance
    h = (h - mu) * jax.lax.rsqrt(var + EPS) * g1_ref[...] + be1_ref[...]

    # ---- relu ----
    h = jnp.maximum(h, 0.0)

    # ---- lin2 partial product, accumulated into the resident output block ----
    if w2_ref.shape[0] == tk:
        w2_tile = w2_ref[...]                              # streamed row tile
    else:
        start = pl.multiple_of(k * tk, tk)                 # whole W2 resident; slice rows
        w2_tile = w2_ref[pl.ds(start, tk), :]
    o_ref[...] += jnp.dot(h.astype(jnp.bfloat16), w2_tile,
                          preferred_element_type=jnp.float32)

    # ---- bn2 epilogue in place on the last HIDDEN tile ----
    @pl.when(k == pl.num_programs(0) - 1)
    def _finalize():
        y = o_ref[...]
        s2 = jnp.sum(y, axis=0, keepdims=True)
        ss2 = jnp.sum(y * y, axis=0, keepdims=True)
        mu2 = s2 * inv_b
        var2 = jnp.maximum(ss2 * inv_b - mu2 * mu2, 0.0)
        o_ref[...] = ((y - mu2) * jax.lax.rsqrt(var2 + EPS)
                      * g2_ref[...] + be2_ref[...])


def _tpu_vmem_capacity():
    try:
        return int(pltpu.get_tpu_info().vmem_capacity_bytes)
    except Exception:
        return 128 << 20          # conservative default (v5e/v6e physical VMEM)


def _default_tk(vmem_cap):
    # v7x (64 MiB physical VMEM per core) -> 1024 ; v5e/v6e (128 MiB) -> 2048.
    return 2048 if vmem_cap >= (100 << 20) else 1024


def _vmem_limit_bytes(B, d_in, hidden, tk, d_out_pad, w2_resident,
                      single_buffer, vmem_cap):
    """Derive a VMEM limit from the actual footprint; cap at ~75% of physical."""
    bf16, f32 = 2, 4
    streamed = d_in * tk * bf16 + 2 * tk * f32             # W1 tile + g1/be1 tiles
    if not w2_resident:
        streamed += tk * d_out_pad * bf16                  # W2 row tile
    resident = (B * d_in * bf16                            # x
                + 2 * d_out_pad * f32                      # g2, be2
                + B * d_out_pad * f32)                      # output block (accumulator)
    if w2_resident:
        resident += hidden * d_out_pad * bf16              # whole W2
    bufs = 1 if single_buffer else 2
    est = 2 * streamed + bufs * resident + (4 << 20)       # dbl-buffers + headroom
    cap = int(vmem_cap * 0.75)                             # ~96 MiB v5e/v6e, ~48 MiB v7x
    return int(min(max(est, 16 << 20), cap))


def _build_specs(B, d_in, hidden, tk, d_out_pad, w2_resident, single_buffer):
    # Single-buffer blocks whose index map never changes across the grid.
    res_kw = {"pipeline_mode": pl.Buffered(1)} if single_buffer else {}
    if w2_resident:
        w2_spec = pl.BlockSpec((hidden, d_out_pad), lambda k: (0, 0), **res_kw)
    else:
        w2_spec = pl.BlockSpec((tk, d_out_pad), lambda k: (k, 0))
    in_specs = [
        pl.BlockSpec((B, d_in), lambda k: (0, 0), **res_kw),           # x (resident)
        pl.BlockSpec((d_in, tk), lambda k: (0, k)),                    # W1 column tile
        pl.BlockSpec((1, tk), lambda k: (0, k)),                       # gamma1 tile
        pl.BlockSpec((1, tk), lambda k: (0, k)),                       # beta1 tile
        w2_spec,                                                       # W2
        pl.BlockSpec((1, d_out_pad), lambda k: (0, 0), **res_kw),      # gamma2
        pl.BlockSpec((1, d_out_pad), lambda k: (0, 0), **res_kw),      # beta2
    ]
    out_spec = pl.BlockSpec((B, d_out_pad), lambda k: (0, 0), **res_kw)
    return in_specs, out_spec


def projector_forward(x, params, *, tk=None, w2_resident=None):
    """x: (B, D_in) float32. params from init_params. Returns (B, D_out) float32."""
    B, d_in = x.shape
    w1, w2 = params["w1"], params["w2"]
    hidden = w1.shape[1]
    d_out_pad = w2.shape[1]
    d_out = params["d_out"]

    vmem_cap = _tpu_vmem_capacity()
    if tk is None:
        tk = _default_tk(vmem_cap)
    tk = min(tk, hidden)
    assert hidden % tk == 0 and tk % LANE == 0

    if w2_resident is None:
        # Whole W2 is only ~1-2 MiB when D_out is small; keep it resident and
        # stream only W1 (same HBM bytes, fewer per-step DMA descriptors).
        w2_resident = hidden * d_out_pad * 2 <= (4 << 20)

    x_bf = x.astype(jnp.bfloat16)
    n_steps = hidden // tk
    args = (x_bf, w1, params["g1"], params["be1"], w2, params["g2"], params["be2"])

    def run(single_buffer):
        in_specs, out_spec = _build_specs(
            B, d_in, hidden, tk, d_out_pad, w2_resident, single_buffer)
        return pl.pallas_call(
            projector_kernel,
            out_shape=jax.ShapeDtypeStruct((B, d_out_pad), jnp.float32),
            grid_spec=pltpu.PrefetchScalarGridSpec(
                num_scalar_prefetch=0,
                grid=(n_steps,),
                in_specs=in_specs,
                out_specs=out_spec,
            ),
            compiler_params=pltpu.CompilerParams(
                dimension_semantics=("arbitrary",),   # HIDDEN is the lin2 reduction axis
                vmem_limit_bytes=_vmem_limit_bytes(
                    B, d_in, hidden, tk, d_out_pad, w2_resident,
                    single_buffer, vmem_cap),
            ),
        )(*args)

    try:
        out_pad = run(single_buffer=True)
    except Exception:
        # Fallback if this JAX build rejects pipeline_mode=Buffered(1) on
        # pallas_call BlockSpecs: keep default double buffering.
        out_pad = run(single_buffer=False)

    return out_pad[:, :d_out]


def init_params(key, input_dims, output_dims):
    """Synthetic parameters matching the module's shapes.

    torch nn.Linear stores weight as (out, in); we pre-transpose to (in, out).
    Kernel-side weights are bf16 and the output-feature axis of W2 / gamma2 /
    beta2 is zero-padded to a 128-lane multiple (lane-dense unmasked stores).
    b1/b2 exist only for the pure-JAX reference (training-mode BN cancels them).
    """
    d_out_pad = pl.cdiv(output_dims, LANE) * LANE
    k1, k2, k3, k4, k5, k6 = jax.random.split(key, 6)
    w1 = jax.random.normal(k1, (input_dims, HIDDEN), jnp.float32) * 0.02
    b1 = jax.random.normal(k2, (1, HIDDEN), jnp.float32) * 0.01
    w2 = jax.random.normal(k3, (HIDDEN, output_dims), jnp.float32) * 0.02
    b2 = jax.random.normal(k4, (1, output_dims), jnp.float32) * 0.01
    g1 = 1.0 + 0.1 * jax.random.normal(k5, (1, HIDDEN), jnp.float32)
    be1 = jnp.zeros((1, HIDDEN), jnp.float32)
    g2 = 1.0 + 0.1 * jax.random.normal(k6, (1, output_dims), jnp.float32)
    be2 = jnp.zeros((1, output_dims), jnp.float32)

    w1_bf = w1.astype(jnp.bfloat16)
    w2_bf = w2.astype(jnp.bfloat16)
    pad = d_out_pad - output_dims
    w2_pad = jnp.pad(w2_bf, ((0, 0), (0, pad)))
    g2_pad = jnp.pad(g2, ((0, 0), (0, pad)))
    be2_pad = jnp.pad(be2, ((0, 0), (0, pad)))

    return {
        # kernel-side (bf16 weights, padded output features)
        "w1": w1_bf, "g1": g1, "be1": be1,
        "w2": w2_pad, "g2": g2_pad, "be2": be2_pad,
        "d_out": output_dims,
        # reference-side (f32 copies of the bf16-rounded weights, plus biases)
        "w1_f32": w1_bf.astype(jnp.float32), "b1": b1,
        "w2_f32": w2_bf.astype(jnp.float32), "b2": b2,
        "g2_raw": g2, "be2_raw": be2,
    }


def reference_forward(x, p):
    """Pure-JAX f32 reference with full PyTorch semantics (including biases,
    which training-mode BatchNorm1d cancels)."""
    h = x @ p["w1_f32"] + p["b1"]
    mu = h.mean(0, keepdims=True)
    var = ((h - mu) ** 2).mean(0, keepdims=True)
    h = (h - mu) / jnp.sqrt(var + EPS) * p["g1"] + p["be1"]
    h = jnp.maximum(h, 0.0)
    y = h @ p["w2_f32"] + p["b2"]
    mu2 = y.mean(0, keepdims=True)
    var2 = ((y - mu2) ** 2).mean(0, keepdims=True)
    return (y - mu2) / jnp.sqrt(var2 + EPS) * p["g2_raw"] + p["be2_raw"]


if __name__ == "__main__":
    key = jax.random.PRNGKey(0)
    B, D_IN, D_OUT = 8, 32, 16          # small test shapes; hidden fixed at 4096 by the module
    kx, kp = jax.random.split(key)
    x = jax.random.normal(kx, (B, D_IN), jnp.float32)
    params = init_params(kp, D_IN, D_OUT)

    ref = reference_forward(x, params)

    # Exercise both W2 paths (resident whole-W2 and streamed row tiles).
    for w2_res in (True, False):
        out = projector_forward(x, params, w2_resident=w2_res)
        out = jax.block_until_ready(out)
        assert out.shape == (B, D_OUT)
        assert not bool(jnp.any(jnp.isnan(out)))
        err = float(jnp.max(jnp.abs(out - ref)))
        # bf16 matmul inputs (f32 accumulation) vs. f32 reference -> few-e-3 error budget
        assert err < 2e-2, (w2_res, err)

    print("KERNEL_OK")
</pallas_src>

<mosaic_0001>
module attributes {stable_mosaic.version = 11 : i64} {
  func.func @projector_kernel(%arg0: i32, %arg1: memref<8x32xbf16, #tpu.memory_space<vmem>>, %arg2: memref<32x2048xbf16, #tpu.memory_space<vmem>>, %arg3: memref<1x2048xf32, #tpu.memory_space<vmem>>, %arg4: memref<1x2048xf32, #tpu.memory_space<vmem>>, %arg5: memref<4096x128xbf16, #tpu.memory_space<vmem>>, %arg6: memref<1x128xf32, #tpu.memory_space<vmem>>, %arg7: memref<1x128xf32, #tpu.memory_space<vmem>>, %arg8: memref<8x128xf32, #tpu.memory_space<vmem>>) attributes {dimension_semantics = [#tpu.dimension_semantics<arbitrary>], iteration_bounds = array<i64: 2>, scalar_prefetch = 0 : i64, scratch_operands = 0 : i64, tpu.core_type = #tpu.core_type<tc>, window_params = [{pipeline_mode = #tpu.pipeline_mode<synchronous>, transform_indices = @transform_0, window_bounds = array<i64: 8, 32>}, {transform_indices = @transform_1, window_bounds = array<i64: 32, 2048>}, {transform_indices = @transform_2, window_bounds = array<i64: 1, 2048>}, {transform_indices = @transform_3, window_bounds = array<i64: 1, 2048>}, {pipeline_mode = #tpu.pipeline_mode<synchronous>, transform_indices = @transform_4, window_bounds = array<i64: 4096, 128>}, {pipeline_mode = #tpu.pipeline_mode<synchronous>, transform_indices = @transform_5, window_bounds = array<i64: 1, 128>}, {pipeline_mode = #tpu.pipeline_mode<synchronous>, transform_indices = @transform_6, window_bounds = array<i64: 1, 128>}, {pipeline_mode = #tpu.pipeline_mode<synchronous>, transform_indices = @transform_7, window_bounds = array<i64: 8, 128>}]} {
    %c0_i32 = arith.constant 0 : i32
    %0 = arith.cmpi eq, %arg0, %c0_i32 : i32
    %1 = arith.extui %0 : i1 to i32
    %c0_i32_0 = arith.constant 0 : i32
    %2 = arith.cmpi ne, %1, %c0_i32_0 : i32
    scf.if %2 {
      %cst_22 = arith.constant 0.000000e+00 : f32
      %46 = vector.broadcast %cst_22 : f32 to vector<8x128xf32>
      %c0_23 = arith.constant 0 : index
      %c0_24 = arith.constant 0 : index
      %47 = vector.load %arg8[%c0_23, %c0_24] : memref<8x128xf32, #tpu.memory_space<vmem>>, vector<8x128xf32>
      tpu.vector_store %arg8[%c0_23, %c0_24], %46 {strides = array<i32>} : memref<8x128xf32, #tpu.memory_space<vmem>>, vector<8x128xf32>,
    } else {
    }
    %c0 = arith.constant 0 : index
    %c0_1 = arith.constant 0 : index
    %3 = vector.load %arg1[%c0, %c0_1] : memref<8x32xbf16, #tpu.memory_space<vmem>>, vector<8x32xbf16>
    %c0_2 = arith.constant 0 : index
    %c0_3 = arith.constant 0 : index
    %4 = vector.load %arg2[%c0_2, %c0_3] : memref<32x2048xbf16, #tpu.memory_space<vmem>>, vector<32x2048xbf16>
    %cst = arith.constant dense<0.000000e+00> : vector<8x2048xf32>
    %5 = tpu.matmul %3, %4, %cst {dimension_numbers = #tpu.dot_dimension_numbers<[1], [0], [0], [1], [0, 0, 1, 1], [], []>} : vector<8x32xbf16>, vector<32x2048xbf16>, vector<8x2048xf32> -> vector<8x2048xf32>
    %cst_4 = arith.constant dense<0.000000e+00> : vector<2048xf32>
    %6 = vector.multi_reduction <add>, %5, %cst_4 [0] : vector<8x2048xf32> to vector<2048xf32>
    %7 = vector.shape_cast %6 : vector<2048xf32> to vector<1x2048xf32>
    %8 = arith.mulf %5, %5 : vector<8x2048xf32>
    %cst_5 = arith.constant dense<0.000000e+00> : vector<2048xf32>
    %9 = vector.multi_reduction <add>, %8, %cst_5 [0] : vector<8x2048xf32> to vector<2048xf32>
    %10 = vector.shape_cast %9 : vector<2048xf32> to vector<1x2048xf32>
    %cst_6 = arith.constant 1.250000e-01 : f32
    %11 = vector.broadcast %cst_6 : f32 to vector<1x2048xf32>
    %12 = arith.mulf %7, %11 : vector<1x2048xf32>
    %cst_7 = arith.constant 1.250000e-01 : f32
    %13 = vector.broadcast %cst_7 : f32 to vector<1x2048xf32>
    %14 = arith.mulf %10, %13 : vector<1x2048xf32>
    %15 = arith.mulf %12, %12 : vector<1x2048xf32>
    %16 = arith.subf %14, %15 : vector<1x2048xf32>
    %cst_8 = arith.constant 0.000000e+00 : f32
    %17 = vector.broadcast %cst_8 : f32 to vector<1x2048xf32>
    %18 = arith.maximumf %16, %17 : vector<1x2048xf32>
    %19 = vector.broadcast %12 : vector<1x2048xf32> to vector<8x2048xf32>
    %20 = arith.subf %5, %19 : vector<8x2048xf32>
    %cst_9 = arith.constant 9.99999974E-6 : f32
    %21 = vector.broadcast %cst_9 : f32 to vector<1x2048xf32>
    %22 = arith.addf %18, %21 : vector<1x2048xf32>
    %23 = math.rsqrt %22 : vector<1x2048xf32>
    %24 = vector.broadcast %23 : vector<1x2048xf32> to vector<8x2048xf32>
    %25 = arith.mulf %20, %24 : vector<8x2048xf32>
    %c0_10 = arith.constant 0 : index
    %c0_11 = arith.constant 0 : index
    %26 = vector.load %arg3[%c0_10, %c0_11] : memref<1x2048xf32, #tpu.memory_space<vmem>>, vector<1x2048xf32>
    %27 = vector.broadcast %26 : vector<1x2048xf32> to vector<8x2048xf32>
    %28 = arith.mulf %25, %27 : vector<8x2048xf32>
    %c0_12 = arith.constant 0 : index
    %c0_13 = arith.constant 0 : index
    %29 = vector.load %arg4[%c0_12, %c0_13] : memref<1x2048xf32, #tpu.memory_space<vmem>>, vector<1x2048xf32>
    %30 = vector.broadcast %29 : vector<1x2048xf32> to vector<8x2048xf32>
    %31 = arith.addf %28, %30 : vector<8x2048xf32>
    %cst_14 = arith.constant 0.000000e+00 : f32
    %32 = vector.broadcast %cst_14 : f32 to vector<8x2048xf32>
    %33 = arith.maximumf %31, %32 : vector<8x2048xf32>
    %c2048_i32 = arith.constant 2048 : i32
    %34 = arith.muli %arg0, %c2048_i32 : i32
    %35 = tpu.assume_multiple %34, 2048 : i32
    %36 = arith.index_cast %35 : i32 to index
    %c0_15 = arith.constant 0 : index
    %37 = vector.load %arg5[%36, %c0_15] : memref<4096x128xbf16, #tpu.memory_space<vmem>>, vector<2048x128xbf16>
    %c0_16 = arith.constant 0 : index
    %c0_17 = arith.constant 0 : index
    %38 = vector.load %arg8[%c0_16, %c0_17] : memref<8x128xf32, #tpu.memory_space<vmem>>, vector<8x128xf32>
    %39 = arith.truncf %33 : vector<8x2048xf32> to vector<8x2048xbf16>
    %cst_18 = arith.constant dense<0.000000e+00> : vector<8x128xf32>
    %40 = tpu.matmul %39, %37, %cst_18 {dimension_numbers = #tpu.dot_dimension_numbers<[1], [0], [0], [1], [0, 0, 1, 1], [], []>} : vector<8x2048xbf16>, vector<2048x128xbf16>, vector<8x128xf32> -> vector<8x128xf32>
    %41 = arith.addf %38, %40 : vector<8x128xf32>
    %c0_19 = arith.constant 0 : index
    %c0_20 = arith.constant 0 : index
    %42 = vector.load %arg8[%c0_19, %c0_20] : memref<8x128xf32, #tpu.memory_space<vmem>>, vector<8x128xf32>
    tpu.vector_store %arg8[%c0_19, %c0_20], %41 {strides = array<i32>} : memref<8x128xf32, #tpu.memory_space<vmem>>, vector<8x128xf32>,
    %c1_i32 = arith.constant 1 : i32
    %43 = arith.cmpi eq, %arg0, %c1_i32 : i32
    %44 = arith.extui %43 : i1 to i32
    %c0_i32_21 = arith.constant 0 : i32
    %45 = arith.cmpi ne, %44, %c0_i32_21 : i32
    scf.if %45 {
      %c0_22 = arith.constant 0 : index
      %c0_23 = arith.constant 0 : index
      %46 = vector.load %arg8[%c0_22, %c0_23] : memref<8x128xf32, #tpu.memory_space<vmem>>, vector<8x128xf32>
      %cst_24 = arith.constant dense<0.000000e+00> : vector<128xf32>
      %47 = vector.multi_reduction <add>, %46, %cst_24 [0] : vector<8x128xf32> to vector<128xf32>
      %48 = vector.shape_cast %47 : vector<128xf32> to vector<1x128xf32>
      %49 = arith.mulf %46, %46 : vector<8x128xf32>
      %cst_25 = arith.constant dense<0.000000e+00> : vector<128xf32>
      %50 = vector.multi_reduction <add>, %49, %cst_25 [0] : vector<8x128xf32> to vector<128xf32>
      %51 = vector.shape_cast %50 : vector<128xf32> to vector<1x128xf32>
      %cst_26 = arith.constant 1.250000e-01 : f32
      %52 = vector.broadcast %cst_26 : f32 to vector<1x128xf32>
      %53 = arith.mulf %48, %52 : vector<1x128xf32>
      %cst_27 = arith.constant 1.250000e-01 : f32
      %54 = vector.broadcast %cst_27 : f32 to vector<1x128xf32>
      %55 = arith.mulf %51, %54 : vector<1x128xf32>
      %56 = arith.mulf %53, %53 : vector<1x128xf32>
      %57 = arith.subf %55, %56 : vector<1x128xf32>
      %cst_28 = arith.constant 0.000000e+00 : f32
      %58 = vector.broadcast %cst_28 : f32 to vector<1x128xf32>
      %59 = arith.maximumf %57, %58 : vector<1x128xf32>
      %60 = vector.broadcast %53 : vector<1x128xf32> to vector<8x128xf32>
      %61 = arith.subf %46, %60 : vector<8x128xf32>
      %cst_29 = arith.constant 9.99999974E-6 : f32
      %62 = vector.broadcast %cst_29 : f32 to vector<1x128xf32>
      %63 = arith.addf %59, %62 : vector<1x128xf32>
      %64 = math.rsqrt %63 : vector<1x128xf32>
      %65 = vector.broadcast %64 : vector<1x128xf32> to vector<8x128xf32>
      %66 = arith.mulf %61, %65 : vector<8x128xf32>
      %c0_30 = arith.constant 0 : index
      %c0_31 = arith.constant 0 : index
      %67 = vector.load %arg6[%c0_30, %c0_31] : memref<1x128xf32, #tpu.memory_space<vmem>>, vector<1x128xf32>
      %68 = vector.broadcast %67 : vector<1x128xf32> to vector<8x128xf32>
      %69 = arith.mulf %66, %68 : vector<8x128xf32>
      %c0_32 = arith.constant 0 : index
      %c0_33 = arith.constant 0 : index
      %70 = vector.load %arg7[%c0_32, %c0_33] : memref<1x128xf32, #tpu.memory_space<vmem>>, vector<1x128xf32>
      %71 = vector.broadcast %70 : vector<1x128xf32> to vector<8x128xf32>
      %72 = arith.addf %69, %71 : vector<8x128xf32>
      %c0_34 = arith.constant 0 : index
      %c0_35 = arith.constant 0 : index
      %73 = vector.load %arg8[%c0_34, %c0_35] : memref<8x128xf32, #tpu.memory_space<vmem>>, vector<8x128xf32>
      tpu.vector_store %arg8[%c0_34, %c0_35], %72 {strides = array<i32>} : memref<8x128xf32, #tpu.memory_space<vmem>>, vector<8x128xf32>,
    } else {
    }
    return
  }
  func.func @transform_0(%arg0: i32) -> (i32, i32) {
    %c0_i32 = arith.constant 0 : i32
    %c0_i32_0 = arith.constant 0 : i32
    %c0_i32_1 = arith.constant 0 : i32
    return %c0_i32, %c0_i32_0 : i32, i32
  }
  func.func @transform_1(%arg0: i32) -> (i32, i32) {
    %c0_i32 = arith.constant 0 : i32
    %c0_i32_0 = arith.constant 0 : i32
    return %c0_i32, %arg0 : i32, i32
  }
  func.func @transform_2(%arg0: i32) -> (i32, i32) {
    %c0_i32 = arith.constant 0 : i32
    %c0_i32_0 = arith.constant 0 : i32
    return %c0_i32, %arg0 : i32, i32
  }
  func.func @transform_3(%arg0: i32) -> (i32, i32) {
    %c0_i32 = arith.constant 0 : i32
    %c0_i32_0 = arith.constant 0 : i32
    return %c0_i32, %arg0 : i32, i32
  }
  func.func @transform_4(%arg0: i32) -> (i32, i32) {
    %c0_i32 = arith.constant 0 : i32
    %c0_i32_0 = arith.constant 0 : i32
    %c0_i32_1 = arith.constant 0 : i32
    return %c0_i32, %c0_i32_0 : i32, i32
  }
  func.func @transform_5(%arg0: i32) -> (i32, i32) {
    %c0_i32 = arith.constant 0 : i32
    %c0_i32_0 = arith.constant 0 : i32
    %c0_i32_1 = arith.constant 0 : i32
    return %c0_i32, %c0_i32_0 : i32, i32
  }
  func.func @transform_6(%arg0: i32) -> (i32, i32) {
    %c0_i32 = arith.constant 0 : i32
    %c0_i32_0 = arith.constant 0 : i32
    %c0_i32_1 = arith.constant 0 : i32
    return %c0_i32, %c0_i32_0 : i32, i32
  }
  func.func @transform_7(%arg0: i32) -> (i32, i32) {
    %c0_i32 = arith.constant 0 : i32
    %c0_i32_0 = arith.constant 0 : i32
    %c0_i32_1 = arith.constant 0 : i32
    return %c0_i32, %c0_i32_0 : i32, i32
  }
}

module attributes {stable_mosaic.version = 11 : i64} {
  func.func @projector_kernel(%arg0: i32, %arg1: memref<8x32xbf16, #tpu.memory_space<vmem>>, %arg2: memref<32x2048xbf16, #tpu.memory_space<vmem>>, %arg3: memref<1x2048xf32, #tpu.memory_space<vmem>>, %arg4: memref<1x2048xf32, #tpu.memory_space<vmem>>, %arg5: memref<4096x128xbf16, #tpu.memory_space<vmem>>, %arg6: memref<1x128xf32, #tpu.memory_space<vmem>>, %arg7: memref<1x128xf32, #tpu.memory_space<vmem>>, %arg8: memref<8x128xf32, #tpu.memory_space<vmem>>) attributes {dimension_semantics = [#tpu.dimension_semantics<arbitrary>], iteration_bounds = array<i64: 2>, scalar_prefetch = 0 : i64, scratch_operands = 0 : i64, tpu.core_type = #tpu.core_type<tc>, window_params = [{pipeline_mode = #tpu.pipeline_mode<synchronous>, transform_indices = @transform_0, window_bounds = array<i64: 8, 32>}, {transform_indices = @transform_1, window_bounds = array<i64: 32, 2048>}, {transform_indices = @transform_2, window_bounds = array<i64: 1, 2048>}, {transform_indices = @transform_3, window_bounds = array<i64: 1, 2048>}, {pipeline_mode = #tpu.pipeline_mode<synchronous>, transform_indices = @transform_4, window_bounds = array<i64: 4096, 128>}, {pipeline_mode = #tpu.pipeline_mode<synchronous>, transform_indices = @transform_5, window_bounds = array<i64: 1, 128>}, {pipeline_mode = #tpu.pipeline_mode<synchronous>, transform_indices = @transform_6, window_bounds = array<i64: 1, 128>}, {pipeline_mode = #tpu.pipeline_mode<synchronous>, transform_indices = @transform_7, window_bounds = array<i64: 8, 128>}]} {
    %c0_i32 = arith.constant 0 : i32
    %0 = arith.cmpi eq, %arg0, %c0_i32 : i32
    %1 = arith.extui %0 : i1 to i32
    %c0_i32_0 = arith.constant 0 : i32
    %2 = arith.cmpi ne, %1, %c0_i32_0 : i32
    scf.if %2 {
      %cst_22 = arith.constant 0.000000e+00 : f32
      %46 = vector.broadcast %cst_22 : f32 to vector<8x128xf32>
      %c0_23 = arith.constant 0 : index
      %c0_24 = arith.constant 0 : index
      %47 = vector.load %arg8[%c0_23, %c0_24] : memref<8x128xf32, #tpu.memory_space<vmem>>, vector<8x128xf32>
      tpu.vector_store %arg8[%c0_23, %c0_24], %46 {strides = array<i32>} : memref<8x128xf32, #tpu.memory_space<vmem>>, vector<8x128xf32>,
    } else {
    }
    %c0 = arith.constant 0 : index
    %c0_1 = arith.constant 0 : index
    %3 = vector.load %arg1[%c0, %c0_1] : memref<8x32xbf16, #tpu.memory_space<vmem>>, vector<8x32xbf16>
    %c0_2 = arith.constant 0 : index
    %c0_3 = arith.constant 0 : index
    %4 = vector.load %arg2[%c0_2, %c0_3] : memref<32x2048xbf16, #tpu.memory_space<vmem>>, vector<32x2048xbf16>
    %cst = arith.constant dense<0.000000e+00> : vector<8x2048xf32>
    %5 = tpu.matmul %3, %4, %cst {dimension_numbers = #tpu.dot_dimension_numbers<[1], [0], [0], [1], [0, 0, 1, 1], [], []>} : vector<8x32xbf16>, vector<32x2048xbf16>, vector<8x2048xf32> -> vector<8x2048xf32>
    %cst_4 = arith.constant dense<0.000000e+00> : vector<2048xf32>
    %6 = vector.multi_reduction <add>, %5, %cst_4 [0] : vector<8x2048xf32> to vector<2048xf32>
    %7 = vector.shape_cast %6 : vector<2048xf32> to vector<1x2048xf32>
    %8 = arith.mulf %5, %5 : vector<8x2048xf32>
    %cst_5 = arith.constant dense<0.000000e+00> : vector<2048xf32>
    %9 = vector.multi_reduction <add>, %8, %cst_5 [0] : vector<8x2048xf32> to vector<2048xf32>
    %10 = vector.shape_cast %9 : vector<2048xf32> to vector<1x2048xf32>
    %cst_6 = arith.constant 1.250000e-01 : f32
    %11 = vector.broadcast %cst_6 : f32 to vector<1x2048xf32>
    %12 = arith.mulf %7, %11 : vector<1x2048xf32>
    %cst_7 = arith.constant 1.250000e-01 : f32
    %13 = vector.broadcast %cst_7 : f32 to vector<1x2048xf32>
    %14 = arith.mulf %10, %13 : vector<1x2048xf32>
    %15 = arith.mulf %12, %12 : vector<1x2048xf32>
    %16 = arith.subf %14, %15 : vector<1x2048xf32>
    %cst_8 = arith.constant 0.000000e+00 : f32
    %17 = vector.broadcast %cst_8 : f32 to vector<1x2048xf32>
    %18 = arith.maximumf %16, %17 : vector<1x2048xf32>
    %19 = vector.broadcast %12 : vector<1x2048xf32> to vector<8x2048xf32>
    %20 = arith.subf %5, %19 : vector<8x2048xf32>
    %cst_9 = arith.constant 9.99999974E-6 : f32
    %21 = vector.broadcast %cst_9 : f32 to vector<1x2048xf32>
    %22 = arith.addf %18, %21 : vector<1x2048xf32>
    %23 = math.rsqrt %22 : vector<1x2048xf32>
    %24 = vector.broadcast %23 : vector<1x2048xf32> to vector<8x2048xf32>
    %25 = arith.mulf %20, %24 : vector<8x2048xf32>
    %c0_10 = arith.constant 0 : index
    %c0_11 = arith.constant 0 : index
    %26 = vector.load %arg3[%c0_10, %c0_11] : memref<1x2048xf32, #tpu.memory_space<vmem>>, vector<1x2048xf32>
    %27 = vector.broadcast %26 : vector<1x2048xf32> to vector<8x2048xf32>
    %28 = arith.mulf %25, %27 : vector<8x2048xf32>
    %c0_12 = arith.constant 0 : index
    %c0_13 = arith.constant 0 : index
    %29 = vector.load %arg4[%c0_12, %c0_13] : memref<1x2048xf32, #tpu.memory_space<vmem>>, vector<1x2048xf32>
    %30 = vector.broadcast %29 : vector<1x2048xf32> to vector<8x2048xf32>
    %31 = arith.addf %28, %30 : vector<8x2048xf32>
    %cst_14 = arith.constant 0.000000e+00 : f32
    %32 = vector.broadcast %cst_14 : f32 to vector<8x2048xf32>
    %33 = arith.maximumf %31, %32 : vector<8x2048xf32>
    %c2048_i32 = arith.constant 2048 : i32
    %34 = arith.muli %arg0, %c2048_i32 : i32
    %35 = tpu.assume_multiple %34, 2048 : i32
    %36 = arith.index_cast %35 : i32 to index
    %c0_15 = arith.constant 0 : index
    %37 = vector.load %arg5[%36, %c0_15] : memref<4096x128xbf16, #tpu.memory_space<vmem>>, vector<2048x128xbf16>
    %c0_16 = arith.constant 0 : index
    %c0_17 = arith.constant 0 : index
    %38 = vector.load %arg8[%c0_16, %c0_17] : memref<8x128xf32, #tpu.memory_space<vmem>>, vector<8x128xf32>
    %39 = arith.truncf %33 : vector<8x2048xf32> to vector<8x2048xbf16>
    %cst_18 = arith.constant dense<0.000000e+00> : vector<8x128xf32>
    %40 = tpu.matmul %39, %37, %cst_18 {dimension_numbers = #tpu.dot_dimension_numbers<[1], [0], [0], [1], [0, 0, 1, 1], [], []>} : vector<8x2048xbf16>, vector<2048x128xbf16>, vector<8x128xf32> -> vector<8x128xf32>
    %41 = arith.addf %38, %40 : vector<8x128xf32>
    %c0_19 = arith.constant 0 : index
    %c0_20 = arith.constant 0 : index
    %42 = vector.load %arg8[%c0_19, %c0_20] : memref<8x128xf32, #tpu.memory_space<vmem>>, vector<8x128xf32>
    tpu.vector_store %arg8[%c0_19, %c0_20], %41 {strides = array<i32>} : memref<8x128xf32, #tpu.memory_space<vmem>>, vector<8x128xf32>,
    %c1_i32 = arith.constant 1 : i32
    %43 = arith.cmpi eq, %arg0, %c1_i32 : i32
    %44 = arith.extui %43 : i1 to i32
    %c0_i32_21 = arith.constant 0 : i32
    %45 = arith.cmpi ne, %44, %c0_i32_21 : i32
    scf.if %45 {
      %c0_22 = arith.constant 0 : index
      %c0_23 = arith.constant 0 : index
      %46 = vector.load %arg8[%c0_22, %c0_23] : memref<8x128xf32, #tpu.memory_space<vmem>>, vector<8x128xf32>
      %cst_24 = arith.constant dense<0.000000e+00> : vector<128xf32>
      %47 = vector.multi_reduction <add>, %46, %cst_24 [0] : vector<8x128xf32> to vector<128xf32>
      %48 = vector.shape_cast %47 : vector<128xf32> to vector<1x128xf32>
      %49 = arith.mulf %46, %46 : vector<8x128xf32>
      %cst_25 = arith.constant dense<0.000000e+00> : vector<128xf32>
      %50 = vector.multi_reduction <add>, %49, %cst_25 [0] : vector<8x128xf32> to vector<128xf32>
      %51 = vector.shape_cast %50 : vector<128xf32> to vector<1x128xf32>
      %cst_26 = arith.constant 1.250000e-01 : f32
      %52 = vector.broadcast %cst_26 : f32 to vector<1x128xf32>
      %53 = arith.mulf %48, %52 : vector<1x128xf32>
      %cst_27 = arith.constant 1.250000e-01 : f32
      %54 = vector.broadcast %cst_27 : f32 to vector<1x128xf32>
      %55 = arith.mulf %51, %54 : vector<1x128xf32>
      %56 = arith.mulf %53, %53 : vector<1x128xf32>
      %57 = arith.subf %55, %56 : vector<1x128xf32>
      %cst_28 = arith.constant 0.000000e+00 : f32
      %58 = vector.broadcast %cst_28 : f32 to vector<1x128xf32>
      %59 = arith.maximumf %57, %58 : vector<1x128xf32>
      %60 = vector.broadcast %53 : vector<1x128xf32> to vector<8x128xf32>
      %61 = arith.subf %46, %60 : vector<8x128xf32>
      %cst_29 = arith.constant 9.99999974E-6 : f32
      %62 = vector.broadcast %cst_29 : f32 to vector<1x128xf32>
      %63 = arith.addf %59, %62 : vector<1x128xf32>
      %64 = math.rsqrt %63 : vector<1x128xf32>
      %65 = vector.broadcast %64 : vector<1x128xf32> to vector<8x128xf32>
      %66 = arith.mulf %61, %65 : vector<8x128xf32>
      %c0_30 = arith.constant 0 : index
      %c0_31 = arith.constant 0 : index
      %67 = vector.load %arg6[%c0_30, %c0_31] : memref<1x128xf32, #tpu.memory_space<vmem>>, vector<1x128xf32>
      %68 = vector.broadcast %67 : vector<1x128xf32> to vector<8x128xf32>
      %69 = arith.mulf %66, %68 : vector<8x128xf32>
      %c0_32 = arith.constant 0 : index
      %c0_33 = arith.constant 0 : index
      %70 = vector.load %arg7[%c0_32, %c0_33] : memref<1x128xf32, #tpu.memory_space<vmem>>, vector<1x128xf32>
      %71 = vector.broadcast %70 : vector<1x128xf32> to vector<8x128xf32>
      %72 = arith.addf %69, %71 : vector<8x128xf32>
      %c0_34 = arith.constant 0 : index
      %c0_35 = arith.constant 0 : index
      %73 = vector.load %arg8[%c0_34, %c0_35] : memref<8x128xf32, #tpu.memory_space<vmem>>, vector<8x128xf32>
      tpu.vector_store %arg8[%c0_34, %c0_35], %72 {strides = array<i32>} : memref<8x128xf32, #tpu.memory_space<vmem>>, vector<8x128xf32>,
    } else {
    }
    return
  }
  func.func @transform_0(%arg0: i32) -> (i32, i32) {
    %c0_i32 = arith.constant 0 : i32
    %c0_i32_0 = arith.constant 0 : i32
    %c0_i32_1 = arith.constant 0 : i32
    return %c0_i32, %c0_i32_0 : i32, i32
  }
  func.func @transform_1(%arg0: i32) -> (i32, i32) {
    %c0_i32 = arith.constant 0 : i32
    %c0_i32_0 = arith.constant 0 : i32
    return %c0_i32, %arg0 : i32, i32
  }
  func.func @transform_2(%arg0: i32) -> (i32, i32) {
    %c0_i32 = arith.constant 0 : i32
    %c0_i32_0 = arith.constant 0 : i32
    return %c0_i32, %arg0 : i32, i32
  }
  func.func @transform_3(%arg0: i32) -> (i32, i32) {
    %c0_i32 = arith.constant 0 : i32
    %c0_i32_0 = arith.constant 0 : i32
    return %c0_i32, %arg0 : i32, i32
  }
  func.func @transform_4(%arg0: i32) -> (i32, i32) {
    %c0_i32 = arith.constant 0 : i32
    %c0_i32_0 = arith.constant 0 : i32
    %c0_i32_1 = arith.constant 0 : i32
    return %c0_i32, %c0_i32_0 : i32, i32
  }
  func.func @transform_5(%arg0: i32) -> (i32, i32) {
    %c0_i32 = arith.constant 0 : i32
    %c0_i32_0 = arith.constant 0 : i32
    %c0_i32_1 = arith.constant 0 : i32
    return %c0_i32, %c0_i32_0 : i32, i32
  }
  func.func @transform_6(%arg0: i32) -> (i32, i32) {
    %c0_i32 = arith.constant 0 : i32
    %c0_i32_0 = arith.constant 0 : i32
    %c0_i32_1 = arith.constant 0 : i32
    return %c0_i32, %c0_i32_0 : i32, i32
  }
  func.func @transform_7(%arg0: i32) -> (i32, i32) {
    %c0_i32 = arith.constant 0 : i32
    %c0_i32_0 = arith.constant 0 : i32
    %c0_i32_1 = arith.constant 0 : i32
    return %c0_i32, %c0_i32_0 : i32, i32
  }
}

</mosaic_0001>

<bundles_post_ra>
// kernel: tpu_custom_call.1
= control target key start
LH: loop header
LB: loop body
LE: loop exit
PB: predicated region body
PF: predicated region fallthrough
CT: control target
= control target key end

     0   :  { %s4740_s0 = inlined_call_operand.hbm [shape: bf16[8,32], index: 0, kind: input, shape index: {}]   ;;  %s4741_s1 = inlined_call_operand.hbm [shape: bf16[32,4096], index: 1, kind: input, shape index: {}]   ;;  %s4742_s2 = inlined_call_operand.hbm [shape: f32[1,4096], index: 2, kind: input, shape index: {}]   ;;  %s4743_s3 = inlined_call_operand.hbm [shape: f32[1,4096], index: 3, kind: input, shape index: {}]   ;;  %s4744_s4 = inlined_call_operand.hbm [shape: bf16[4096,128], index: 4, kind: input, shape index: {}]   ;;  %s4745_s5 = inlined_call_operand.vmem [shape: f32[1,128], index: 5, kind: input, shape index: {}]   ;;  %s4746_s6 = inlined_call_operand.vmem [shape: f32[1,128], index: 6, kind: input, shape index: {}]   ;;  %s4747_s7 = inlined_call_operand.hbm [shape: f32[8,128], index: 7, kind: output, shape index: {}]  }
   0x1   :  { %4760 = sst [smem:[#allocation19_spill]] %s4741_s1 }
   0x2   :  { %4761 = sst [smem:[#allocation20_spill]] %s4744_s4 }
   0x3   :  { %12 = vsyncpa [#allocation3], 0 }
   0x4   :  { %13 = vsyncpa [#allocation6], 0 }
   0x5   :  { %15 = vsyncpa [#allocation6 + $0x1], 0 }
   0x6   :  { %16 = vsyncpa [#allocation9], 0 }
   0x7   :  { %18 = vsyncpa [#allocation9 + $0x1], 0 }
   0x8   :  { %19 = vsyncpa [#allocation4], 0  ;;  %s3920_s24 = smov 0   ;;  %s3922_s25 = smov 0  }
   0x9   :  { %s3924_s26 = smov 0   ;;  %s3926_s27 = smov 0  }
   0xa LB: > { %s3939_s28 = sadd.s32 4294967295, %s3866_s27   ;;  %s3942_s29 = sadd.s32 1, %s3866_s27   ;;  %s3866_s27 = sphi %s3926_s27, %s4789_s27   ;;  %s3862_s26 = sphi %s3924_s26, %s4793_s26   ;;  %s3858_s25 = sphi %s3922_s25, %s4792_s25   ;;  %s3854_s24 = sphi %s3920_s24, %s4791_s24  }
   0xb   : > { %4762 = sst [smem:[#allocation17_spill]] %s3942_s29  ;;  %s50_s30 = ssub.s32 %s3866_s27, %s3942_s29 }
   0xc   : > { %s53_s8 = sadd.s32 1, %s3862_s26  ;;  %p51_p0 = scmp.eq.s32.totalorder %s50_s30, 0 }
   0xd   : > { %p60_p1 = scmp.ne.s32.totalorder %s3862_s26, %s3858_s25  ;;  %p61_p2 = scmp.eq.s32.totalorder %s3866_s27, 0 }
   0xe   : > { %p66_p3 = scmp.ne.s32.totalorder %s3858_s25, %s3854_s24  ;;  %p4748_p5 = scmp.eq.s32.totalorder %s3939_s28, 0 }
   0xf   : > { %s3952_s9 = scalar_select %p51_p0, %s3862_s26, %s53_s8  }
  0x10   : > { %p3954_p4 = por %p61_p2, %p60_p1  ;;  %p3023_p6 = scmp.ge.s32.totalorder %s3866_s27, 1 }
  0x11   : > { %4763 = sst [smem:[#allocation18_spill]] %s3952_s9  ;;  %p213_p7 = scmp.lt.s32.totalorder %s3866_s27, 3 }
  0x12   : > { %p3963_p8 = por %p4748_p5, %p66_p3  ;;  %s3868_s13 = smov [#allocation10]  }
  0x13   : > { %p3968_p10 = pnand %p3023_p6, %p213_p7  ;;  %s236_s14 = sshll.u32 %s3868_s13, 4  ;;  %s237_s14 = int_to_ptr.vmem [resolvable:$true] %s236_s14 }
  0x14   : > { %s4765_s11 = scalar_select %p3963_p8, 1, 0 }
  0x15   : > { %s4766_s12 = scalar_select %p3968_p10, 1, 0 }
  0x16   : > { %p3417_p11 = pneg %p3968_p10  ;;  %p3436_p13 = scmp.lt.s32.totalorder %s3866_s27, 2 }
  0x17   : > { %s258_s17 = sand.u32 1, %s3862_s26   ;;  %s4769_s4 = sld [smem:[#allocation20_spill]] }
  0x18   : > { %p3976_p12 = pnand %p3417_p11, %p4748_p5  ;;  %p3985_p0 = pnand %p3436_p13, %p3954_p4 }
  0x1a   : > { %s4767_s15 = scalar_select %p3976_p12, 1, 0 }
  0x1b   : > { %s4768_s18 = scalar_select %p3985_p0, 1, 0 }
  0x1c   : > { %p4754_p2 = pneg %p3976_p12 }
  0x1d   : > { %s3644_s21 = scalar_lea.hbm %s4769_s4, 32768 }
  0x1e   : > { %p3645_p1 = scmp.ne.s32.totalorder %s4769_s4, %s3644_s21  ;;  %p3651_p4 = scmp.lt.u32.totalorder %s3644_s21, %s4769_s4 }
  0x20   : > { %p3647_p3 = pnand %p4754_p2, %p3645_p1 }
  0x22   : > { %p3648_p6 = pneg %p3647_p3 }
  0x24   : > { %p3653_p7 = pnand %p3651_p4, %p3648_p6 }
  0x26   : > { %3656 = shalt.err (!%p3653_p7)
}
  0x27   : > { %s3657_s8 = scalar_lea.vmem %s237_s14, 32768  ;;  %p3665_p5 = scmp.lt.s32.totalorder %s237_s14, %s237_s14 }
  0x28   : > { %p3658_p11 = scmp.ne.s32.totalorder %s237_s14, %s3657_s8  ;;  %p3666_p8 = scmp.lt.s32.totalorder %s3657_s8, %s3657_s8 }
  0x2a   : > { %p3660_p13 = pnand %p3658_p11, %p4754_p2  ;;  %p3667_p10 = por %p3666_p8, %p3665_p5 }
  0x2c   : > { %p3661_p9 = pneg %p3660_p13 }
  0x2e   : > { %p3668_p0 = pnand %p3667_p10, %p3661_p9 }
  0x30   : > { %3671 = shalt.err (!%p3668_p0)
}
  0x31   : > { %s3869_s10 = smov 64   ;;  %s3870_s13 = smov 4  }
  0x32   : > { %3423 = dma.hbm_to_vmem [thread:$0]  (!%p3976_p12), %s4769_s4, 32768, %s237_s14, [#allocation9], %s3869_s10, %s3869_s10, %s3870_s13  }
  0x33   : > { %s3027_s21 = sshll.u32 %s258_s17, 8  ;;  %s3220_s22 = sshll.u32 %s3866_s27, 10 }
  0x34   : > { %s4770_s1 = sld [smem:[#allocation19_spill]]  ;;  %s260_s8 = scalar_lea.vmem [#allocation5], %s3027_s21 }
  0x35   : > { %s267_s16 = sshll.u32 %s260_s8, 4  ;;  %s4771_s9 = sand.u32 1, %s3866_s27   ;;  %s4021_s16 = int_to_ptr.vmem [resolvable:$true] %s267_s16 }
  0x36   : > { %s4025_s29 = scalar_lea.sflag [#allocation6], %s4771_s9  ;;  %p4772_p8 = scmp.ne.s32.totalorder %s4768_s18, 0 }
  0x38   : > { %p4031_p9 = pneg %p4772_p8 }
  0x3a   : > { %s4019_s30 = scalar_lea.hbm %s4770_s1, %s3220_s22  ;;  %s3677_s21 = scalar_lea.hbm %s4770_s1, 8192 }
  0x3b   : > { %s3672_s14 = scalar_lea.hbm %s4019_s30, 4096  ;;  %p3678_p1 = scmp.lt.u32.totalorder %s4019_s30, %s4770_s1 }
  0x3c   : > { %p3673_p5 = scmp.ne.s32.totalorder %s4019_s30, %s3672_s14  ;;  %p3679_p3 = scmp.lt.u32.totalorder %s3677_s21, %s3672_s14 }
  0x3d   : > { %s4773_s13 = scalar_select %p4031_p9, 1, 0 }
  0x3e   : > { %p3675_p10 = pnand %p4031_p9, %p3673_p5  ;;  %p3680_p6 = por %p3679_p3, %p3678_p1 }
  0x3f   : > { %p3681_p4 = scmp.lt.u32.totalorder %s3672_s14, %s4019_s30 }
  0x40   : > { %p3676_p0 = pneg %p3675_p10 }
  0x41   : > { %p3682_p7 = por %p3681_p4, %p3680_p6 }
  0x43   : > { %p3683_p11 = pnand %p3682_p7, %p3676_p0 }
  0x45   : > { %3686 = shalt.err (!%p3683_p11)
}
  0x46   : > { %s3687_s9 = scalar_lea.vmem %s4021_s16, 4096  ;;  %s3871_s24 = smov [#allocation5]  }
  0x47   : > { %p3688_p13 = scmp.ne.s32.totalorder %s4021_s16, %s3687_s9  ;;  %s3692_s8 = sshll.u32 %s3871_s24, 4  ;;  %s3693_s8 = int_to_ptr.vmem [resolvable:$false] %s3692_s8 }
  0x48   : > { %s3694_s19 = scalar_lea.vmem %s3693_s8, 8192  ;;  %p3695_p2 = scmp.lt.s32.totalorder %s4021_s16, %s3693_s8 }
  0x49   : > { %p3690_p5 = pnand %p3688_p13, %p4031_p9  ;;  %p3696_p12 = scmp.lt.s32.totalorder %s3694_s19, %s3687_s9 }
  0x4b   : > { %p3691_p10 = pneg %p3690_p5  ;;  %p3697_p1 = por %p3696_p12, %p3695_p2 }
  0x4d   : > { %p3698_p3 = pnand %p3697_p1, %p3691_p10 }
  0x4f   : > { %3701 = shalt.err (!%p3698_p3)
}
  0x50   : > { %s3872_s14 = smov 2048   ;;  %s3873_s20 = smov 1024  }
  0x51   : > { %3427 = dma.hbm_to_vmem [thread:$0]  (!%p4772_p8), %s4019_s30, 4096, %s4021_s16, %s4025_s29, %s3872_s14, %s3873_s20, %s3869_s10  }
  0x52   : > { %s4058_s21 = sshll.u32 %s258_s17, 4  ;;  %s3874_s22 = smov [#allocation2]  }
  0x53   : > { %s226_s23 = sshll.u32 %s3874_s22, 4  ;;  %s3221_s9 = sshll.u32 %s3866_s27, 8  ;;  %s227_s23 = int_to_ptr.vmem [resolvable:$true] %s226_s23 }
  0x54   : > { %s3702_s19 = scalar_lea.hbm %s4740_s0, 64  ;;  %p4774_p2 = scmp.ne.s32.totalorder %s4767_s15, 0 }
  0x55   : > { %p3703_p12 = scmp.ne.s32.totalorder %s4740_s0, %s3702_s19  ;;  %p3709_p7 = scmp.lt.u32.totalorder %s3702_s19, %s4740_s0 }
  0x56   : > { %p4775_p0 = pneg %p4774_p2 }
  0x58   : > { %p3705_p6 = pnand %p3703_p12, %p4775_p0 }
  0x5a   : > { %p3706_p4 = pneg %p3705_p6 }
  0x5c   : > { %p3711_p11 = pnand %p3709_p7, %p3706_p4 }
  0x5e   : > { %3714 = shalt.err (!%p3711_p11)
}
  0x5f   : > { %s3715_s17 = scalar_lea.vmem %s227_s23, 64  ;;  %p4776_p5 = pmov %p4775_p0 }
  0x60   : > { %p3716_p13 = scmp.ne.s32.totalorder %s227_s23, %s3715_s17  ;;  %p3723_p3 = scmp.lt.s32.totalorder %s227_s23, %s227_s23 }
  0x61   : > { %p3724_p8 = scmp.lt.s32.totalorder %s3715_s17, %s3715_s17 }
  0x62   : > { %p3718_p10 = pnand %p3716_p13, %p4776_p5 }
  0x63   : > { %p3725_p9 = por %p3724_p8, %p3723_p3 }
  0x64   : > { %p3719_p1 = pneg %p3718_p10 }
  0x66   : > { %p3726_p0 = pnand %p3725_p9, %p3719_p1 }
  0x68   : > { %3729 = shalt.err (!%p3726_p0)
}
  0x69   : > { %3420 = dma.hbm_to_vmem [thread:$0]  (!%p4774_p2), %s4740_s0, 64, %s227_s23, [#allocation3]  }
  0x6a   : > { %s4086_s20 = scalar_lea.hbm %s4742_s2, %s3221_s9  ;;  %s281_s22 = scalar_lea.vmem [#allocation7], %s4058_s21 }
  0x6b   : > { %s289_s24 = sshll.u32 %s281_s22, 4  ;;  %s3730_s15 = scalar_lea.hbm %s4086_s20, 256  ;;  %s290_s24 = int_to_ptr.vmem [resolvable:$true] %s289_s24 }
  0x6c   : > { %p3731_p8 = scmp.ne.s32.totalorder %s4086_s20, %s3730_s15  ;;  %p4777_p9 = scmp.ne.s32.totalorder %s4773_s13, 0 }
  0x6d   : > { %s3735_s19 = scalar_lea.hbm %s4742_s2, 512  ;;  %p3736_p2 = scmp.lt.u32.totalorder %s4086_s20, %s4742_s2 }
  0x6e   : > { %p3733_p12 = pnand %p3731_p8, %p4777_p9  ;;  %p3737_p4 = scmp.lt.u32.totalorder %s3735_s19, %s3730_s15 }
  0x6f   : > { %p3739_p11 = scmp.lt.u32.totalorder %s3730_s15, %s4086_s20 }
  0x70   : > { %p3734_p6 = pneg %p3733_p12  ;;  %p3738_p7 = por %p3737_p4, %p3736_p2 }
  0x72   : > { %p3740_p13 = por %p3739_p11, %p3738_p7 }
  0x74   : > { %p3741_p5 = pnand %p3740_p13, %p3734_p6 }
  0x76   : > { %3744 = shalt.err (!%p3741_p5)
}
  0x77   : > { %s3745_s17 = scalar_lea.vmem %s290_s24, 256  ;;  %s3875_s1 = smov [#allocation7]  }
  0x78   : > { %p3746_p10 = scmp.ne.s32.totalorder %s290_s24, %s3745_s17  ;;  %s3750_s4 = sshll.u32 %s3875_s1, 4  ;;  %s3751_s4 = int_to_ptr.vmem [resolvable:$false] %s3750_s4 }
  0x79   : > { %s3752_s30 = scalar_lea.vmem %s3751_s4, 512  ;;  %p3753_p0 = scmp.lt.s32.totalorder %s290_s24, %s3751_s4 }
  0x7a   : > { %p3748_p1 = pnand %p3746_p10, %p4777_p9  ;;  %p3754_p8 = scmp.lt.s32.totalorder %s3752_s30, %s3745_s17 }
  0x7c   : > { %p3749_p3 = pneg %p3748_p1  ;;  %p3755_p12 = por %p3754_p8, %p3753_p0 }
  0x7e   : > { %p3756_p2 = pnand %p3755_p12, %p3749_p3 }
  0x80   : > { %3759 = shalt.err (!%p3756_p2)
}
  0x81   : > { %p4778_p4 = scmp.ne.s32.totalorder %s4768_s18, 0  ;;  %s4112_s15 = scalar_lea.hbm %s4743_s3, %s3221_s9 }
  0x82   : > { %s300_s8 = scalar_lea.vmem [#allocation8], %s4058_s21  ;;  %s4779_s19 = sand.u32 1, %s3866_s27  }
  0x83   : > { %3430 = dma.hbm_to_vmem [thread:$0]  (!%p4778_p4), %s4086_s20, 256, %s290_s24, %s4025_s29  }
  0x84   : > { %s308_s23 = sshll.u32 %s300_s8, 4  ;;  %s297_s16 = scalar_lea.sflag [#allocation9], %s4779_s19  ;;  %s309_s23 = int_to_ptr.vmem [resolvable:$true] %s308_s23 }
  0x85   : > { %s3760_s10 = scalar_lea.hbm %s4112_s15, 256  ;;  %s3765_s24 = scalar_lea.hbm %s4743_s3, 512 }
  0x86   : > { %p3761_p6 = scmp.ne.s32.totalorder %s4112_s15, %s3760_s10  ;;  %p3766_p13 = scmp.lt.u32.totalorder %s4112_s15, %s4743_s3 }
  0x87   : > { %p3767_p5 = scmp.lt.u32.totalorder %s3765_s24, %s3760_s10  ;;  %p3769_p1 = scmp.lt.u32.totalorder %s3760_s10, %s4112_s15 }
  0x88   : > { %p3763_p7 = pnand %p3761_p6, %p4777_p9 }
  0x89   : > { %p3768_p10 = por %p3767_p5, %p3766_p13 }
  0x8a   : > { %p3764_p11 = pneg %p3763_p7 }
  0x8b   : > { %p3770_p3 = por %p3769_p1, %p3768_p10 }
  0x8d   : > { %p3771_p0 = pnand %p3770_p3, %p3764_p11 }
  0x8f   : > { %3774 = shalt.err (!%p3771_p0)
}
  0x90   : > { %s3775_s27 = scalar_lea.vmem %s309_s23, 256  ;;  %s3876_s21 = smov [#allocation8]  }
  0x91   : > { %p3776_p8 = scmp.ne.s32.totalorder %s309_s23, %s3775_s27  ;;  %s3780_s1 = sshll.u32 %s3876_s21, 4  ;;  %s3781_s1 = int_to_ptr.vmem [resolvable:$false] %s3780_s1 }
  0x92   : > { %s3782_s4 = scalar_lea.vmem %s3781_s1, 512  ;;  %p3783_p6 = scmp.lt.s32.totalorder %s309_s23, %s3781_s1 }
  0x93   : > { %p3778_p12 = pnand %p3776_p8, %p4777_p9  ;;  %p3784_p7 = scmp.lt.s32.totalorder %s3782_s4, %s3775_s27 }
  0x95   : > { %p3779_p2 = pneg %p3778_p12  ;;  %p3785_p4 = por %p3784_p7, %p3783_p6 }
  0x97   : > { %p3786_p5 = pnand %p3785_p4, %p3779_p2 }
  0x99   : > { %3789 = shalt.err (!%p3786_p5)
}
  0x9a   : > { %p4780_p13 = scmp.ne.s32.totalorder %s4768_s18, 0  ;;  %p4781_p11 = scmp.ne.s32.totalorder %s4766_s12, 0 }
  0x9b   : > { %p4782_p10 = scmp.eq.s32.totalorder (!%p4781_p11), %s3939_s28, 0 }
  0x9c   : > { %3433 = dma.hbm_to_vmem [thread:$0]  (!%p4780_p13), %s4112_s15, 256, %s309_s23, %s297_s16  }
  0x9d   : > { %317 = sbr.rel (%p4781_p11) target bundleno = 864 (0x360), region = 48 }
  0xa4   : > { %3833 = dma.done.wait (%p4782_p10), [#allocation3], 64   ;;  %p4783_p9 = pmov %p4782_p10 }
  0xa5   : > { %s323_s13 = sand.u32 1, %s3939_s28   ;;  %s325_s30 = sand.u32 1, %s3858_s25  }
  0xa6   : > { %3835 = vsyncadd (%p4783_p9), [#allocation3], 4294967232  ;;  %s3038_s14 = sshll.u32 %s325_s30, 8  ;;  %s324_s22 = scalar_lea.sflag [#allocation6], %s323_s13 }
  0xa7   : > { %s4142_s8 = scalar_lea.vmem [#allocation5], %s3038_s14  ;;  %p4784_p4 = scmp.ne.s32.totalorder %s4765_s11, 0 }
  0xa9   : > { %3837 = dma.done.wait (%p4784_p4), %s324_s22, 4352  }
  0xaa   : > { %3839 = vsyncadd (%p4784_p4), %s324_s22, 4294962944  ;;  %s4148_s12 = sshll.u32 %s325_s30, 4  ;;  %s342_s15 = scalar_lea.sflag [#allocation9], %s323_s13 }
  0xab   : > { %s336_s18 = scalar_lea.vmem [#allocation7], %s4148_s12  ;;  %s345_s23 = scalar_lea.vmem [#allocation8], %s4148_s12 }
  0xac   : > { %3841 = dma.done.wait (%p4784_p4), %s342_s15, 256  }
  0xad   : > { %3843 = vsyncadd (%p4784_p4), %s342_s15, 4294967040  ;;  %p4785_p1 = pmov %p4783_p9 }
  0xaf   : > { %3845 = dma.done.wait (%p4785_p1), [#allocation9], 32768   ;;  %p4786_p3 = pmov %p4785_p1 }
  0xb0   : > { %p4787_p0 = scmp.ne.s32.totalorder %s3939_s28, 0 }
  0xb1   : > { %3847 = vsyncadd (%p4786_p3), [#allocation9], 4294934528  ;;  %v3877_v0 = vmov (!%p4787_p0), 0.0  }
  0xb2   : > { %392 = sbr.rel (%p4787_p0) target bundleno = 185 (0xb9), region = 72  ;;  %393 = vst [vmem:[#allocation11] sm:$0xff] (!%p4787_p0), %v3877_v0 }
  0xb9 PF: > { %v395_v1 = vld [vmem:[%s4142_s8] sm:$0xff]  ;;  %v396_v3 = vld [vmem:[%s4142_s8 + $0x8] sm:$0xff]  ;;  %v3878_v9 = vmov 0   ;;  %v397_v16 = vld [vmem:[%s4142_s8 + $0x10] sm:$0xff]  ;;  %vm587_vm0 = vcmask 261120   ;;  %s3083_s11 = sshll.u32 %s3939_s28, 11 }
  0xba   : > { %v403_v2 = vld [vmem:[%s4142_s8 + $0x40] sm:$0xff]  ;;  %v404_v5 = vld [vmem:[%s4142_s8 + $0x48] sm:$0xff]  ;;  %623 = vmatprep.mubr.bf16.mxu0 %v3878_v9  ;;  %664 = vmatprep.mubr.bf16.mxu1 %v3878_v9  ;;  %v405_v17 = vld [vmem:[%s4142_s8 + $0x50] sm:$0xff]  ;;  %s1488_s19 = sshra.s32 %s3083_s11, 3  ;;  %p3213_p8 = scmp.ne.s32.totalorder %s3939_s28, 1 }
  0xbb   : > { %v3044_v4 = vcombine.high %v395_v1, %v403_v2  ;;  %v3043_v6 = vcombine.low %v395_v1, %v403_v2  ;;  %v411_v7 = vld [vmem:[%s4142_s8 + $0x80] sm:$0xff]  ;;  %v3046_v10 = vcombine.high %v396_v3, %v404_v5  ;;  %v3045_v11 = vcombine.low %v396_v3, %v404_v5  ;;  %v412_v13 = vld [vmem:[%s4142_s8 + $0x88] sm:$0xff]  ;;  %v398_v18 = vld [vmem:[%s4142_s8 + $0x18] sm:$0xff]  ;;  %s3084_s16 = sshll.u32 %s1488_s19, 2 }
  0xbc   : > { %v419_v8 = vld [vmem:[%s4142_s8 + $0xc0] sm:$0xff]  ;;  %v420_v14 = vld [vmem:[%s4142_s8 + $0xc8] sm:$0xff]  ;;  %v406_v20 = vld [vmem:[%s4142_s8 + $0x58] sm:$0xff]  ;;  %v3048_v22 = vcombine.high %v397_v16, %v405_v17  ;;  %v3047_v29 = vcombine.low %v397_v16, %v405_v17  ;;  %s4221_s10 = scalar_lea.vmem [#allocation10], %s3084_s16 }
  0xbd   : > { %v3060_v12 = vcombine.high %v411_v7, %v419_v8  ;;  %591 = vmatprep.subr.bf16.mxu0 %v3044_v4  ;;  %v3062_v15 = vcombine.high %v412_v13, %v420_v14  ;;  %632 = vmatprep.subr.bf16.mxu1 %v3046_v10  ;;  %v3059_v19 = vcombine.low %v411_v7, %v419_v8  ;;  %v413_v24 = vld [vmem:[%s4142_s8 + $0x90] sm:$0xff]  ;;  %v414_v26 = vld [vmem:[%s4142_s8 + $0x98] sm:$0xff]  ;;  %v399_v33 = vld [vmem:[%s4142_s8 + $0x20] sm:$0xff] }
  0xbe   : > { %592 = vmatpush1.bf16.msra.mxu0 %v3043_v6  ;;  %633 = vmatpush1.bf16.msra.mxu1 %v3045_v11  ;;  %v3061_v21 = vcombine.low %v412_v13, %v420_v14  ;;  %v3050_v23 = vcombine.high %v398_v18, %v406_v20  ;;  %v421_v25 = vld [vmem:[%s4142_s8 + $0xd0] sm:$0xff]  ;;  %v422_v27 = vld [vmem:[%s4142_s8 + $0xd8] sm:$0xff]  ;;  %v3049_v30 = vcombine.low %v398_v18, %v406_v20  ;;  %v407_v34 = vld [vmem:[%s4142_s8 + $0x60] sm:$0xff] }
  0xbf   : > { %593 = vmatprep.subr.bf16.mxu0 %v3060_v12  ;;  %634 = vmatprep.subr.bf16.mxu1 %v3062_v15  ;;  %v4180_v28 = vld [vmem:[#allocation2] sm:$0xf]  ;;  %v3064_v31 = vcombine.high %v413_v24, %v421_v25  ;;  %v3066_v32 = vcombine.high %v414_v26, %v422_v27  ;;  %v400_v35 = vld [vmem:[%s4142_s8 + $0x28] sm:$0xff]  ;;  %v3063_v37 = vcombine.low %v413_v24, %v421_v25  ;;  %v415_v41 = vld [vmem:[%s4142_s8 + $0xa0] sm:$0xff] }
  0xc0   : > { %v408_v36 = vld [vmem:[%s4142_s8 + $0x68] sm:$0xff]  ;;  %v3065_v38 = vcombine.low %v414_v26, %v422_v27  ;;  %v3052_v39 = vcombine.high %v399_v33, %v407_v34  ;;  %v423_v42 = vld [vmem:[%s4142_s8 + $0xe0] sm:$0xff]  ;;  %v3051_v45 = vcombine.low %v399_v33, %v407_v34  ;;  %v401_v49 = vld [vmem:[%s4142_s8 + $0x30] sm:$0xff] }
  0xc1   : > { %v3054_v40 = vcombine.high %v400_v35, %v408_v36  ;;  %v416_v43 = vld [vmem:[%s4142_s8 + $0xa8] sm:$0xff]  ;;  %v3053_v46 = vcombine.low %v400_v35, %v408_v36  ;;  %v3068_v47 = vcombine.high %v415_v41, %v423_v42  ;;  %v409_v50 = vld [vmem:[%s4142_s8 + $0x70] sm:$0xff]  ;;  %v402_v51 = vld [vmem:[%s4142_s8 + $0x38] sm:$0xff]  ;;  %v3067_v53 = vcombine.low %v415_v41, %v423_v42 }
  0xc2   : > { %594 = vmatpush1.bf16.msra.mxu0 %v3059_v19  ;;  %635 = vmatpush1.bf16.msra.mxu1 %v3061_v21  ;;  %v424_v44 = vld [vmem:[%s4142_s8 + $0xe8] sm:$0xff]  ;;  %v410_v52 = vld [vmem:[%s4142_s8 + $0x78] sm:$0xff]  ;;  %v3056_v55 = vcombine.high %v401_v49, %v409_v50  ;;  %v417_v57 = vld [vmem:[%s4142_s8 + $0xb0] sm:$0xff]  ;;  %v3055_v61 = vcombine.low %v401_v49, %v409_v50 }
  0xc3   : > { %673 = vmatprep.subr.bf16.mxu0 %v3048_v22  ;;  %714 = vmatprep.subr.bf16.mxu1 %v3050_v23  ;;  %v3070_v48 = vcombine.high %v416_v43, %v424_v44  ;;  %v3069_v54 = vcombine.low %v416_v43, %v424_v44  ;;  %v3058_v56 = vcombine.high %v402_v51, %v410_v52  ;;  %v425_v58 = vld [vmem:[%s4142_s8 + $0xf0] sm:$0xff]  ;;  %v418_v59 = vld [vmem:[%s4142_s8 + $0xb8] sm:$0xff]  ;;  %v3486_v7 = vld [vmem:[%s4221_s10 + $0x48] sm:$0xff]  }
  0xc4   : > { %v426_v60 = vld [vmem:[%s4142_s8 + $0xf8] sm:$0xff]  ;;  %v3057_v62 = vcombine.low %v402_v51, %v410_v52  ;;  %v3072_v63 = vcombine.high %v417_v57, %v425_v58  ;;  %v3071_v1 = vcombine.low %v417_v57, %v425_v58  ;;  %v3487_v8 = vld [vmem:[%s4221_s10 + $0xc8] sm:$0xff]   ;;  %v3490_v11 = vld [vmem:[%s4221_s10 + $0x50] sm:$0xff]  }
  0xc5   : > { %3075 = vmatmul.mubr.msk.bf16.vlgmr.msra.gmra.mrb[0].mxu0 %vm587_vm0, %v4180_v28  ;;  %3076 = vmatmul.mubr.msk.bf16.vlgmr.msra.gmra.mrb[0].mxu1 %vm587_vm0, %v4180_v28  ;;  %v3074_v0 = vcombine.high %v418_v59, %v426_v60  ;;  %v3073_v2 = vcombine.low %v418_v59, %v426_v60  ;;  %v3482_v3 = vld [vmem:[%s4221_s10 + $0x40] sm:$0xff]   ;;  %v3489_v10 = vld [vmem:[%s4221_s10 + $0x88] sm:$0xff]   ;;  %v3491_v12 = vld [vmem:[%s4221_s10 + $0xd0] sm:$0xff]  }
  0xc6   : > { %674 = vmatpush1.bf16.msra.mxu0 %v3047_v29  ;;  %715 = vmatpush1.bf16.msra.mxu1 %v3049_v30  ;;  %v3483_v4 = vld [vmem:[%s4221_s10 + $0xc0] sm:$0xff]   ;;  %v3492_v13 = vld [vmem:[%s4221_s10 + $0x10] sm:$0xff]   ;;  %v3494_v15 = vld [vmem:[%s4221_s10 + $0x58] sm:$0xff]  }
  0xc7   : > { %675 = vmatprep.subr.bf16.mxu0 %v3064_v31  ;;  %716 = vmatprep.subr.bf16.mxu1 %v3066_v32  ;;  %v3484_v5 = vld [vmem:[%s4221_s10] sm:$0xff]   ;;  %v3493_v14 = vld [vmem:[%s4221_s10 + $0x90] sm:$0xff]   ;;  %v3495_v16 = vld [vmem:[%s4221_s10 + $0xd8] sm:$0xff]  }
  0xc8   : > { %705 = vmatprep.mubr.bf16.mxu0 %v3878_v9  ;;  %746 = vmatprep.mubr.bf16.mxu1 %v3878_v9  ;;  %v3485_v6 = vld [vmem:[%s4221_s10 + $0x80] sm:$0xff]   ;;  %v3496_v17 = vld [vmem:[%s4221_s10 + $0x18] sm:$0xff]   ;;  %v3502_v23 = vld [vmem:[%s4221_s10 + $0x68] sm:$0xff]  }
  0xc9   : > { %v3497_v18 = vld [vmem:[%s4221_s10 + $0x98] sm:$0xff]   ;;  %v3498_v19 = vld [vmem:[%s4221_s10 + $0x60] sm:$0xff]   ;;  %v3503_v24 = vld [vmem:[%s4221_s10 + $0xe8] sm:$0xff]  }
  0xca   : > { %676 = vmatpush1.bf16.msra.mxu0 %v3063_v37  ;;  %717 = vmatpush1.bf16.msra.mxu1 %v3065_v38  ;;  %v3499_v20 = vld [vmem:[%s4221_s10 + $0xe0] sm:$0xff]   ;;  %v3504_v25 = vld [vmem:[%s4221_s10 + $0x28] sm:$0xff]   ;;  %v3506_v27 = vld [vmem:[%s4221_s10 + $0x70] sm:$0xff]  }
  0xcb   : > { %755 = vmatprep.subr.bf16.mxu0 %v3052_v39  ;;  %796 = vmatprep.subr.bf16.mxu1 %v3054_v40  ;;  %v3500_v21 = vld [vmem:[%s4221_s10 + $0x20] sm:$0xff]   ;;  %v3505_v26 = vld [vmem:[%s4221_s10 + $0xa8] sm:$0xff]   ;;  %v3508_v29 = vld [vmem:[%s4221_s10 + $0x30] sm:$0xff]  }
  0xcc   : > { %v3501_v22 = vld [vmem:[%s4221_s10 + $0xa0] sm:$0xff]   ;;  %v3509_v30 = vld [vmem:[%s4221_s10 + $0xb0] sm:$0xff]   ;;  %v3510_v31 = vld [vmem:[%s4221_s10 + $0x78] sm:$0xff]  }
  0xcd   : > { %3077 = vmatmul.mubr.msk.bf16.vlgmr.msra.gmra.mrb[4].mxu0 %vm587_vm0, %v4180_v28  ;;  %3078 = vmatmul.mubr.msk.bf16.vlgmr.msra.gmra.mrb[4].mxu1 %vm587_vm0, %v4180_v28  ;;  %v3511_v32 = vld [vmem:[%s4221_s10 + $0xf8] sm:$0xff]   ;;  %v3514_v35 = vld [vmem:[%s4221_s10 + $0x140] sm:$0xff]  }
  0xce   : > { %756 = vmatpush1.bf16.msra.mxu0 %v3051_v45  ;;  %797 = vmatpush1.bf16.msra.mxu1 %v3053_v46  ;;  %v3512_v33 = vld [vmem:[%s4221_s10 + $0x38] sm:$0xff]   ;;  %v3515_v36 = vld [vmem:[%s4221_s10 + $0x1c0] sm:$0xff]  }
  0xcf   : > { %757 = vmatprep.subr.bf16.mxu0 %v3068_v47  ;;  %798 = vmatprep.subr.bf16.mxu1 %v3070_v48  ;;  %v3513_v34 = vld [vmem:[%s4221_s10 + $0xb8] sm:$0xff]  }
  0xd0   : > { %787 = vmatprep.mubr.bf16.mxu0 %v3878_v9  ;;  %828 = vmatprep.mubr.bf16.mxu1 %v3878_v9 }
  0xd2   : > { %758 = vmatpush1.bf16.msra.mxu0 %v3067_v53  ;;  %799 = vmatpush1.bf16.msra.mxu1 %v3069_v54 }
  0xd3   : > { %837 = vmatprep.subr.bf16.mxu0 %v3056_v55  ;;  %878 = vmatprep.subr.bf16.mxu1 %v3058_v56 }
  0xd5   : > { %3079 = vmatmul.mubr.msk.bf16.vlgmr.msra.gmra.mrb[8].mxu0 %vm587_vm0, %v4180_v28  ;;  %3080 = vmatmul.mubr.msk.bf16.vlgmr.msra.gmra.mrb[8].mxu1 %vm587_vm0, %v4180_v28 }
  0xd6   : > { %838 = vmatpush1.bf16.msra.mxu0 %v3055_v61  ;;  %879 = vmatpush1.bf16.msra.mxu1 %v3057_v62 }
  0xd7   : > { %839 = vmatprep.subr.bf16.mxu0 %v3072_v63  ;;  %880 = vmatprep.subr.bf16.mxu1 %v3074_v0 }
  0xd8   : > { %869 = vmatprep.mubr.bf16.mxu0 %v3878_v9  ;;  %910 = vmatprep.mubr.bf16.mxu1 %v3878_v9  ;;  %v3488_v9 = vld [vmem:[%s4221_s10 + $0x8] sm:$0xff]  }
  0xda   : > { %840 = vmatpush1.bf16.msra.mxu0 %v3071_v1  ;;  %881 = vmatpush1.bf16.msra.mxu1 %v3073_v2 }
  0xdb   : > { %3223 = vmatprep.subr.bf16.mxu0 %v3482_v3  ;;  %3245 = vmatprep.subr.bf16.mxu1 %v3483_v4 }
  0xdd   : > { %3081 = vmatmul.mubr.msk.bf16.vlgmr.msra.gmra.mrb[12].mxu0 %vm587_vm0, %v4180_v28  ;;  %3082 = vmatmul.mubr.msk.bf16.vlgmr.msra.gmra.mrb[12].mxu1 %vm587_vm0, %v4180_v28  ;;  %v3507_v28 = vld [vmem:[%s4221_s10 + $0xf0] sm:$0xff]  }
  0xde   : > { %3224 = vmatpush3.bf16.msra.mxu0 %v3484_v5  ;;  %3246 = vmatpush3.bf16.msra.mxu1 %v3485_v6 }
  0xdf   : > { %3225 = vmatprep.subr.bf16.mxu0 %v3486_v7  ;;  %3247 = vmatprep.subr.bf16.mxu1 %v3487_v8 }
  0xe2   : > { %3226 = vmatpush3.bf16.msra.mxu0 %v3488_v9  ;;  %3248 = vmatpush3.bf16.msra.mxu1 %v3489_v10 }
  0xe3   : > { %3227 = vmatprep.subr.bf16.mxu0 %v3490_v11  ;;  %3249 = vmatprep.subr.bf16.mxu1 %v3491_v12 }
  0xe6   : > { %3228 = vmatpush3.bf16.msra.mxu0 %v3492_v13  ;;  %3250 = vmatpush3.bf16.msra.mxu1 %v3493_v14 }
  0xe7   : > { %3229 = vmatprep.subr.bf16.mxu0 %v3494_v15  ;;  %3251 = vmatprep.subr.bf16.mxu1 %v3495_v16 }
  0xea   : > { %3230 = vmatpush3.bf16.msra.mxu0 %v3496_v17  ;;  %3252 = vmatpush3.bf16.msra.mxu1 %v3497_v18 }
  0xeb   : > { %3231 = vmatprep.subr.bf16.mxu0 %v3498_v19  ;;  %3253 = vmatprep.subr.bf16.mxu1 %v3499_v20 }
  0xee   : > { %3232 = vmatpush3.bf16.msra.mxu0 %v3500_v21  ;;  %3254 = vmatpush3.bf16.msra.mxu1 %v3501_v22 }
  0xef   : > { %3233 = vmatprep.subr.bf16.mxu0 %v3502_v23  ;;  %3255 = vmatprep.subr.bf16.mxu1 %v3503_v24 }
  0xf2   : > { %3234 = vmatpush3.bf16.msra.mxu0 %v3504_v25  ;;  %3256 = vmatpush3.bf16.msra.mxu1 %v3505_v26 }
  0xf3   : > { %3235 = vmatprep.subr.bf16.mxu0 %v3506_v27  ;;  %3257 = vmatprep.subr.bf16.mxu1 %v3507_v28 }
  0xf6   : > { %3236 = vmatpush3.bf16.msra.mxu0 %v3508_v29  ;;  %3258 = vmatpush3.bf16.msra.mxu1 %v3509_v30 }
  0xf7   : > { %3237 = vmatprep.subr.bf16.mxu0 %v3510_v31  ;;  %3259 = vmatprep.subr.bf16.mxu1 %v3511_v32 }
  0xfa   : > { %3238 = vmatpush3.bf16.msra.mxu0 %v3512_v33  ;;  %3260 = vmatpush3.bf16.msra.mxu1 %v3513_v34 }
  0xfb   : > { %3267 = vmatprep.subr.bf16.mxu0 %v3514_v35  ;;  %3289 = vmatprep.subr.bf16.mxu1 %v3515_v36 }
 0x198   : > { %v4257_v37 = vpop.f32.mrb[0].mxu0  ;;  %v4262_v40 = vpop.f32.mrb[0].mxu1 }
 0x199   : > { %v919_v38 = vrot.slane %v4257_v37, 4  ;;  %v1015_v39 = vmul.f32 %v4257_v37, %v4257_v37  ;;  %v4264_v41 = vpop.f32.mrb[1].mxu0  ;;  %v931_v42 = vrot.slane %v4262_v40, 4  ;;  %v1017_v43 = vmul.f32 %v4262_v40, %v4262_v40  ;;  %v4272_v46 = vpop.f32.mrb[1].mxu1 }
 0x19a   : > { %v925_v44 = vrot.slane %v4264_v41, 4  ;;  %v1016_v45 = vmul.f32 %v4264_v41, %v4264_v41  ;;  %v629_v47 = vpop.f32.mrb[2].mxu0  ;;  %v937_v50 = vrot.slane %v4272_v46, 4  ;;  %v1018_v51 = vmul.f32 %v4272_v46, %v4272_v46  ;;  %v670_v52 = vpop.f32.mrb[2].mxu1 }
 0x19b   : > { %v920_v48 = vadd.f32 %v919_v38, %v4257_v37  ;;  %v1031_v49 = vrot.slane %v1015_v39, 4  ;;  %v630_v53 = vpop.f32.mrb[3].mxu0  ;;  %v932_v54 = vadd.f32 %v931_v42, %v4262_v40  ;;  %v1043_v55 = vrot.slane %v1017_v43, 4  ;;  %v671_v58 = vpop.f32.mrb[3].mxu1 }
 0x19c   : > { %v926_v56 = vadd.f32 %v925_v44, %v4264_v41  ;;  %v1037_v57 = vrot.slane %v1016_v45, 4  ;;  %v938_v61 = vadd.f32 %v937_v50, %v4272_v46  ;;  %v1049_v62 = vrot.slane %v1018_v51, 4 }
 0x19d   : > { %v921_v59 = vrot.slane %v920_v48, 2  ;;  %v1032_v60 = vadd.f32 %v1031_v49, %v1015_v39  ;;  %v933_v63 = vrot.slane %v932_v54, 2  ;;  %v1044_v0 = vadd.f32 %v1043_v55, %v1017_v43 }
 0x19e   : > { %v927_v1 = vrot.slane %v926_v56, 2  ;;  %v1038_v2 = vadd.f32 %v1037_v57, %v1016_v45  ;;  %v939_v5 = vrot.slane %v938_v61, 2  ;;  %v1050_v6 = vadd.f32 %v1049_v62, %v1018_v51 }
 0x19f   : > { %v922_v3 = vadd.f32 %v921_v59, %v920_v48  ;;  %v1033_v4 = vrot.slane %v1032_v60, 2  ;;  %v934_v7 = vadd.f32 %v933_v63, %v932_v54  ;;  %v1045_v8 = vrot.slane %v1044_v0, 2 }
 0x1a0   : > { %v928_v9 = vadd.f32 %v927_v1, %v926_v56  ;;  %v1039_v10 = vrot.slane %v1038_v2, 2  ;;  %v4281_v11 = vpop.f32.mrb[4].mxu0  ;;  %v940_v14 = vadd.f32 %v939_v5, %v938_v61  ;;  %v1051_v15 = vrot.slane %v1050_v6, 2  ;;  %v4283_v16 = vpop.f32.mrb[4].mxu1 }
 0x1a1   : > { %v923_v12 = vrot.slane %v922_v3, 1  ;;  %v1034_v13 = vadd.f32 %v1033_v4, %v1032_v60  ;;  %v4285_v17 = vpop.f32.mrb[5].mxu0  ;;  %v935_v18 = vrot.slane %v934_v7, 1  ;;  %v1046_v19 = vadd.f32 %v1045_v8, %v1044_v0  ;;  %v4287_v22 = vpop.f32.mrb[5].mxu1 }
 0x1a2   : > { %v929_v20 = vrot.slane %v928_v9, 1  ;;  %v1040_v21 = vadd.f32 %v1039_v10, %v1038_v2  ;;  %v711_v23 = vpop.f32.mrb[6].mxu0  ;;  %v941_v26 = vrot.slane %v940_v14, 1  ;;  %v1052_v27 = vadd.f32 %v1051_v15, %v1050_v6  ;;  %v752_v29 = vpop.f32.mrb[6].mxu1 }
 0x1a3   : > { %v924_v24 = vadd.f32 %v923_v12, %v922_v3  ;;  %v1035_v25 = vrot.slane %v1034_v13, 1  ;;  %v712_v28 = vpop.f32.mrb[7].mxu0  ;;  %v936_v30 = vadd.f32 %v935_v18, %v934_v7  ;;  %v1047_v31 = vrot.slane %v1046_v19, 1  ;;  %v753_v34 = vpop.f32.mrb[7].mxu1 }
 0x1a4   : > { %v930_v32 = vadd.f32 %v929_v20, %v928_v9  ;;  %v1041_v33 = vrot.slane %v1040_v21, 1  ;;  %v942_v38 = vadd.f32 %v941_v26, %v940_v14  ;;  %v1053_v39 = vrot.slane %v1052_v27, 1 }
 0x1a5   : > { %v1036_v35 = vadd.f32 %v1035_v25, %v1034_v13  ;;  %v4289_v36 = vmul.f32 0.125, %v924_v24  ;;  %v1048_v42 = vadd.f32 %v1047_v31, %v1046_v19  ;;  %v4291_v43 = vmul.f32 0.125, %v936_v30 }
 0x1a6   : > { %v1042_v44 = vadd.f32 %v1041_v33, %v1040_v21  ;;  %v4293_v45 = vmul.f32 0.125, %v930_v32  ;;  %v1275_v49 = vlaneseq  ;;  %v1054_v56 = vadd.f32 %v1053_v39, %v1052_v27 }
 0x1a7   : > { %v1143_v47 = vmul.f32 0.125, %v1036_v35  ;;  %v1159_v48 = vmul.f32 %v4289_v36, %v4289_v36  ;;  %v1145_v50 = vmul.f32 0.125, %v1048_v42  ;;  %v1161_v51 = vmul.f32 %v4291_v43, %v4291_v43 }
 0x1a8   : > { %v1144_v52 = vmul.f32 0.125, %v1042_v44  ;;  %v4299_v53 = vpop.f32.mrb[8].mxu0  ;;  %v1160_v55 = vmul.f32 %v4293_v45, %v4293_v45  ;;  %v4305_v58 = vpop.f32.mrb[8].mxu1  ;;  %v4307_v60 = vmul.f32 0.125, %v942_v38  ;;  %v943_v61 = vrot.slane %v4281_v11, 4 }
 0x1a9   : > { %v1175_v54 = vsub.f32 %v1143_v47, %v1159_v48  ;;  %v4303_v57 = vpop.f32.mrb[9].mxu0  ;;  %v1177_v59 = vsub.f32 %v1145_v50, %v1161_v51  ;;  %v1019_v62 = vmul.f32 %v4281_v11, %v4281_v11  ;;  %v4312_v63 = vpop.f32.mrb[9].mxu1  ;;  %v4314_v1 = vshrl.u32 %v1275_v49, 7 }
 0x1aa   : > { %v793_v0 = vpop.f32.mrb[10].mxu0  ;;  %v1176_v2 = vsub.f32 %v1144_v52, %v1160_v55  ;;  %v834_v4 = vpop.f32.mrb[10].mxu1  ;;  %v944_v6 = vadd.f32 %v943_v61, %v4281_v11  ;;  %v955_v8 = vrot.slane %v4283_v16, 4  ;;  %v1021_v12 = vmul.f32 %v4283_v16, %v4283_v16 }
 0x1ab   : > { %v794_v3 = vpop.f32.mrb[11].mxu0  ;;  %v1191_v5 = vmax.f32 %v1175_v54, 0.0  ;;  %v1055_v7 = vrot.slane %v1019_v62, 4  ;;  %v835_v9 = vpop.f32.mrb[11].mxu1  ;;  %v1193_v10 = vmax.f32 %v1177_v59, 0.0  ;;  %v1146_v14 = vmul.f32 0.125, %v1054_v56 }
 0x1ac   : > { %v1192_v13 = vmax.f32 %v1176_v2, 0.0  ;;  %v1162_v15 = vmul.f32 %v4307_v60, %v4307_v60  ;;  %v4323_v18 = vsub.s32 0, %v4314_v1  ;;  %v945_v19 = vrot.slane %v944_v6, 2  ;;  %v4356_v3 = vld [vmem:[%s336_s18] sm:$0xff] }
 0x1ad   : > { %v1056_v20 = vadd.f32 %v1055_v7, %v1019_v62  ;;  %v1223_v21 = vadd.f32 1e-05, %v1191_v5  ;;  %v956_v23 = vadd.f32 %v955_v8, %v4283_v16  ;;  %v1067_v24 = vrot.slane %v1021_v12, 4 }
 0x1ae   : > { %v1225_v26 = vadd.f32 1e-05, %v1193_v10  ;;  %v4329_v27 = vsub.s32 2, %v4314_v1  ;;  %v949_v28 = vrot.slane %v4285_v17, 4  ;;  %v1224_v31 = vadd.f32 1e-05, %v1192_v13 }
 0x1af   : > { %v1178_v32 = vsub.f32 %v1146_v14, %v1162_v15  ;;  %v1020_v33 = vmul.f32 %v4285_v17, %v4285_v17  ;;  %v946_v38 = vadd.f32 %v945_v19, %v944_v6  ;;  %v1057_v39 = vrot.slane %v1056_v20, 2 }
 0x1b0   : > { %v4326_v25 = vpop.f32.mrb[12].mxu0  ;;  %v4334_v30 = vpop.f32.mrb[12].mxu1  ;;  %v950_v42 = vadd.f32 %v949_v28, %v4285_v17  ;;  %v961_v44 = vrot.slane %v4287_v22, 4  ;;  %v4343_v49 = vsub.s32 4, %v4314_v1  ;;  %v957_v50 = vrot.slane %v956_v23, 2 }
 0x1b1   : > { %v4332_v29 = vpop.f32.mrb[13].mxu0  ;;  %v4338_v34 = vpop.f32.mrb[13].mxu1  ;;  %v1068_v51 = vadd.f32 %v1067_v24, %v1021_v12  ;;  %v1061_v52 = vrot.slane %v1020_v33, 4  ;;  %v1022_v59 = vmul.f32 %v4287_v22, %v4287_v22  ;;  %v4349_v61 = vsub.s32 1, %v4314_v1 }
 0x1b2   : > { %v875_v35 = vpop.f32.mrb[14].mxu0  ;;  %v916_v48 = vpop.f32.mrb[14].mxu1  ;;  %v951_v55 = vrot.slane %v950_v42, 2  ;;  %v962_v56 = vadd.f32 %v961_v44, %v4287_v22  ;;  %v1194_v62 = vmax.f32 %v1178_v32, 0.0  ;;  %v4352_v2 = vsub.s32 3, %v4314_v1 }
 0x1b3   : > { %v876_v47 = vpop.f32.mrb[15].mxu0  ;;  %v917_v54 = vpop.f32.mrb[15].mxu1  ;;  %v1062_v0 = vadd.f32 %v1061_v52, %v1020_v33  ;;  %v947_v4 = vrot.slane %v946_v38, 1  ;;  %v1058_v5 = vadd.f32 %v1057_v39, %v1056_v20  ;;  %v958_v8 = vadd.f32 %v957_v50, %v956_v23  ;;  %v4368_v52 = vld [vmem:[%s345_s23] sm:$0xff] }
 0x1b4   : > { %v952_v6 = vadd.f32 %v951_v55, %v950_v42  ;;  %v963_v7 = vrot.slane %v962_v56, 2  ;;  %v1069_v9 = vrot.slane %v1068_v51, 2  ;;  %v1073_v10 = vrot.slane %v1022_v59, 4 }
 0x1b5   : > { %v1063_v13 = vrot.slane %v1062_v0, 2  ;;  %v1278_v15 = vrot.slane %v4356_v3, %v4323_v18  ;;  %v1286_v19 = vrot.slane %v4356_v3, %v4329_v27  ;;  %v948_v24 = vadd.f32 %v947_v4, %v946_v38 }
 0x1b6   : > { %v953_v12 = vrot.slane %v952_v6, 1  ;;  %v964_v14 = vadd.f32 %v963_v7, %v962_v56  ;;  %v1059_v28 = vrot.slane %v1058_v5, 1  ;;  %v959_v20 = vrot.slane %v958_v8, 1 }
 0x1b7   : > { %v1064_v33 = vadd.f32 %v1063_v13, %v1062_v0  ;;  %v1070_v35 = vadd.f32 %v1069_v9, %v1068_v51  ;;  %v1282_v23 = vrot.slane %v4356_v3, %v4349_v61  ;;  %3610 = vrsqrt.f32 %v1223_v21 }
 0x1b8   : > { %v954_v32 = vadd.f32 %v953_v12, %v952_v6  ;;  %v965_v39 = vrot.slane %v964_v14, 1  ;;  %v1226_v42 = vadd.f32 1e-05, %v1194_v62  ;;  %3612 = vrsqrt.f32 %v1225_v26 }
 0x1b9   : > { %v1065_v44 = vrot.slane %v1064_v33, 1  ;;  %v1074_v50 = vadd.f32 %v1073_v10, %v1022_v59  ;;  %v1290_v38 = vrot.slane %v4356_v3, %v4352_v2  ;;  %v1060_v54 = vadd.f32 %v1059_v28, %v1058_v5 }
 0x1ba   : > { %v4364_v47 = vmul.f32 0.125, %v954_v32  ;;  %v966_v48 = vadd.f32 %v965_v39, %v964_v14  ;;  %v4372_v51 = vmul.f32 0.125, %v948_v24  ;;  %3614 = vrsqrt.f32 %v1224_v31 }
 0x1bb   : > { %v1066_v55 = vadd.f32 %v1065_v44, %v1064_v33  ;;  %v960_v56 = vadd.f32 %v959_v20, %v958_v8  ;;  %v1071_v62 = vrot.slane %v1070_v35, 1  ;;  %v1075_v0 = vrot.slane %v1074_v50, 2 }
 0x1bc   : > { %v1164_v21 = vmul.f32 %v4364_v47, %v4364_v47  ;;  %3616 = vrsqrt.f32 %v1226_v42  ;;  %v973_v59 = vrot.slane %v4303_v57, 4  ;;  %v1382_v4 = vrot.slane %v4368_v52, %v4349_v61 }
 0x1bd   : > { %v1148_v26 = vmul.f32 0.125, %v1066_v55  ;;  %v1076_v6 = vadd.f32 %v1075_v0, %v1074_v50  ;;  %v4379_v7 = vmul.f32 0.125, %v966_v48  ;;  %v1390_v5 = vrot.slane %v4368_v52, %v4352_v2 }
 0x1be   : > { %v4384_v9 = vsub.s32 5, %v4314_v1  ;;  %v1147_v31 = vmul.f32 0.125, %v1060_v54  ;;  %v1163_v8 = vmul.f32 %v4372_v51, %v4372_v51  ;;  %v974_v12 = vadd.f32 %v973_v59, %v4303_v57 }
 0x1bf   : > { %v1180_v10 = vsub.f32 %v1148_v26, %v1164_v21  ;;  %v1072_v13 = vadd.f32 %v1071_v62, %v1070_v35  ;;  %v4389_v14 = vmul.f32 0.125, %v960_v56  ;;  %v1077_v24 = vrot.slane %v1076_v6, 1 }
 0x1c0   : > { %v1024_v28 = vmul.f32 %v4303_v57, %v4303_v57  ;;  %v975_v33 = vrot.slane %v974_v12, 2  ;;  %v1378_v20 = vrot.slane %v4368_v52, %v4323_v18  ;;  %v1166_v44 = vmul.f32 %v4379_v7, %v4379_v7 }
 0x1c1   : > { %v1196_v32 = vmax.f32 %v1180_v10, 0.0  ;;  %v1078_v42 = vadd.f32 %v1077_v24, %v1076_v6  ;;  %v4400_v35 = vsub.s32 7, %v4314_v1  ;;  %v3611_v50 = vpop.eup %3610  ;;  %v1207_v54 = vsub.f32 %v4257_v37, %v4289_v36 }
 0x1c2   : > { %v1085_v48 = vrot.slane %v1024_v28, 4  ;;  %v1179_v55 = vsub.f32 %v1147_v31, %v1163_v8  ;;  %v976_v56 = vadd.f32 %v975_v33, %v974_v12  ;;  %v3613_v62 = vpop.eup %3612  ;;  %v1149_v0 = vmul.f32 0.125, %v1072_v13 }
 0x1c3   : > { %v1228_v21 = vadd.f32 1e-05, %v1196_v32  ;;  %v1165_v26 = vmul.f32 %v4389_v14, %v4389_v14  ;;  %v1150_v59 = vmul.f32 0.125, %v1078_v42  ;;  %v1209_v10 = vsub.f32 %v4262_v40, %v4291_v43 }
 0x1c4   : > { %v1086_v6 = vadd.f32 %v1085_v48, %v1024_v28  ;;  %v1208_v24 = vsub.f32 %v4264_v41, %v4293_v45  ;;  %v1210_v39 = vsub.f32 %v4272_v46, %v4307_v60  ;;  %v977_v37 = vrot.slane %v976_v56, 1  ;;  %v3615_v36 = vpop.eup %3614 }
 0x1c5   : > { %v1255_v31 = vmul.f32 %v3611_v50, %v1207_v54  ;;  %v1182_v8 = vsub.f32 %v1150_v59, %v1166_v44  ;;  %v967_v12 = vrot.slane %v4299_v53, 4  ;;  %v1257_v33 = vmul.f32 %v3613_v62, %v1209_v10 }
 0x1c6   : > { %v1087_v13 = vrot.slane %v1086_v6, 2  ;;  %v3617_v32 = vpop.eup %3616  ;;  %v1195_v42 = vmax.f32 %v1179_v55, 0.0  ;;  %3618 = vrsqrt.f32 %v1228_v21  ;;  %v978_v28 = vadd.f32 %v977_v37, %v976_v56 }
 0x1c7   : > { %v1181_v48 = vsub.f32 %v1149_v0, %v1165_v26  ;;  %v1198_v40 = vmax.f32 %v1182_v8, 0.0  ;;  %v1023_v41 = vmul.f32 %v4299_v53, %v4299_v53  ;;  %v1256_v45 = vmul.f32 %v3615_v36, %v1208_v24 }
 0x1c8   : > { %v1088_v43 = vadd.f32 %v1087_v13, %v1086_v6  ;;  %v1298_v46 = vrot.slane %v4356_v3, %v4384_v9  ;;  %v1398_v60 = vrot.slane %v4368_v52, %v4384_v9  ;;  %v1306_v44 = vrot.slane %v4356_v3, %v4400_v35 }
 0x1c9   : > { %v1258_v50 = vmul.f32 %v3617_v32, %v1210_v39  ;;  %v1230_v54 = vadd.f32 1e-05, %v1198_v40  ;;  %v968_v55 = vadd.f32 %v967_v12, %v4299_v53  ;;  %v4422_v21 = vmul.f32 0.125, %v978_v28 }
 0x1ca   : > { %v1355_v56 = vmul.f32 %v1278_v15, %v1255_v31  ;;  %v1357_v62 = vmul.f32 %v1286_v19, %v1257_v33  ;;  %v1089_v0 = vrot.slane %v1088_v43, 1  ;;  %v1406_v26 = vrot.slane %v4368_v52, %v4400_v35 }
 0x1cb   : > { %v1227_v59 = vadd.f32 1e-05, %v1195_v42  ;;  %v1197_v6 = vmax.f32 %v1181_v48, 0.0  ;;  %3620 = vrsqrt.f32 %v1230_v54  ;;  %v1079_v39 = vrot.slane %v1023_v41, 4 }
 0x1cc   : > { %v1090_v10 = vadd.f32 %v1089_v0, %v1088_v43  ;;  %v1025_v24 = vmul.f32 %v4305_v58, %v4305_v58  ;;  %v985_v37 = vrot.slane %v4312_v63, 4  ;;  %v1026_v15 = vmul.f32 %v4312_v63, %v4312_v63 }
 0x1cd   : > { %v969_v36 = vrot.slane %v968_v55, 2  ;;  %v1168_v19 = vmul.f32 %v4422_v21, %v4422_v21  ;;  %v1356_v31 = vmul.f32 %v1282_v23, %v1256_v45  ;;  %v1358_v8 = vmul.f32 %v1290_v38, %v1258_v50 }
 0x1ce   : > { %v1152_v12 = vmul.f32 0.125, %v1090_v10  ;;  %v979_v13 = vrot.slane %v4305_v58, 4  ;;  %v986_v32 = vadd.f32 %v985_v37, %v4312_v63  ;;  %v1097_v33 = vrot.slane %v1026_v15, 4 }
 0x1cf   : > { %3622 = vrsqrt.f32 %v1227_v59  ;;  %v1229_v42 = vadd.f32 1e-05, %v1197_v6  ;;  %v1212_v28 = vsub.f32 %v4285_v17, %v4364_v47  ;;  %v1214_v48 = vsub.f32 %v4287_v22, %v4379_v7 }
 0x1d0   : > { %v3619_v40 = vpop.eup %3618  ;;  %v1080_v23 = vadd.f32 %v1079_v39, %v1023_v41  ;;  %v1091_v43 = vrot.slane %v1025_v24, 4  ;;  %v987_v45 = vrot.slane %v986_v32, 2  ;;  %v1098_v54 = vadd.f32 %v1097_v33, %v1026_v15 }
 0x1d1   : > { %v1184_v38 = vsub.f32 %v1152_v12, %v1168_v19  ;;  %v1456_v50 = vadd.f32 %v1382_v4, %v1356_v31  ;;  %v1458_v0 = vadd.f32 %v1390_v5, %v1358_v8  ;;  %v1455_v17 = vadd.f32 %v1378_v20, %v1355_v56  ;;  %v3516_v8 = vld [vmem:[%s4221_s10 + $0x100] sm:$0xff]  }
 0x1d2   : > { %v970_v47 = vadd.f32 %v969_v36, %v968_v55  ;;  %v980_v22 = vadd.f32 %v979_v13, %v4305_v58  ;;  %v988_v7 = vadd.f32 %v987_v45, %v986_v32  ;;  %v1099_v41 = vrot.slane %v1098_v54, 2 }
 0x1d3   : > { %v1260_v59 = vmul.f32 %v3619_v40, %v1212_v28  ;;  %v1472_v6 = vmax.f32 %v1456_v50, 0.0  ;;  %v1474_v39 = vmax.f32 %v1458_v0, 0.0  ;;  %v1471_v10 = vmax.f32 %v1455_v17, 0.0  ;;  %v3518_v28 = vld [vmem:[%s4221_s10 + $0x148] sm:$0xff]  }
 0x1d4   : > { %v1081_v4 = vrot.slane %v1080_v23, 2  ;;  %v989_v37 = vrot.slane %v988_v7, 1  ;;  %v1100_v15 = vadd.f32 %v1099_v41, %v1098_v54  ;;  %v4788_v5 = vrot.slane %v4368_v52, %v4329_v27  ;;  %v3519_v41 = vld [vmem:[%s4221_s10 + $0x1c8] sm:$0xff]  }
 0x1d5   : > { %v3621_v31 = vpop.eup %3620  ;;  %v1200_v20 = vmax.f32 %v1184_v38, 0.0  ;;  %v1092_v55 = vadd.f32 %v1091_v43, %v1025_v24  ;;  %v1750_v56 = vpack.c.bf16 %v1472_v6, %v1472_v6  ;;  %v1752_v36 = vpack.c.bf16 %v1474_v39, %v1474_v39  ;;  %v3520_v6 = vld [vmem:[%s4221_s10 + $0x108] sm:$0xff]  }
 0x1d6   : > { %v1457_v19 = vadd.f32 %v4788_v5, %v1357_v62  ;;  %v1262_v12 = vmul.f32 %v3621_v31, %v1214_v48  ;;  %v990_v13 = vadd.f32 %v989_v37, %v988_v7  ;;  %v1101_v32 = vrot.slane %v1100_v15, 1  ;;  %v3517_v48 = vld [vmem:[%s4221_s10 + $0x180] sm:$0xff]   ;;  %v3521_v31 = vld [vmem:[%s4221_s10 + $0x188] sm:$0xff]  }
 0x1d7   : > { %v1749_v33 = vpack.c.bf16 %v1471_v10, %v1471_v10  ;;  %v971_v40 = vrot.slane %v970_v47, 1  ;;  %v981_v45 = vrot.slane %v980_v22, 2  ;;  %2565 = vmatprep.mubr.bf16.mxu0 %v1750_v56  ;;  %2605 = vmatprep.mubr.bf16.mxu1 %v1752_v36  ;;  %v1360_v62 = vmul.f32 %v1298_v46, %v1260_v59 }
 0x1d8   : > { %v1473_v54 = vmax.f32 %v1457_v19, 0.0  ;;  %v1082_v24 = vadd.f32 %v1081_v4, %v1080_v23  ;;  %v1102_v43 = vadd.f32 %v1101_v32, %v1100_v15  ;;  %v4469_v38 = vmul.f32 0.125, %v990_v13  ;;  %v3526_v32 = vld [vmem:[%s4221_s10 + $0x158] sm:$0xff]  }
 0x1d9   : > { %2566 = vmatmul.mubr.bf16.vlgmr.msra.gmra.mrb[16].mxu0 %v1749_v33  ;;  %v1362_v50 = vmul.f32 %v1306_v44, %v1262_v12  ;;  %v4475_v0 = vpop.eup %3622  ;;  %v1093_v17 = vrot.slane %v1092_v55, 2  ;;  %v1460_v46 = vadd.f32 %v1398_v60, %v1360_v62  ;;  %v997_v23 = vrot.slane %v4332_v29, 4  ;;  %v3522_v44 = vld [vmem:[%s4221_s10 + $0x150] sm:$0xff]  }
 0x1da   : > { %v1751_v7 = vpack.c.bf16 %v1473_v54, %v1473_v54  ;;  %3268 = vmatpush3.bf16.msra.mxu0 %v3516_v8  ;;  %v1232_v59 = vadd.f32 1e-05, %v1200_v20  ;;  %v1154_v39 = vmul.f32 0.125, %v1102_v43  ;;  %v1170_v10 = vmul.f32 %v4469_v38, %v4469_v38  ;;  %v3525_v54 = vld [vmem:[%s4221_s10 + $0x190] sm:$0xff]  }
 0x1db   : > { %3269 = vmatprep.subr.bf16.mxu0 %v3518_v28  ;;  %v1462_v4 = vadd.f32 %v1406_v26, %v1362_v50  ;;  %3624 = vrsqrt.f32 %v1229_v42  ;;  %v972_v37 = vadd.f32 %v971_v40, %v970_v47  ;;  %v1476_v60 = vmax.f32 %v1460_v46, 0.0  ;;  %v3523_v42 = vld [vmem:[%s4221_s10 + $0x1d0] sm:$0xff]   ;;  %v3527_v50 = vld [vmem:[%s4221_s10 + $0x1d8] sm:$0xff]   ;;  %v3530_v46 = vld [vmem:[%s4221_s10 + $0x160] sm:$0xff]  }
 0x1dc   : > { %2606 = vmatmul.mubr.bf16.vlgmr.msra.gmra.mrb[16].mxu1 %v1751_v7  ;;  %v998_v15 = vadd.f32 %v997_v23, %v4332_v29  ;;  %v982_v5 = vadd.f32 %v981_v45, %v980_v22  ;;  %v1186_v19 = vsub.f32 %v1154_v39, %v1170_v10  ;;  %v1028_v56 = vmul.f32 %v4332_v29, %v4332_v29  ;;  %v3524_v47 = vld [vmem:[%s4221_s10 + $0x110] sm:$0xff]  }
 0x1dd   : > { %3290 = vmatpush3.bf16.msra.mxu1 %v3517_v48  ;;  %v1478_v20 = vmax.f32 %v1462_v4, 0.0  ;;  %v1083_v36 = vrot.slane %v1082_v24, 1  ;;  %v1094_v8 = vadd.f32 %v1093_v17, %v1092_v55  ;;  %v1754_v26 = vpack.c.bf16 %v1476_v60, %v1476_v60  ;;  %v3528_v17 = vld [vmem:[%s4221_s10 + $0x118] sm:$0xff]  }
 0x1de   : > { %3291 = vmatprep.subr.bf16.mxu1 %v3519_v41  ;;  %3270 = vmatpush3.bf16.msra.mxu0 %v3520_v6  ;;  %v999_v12 = vrot.slane %v998_v15, 2  ;;  %3626 = vrsqrt.f32 %v1232_v59  ;;  %v1202_v13 = vmax.f32 %v1186_v19, 0.0  ;;  %v1109_v33 = vrot.slane %v1028_v56, 4  ;;  %v4508_v41 = vld [vmem:[%s336_s18 + $0x8] sm:$0xff] }
 0x1df   : > { %3271 = vmatprep.subr.bf16.mxu0 %v3522_v44  ;;  %v1756_v22 = vpack.c.bf16 %v1478_v20, %v1478_v20  ;;  %v4497_v28 = vsub.s32 6, %v4314_v1  ;;  %2645 = vmatprep.mubr.bf16.mxu0 %v1754_v26  ;;  %v983_v40 = vrot.slane %v982_v5, 1  ;;  %v1084_v43 = vadd.f32 %v1083_v36, %v1082_v24  ;;  %v4513_v24 = vld [vmem:[%s345_s23 + $0x8] sm:$0xff] }
 0x1e0   : > { %v1000_v55 = vadd.f32 %v999_v12, %v998_v15  ;;  %v1234_v45 = vadd.f32 1e-05, %v1202_v13  ;;  %v1110_v62 = vadd.f32 %v1109_v33, %v1028_v56  ;;  %v4500_v48 = vmul.f32 0.125, %v972_v37  ;;  %v3529_v60 = vld [vmem:[%s4221_s10 + $0x198] sm:$0xff]   ;;  %v3531_v56 = vld [vmem:[%s4221_s10 + $0x1e0] sm:$0xff]  }
 0x1e1   : > { %3292 = vmatpush3.bf16.msra.mxu1 %v3521_v31  ;;  %2685 = vmatprep.mubr.bf16.mxu1 %v1756_v22  ;;  %v1294_v7 = vrot.slane %v4356_v3, %v4343_v49  ;;  %v1095_v6 = vrot.slane %v1094_v8, 1  ;;  %v1302_v59 = vrot.slane %v4356_v3, %v4497_v28  ;;  %v1394_v10 = vrot.slane %v4368_v52, %v4343_v49  ;;  %v3532_v36 = vld [vmem:[%s4221_s10 + $0x120] sm:$0xff]  }
 0x1e2   : > { %3293 = vmatprep.subr.bf16.mxu1 %v3523_v42  ;;  %3272 = vmatpush3.bf16.msra.mxu0 %v3524_v47  ;;  %v1001_v1 = vrot.slane %v1000_v55, 1  ;;  %3628 = vrsqrt.f32 %v1234_v45  ;;  %v1111_v23 = vrot.slane %v1110_v62, 2  ;;  %v1402_v44 = vrot.slane %v4368_v52, %v4497_v28  ;;  %v3534_v47 = vld [vmem:[%s4221_s10 + $0x168] sm:$0xff]  }
 0x1e3   : > { %3273 = vmatprep.subr.bf16.mxu0 %v3526_v32  ;;  %v1211_v4 = vsub.f32 %v4281_v11, %v4372_v51  ;;  %v984_v37 = vadd.f32 %v983_v40, %v982_v5  ;;  %v1009_v19 = vrot.slane %v4338_v34, 4  ;;  %v1151_v3 = vmul.f32 0.125, %v1084_v43  ;;  %v3536_v43 = vld [vmem:[%s4221_s10 + $0x128] sm:$0xff]  }
 0x1e4   : > { %v1002_v39 = vadd.f32 %v1001_v1, %v1000_v55  ;;  %v1112_v15 = vadd.f32 %v1111_v23, %v1110_v62  ;;  %v1167_v20 = vmul.f32 %v4500_v48, %v4500_v48  ;;  %v1314_v11 = vrot.slane %v4508_v41, %v4349_v61  ;;  %v3533_v55 = vld [vmem:[%s4221_s10 + $0x1a0] sm:$0xff]  }
 0x1e5   : > { %3294 = vmatpush3.bf16.msra.mxu1 %v3525_v54  ;;  %v3625_v31 = vpop.eup %3624  ;;  %v1414_v51 = vrot.slane %v4513_v24, %v4349_v61  ;;  %v1259_v5 = vmul.f32 %v4475_v0, %v1211_v4  ;;  %v1096_v26 = vadd.f32 %v1095_v6, %v1094_v8  ;;  %v1010_v12 = vadd.f32 %v1009_v19, %v4338_v34  ;;  %v3538_v6 = vld [vmem:[%s4221_s10 + $0x170] sm:$0xff]   ;;  %v3545_v61 = vld [vmem:[%s4221_s10 + $0x1b8] sm:$0xff]  }
 0x1e6   : > { %3295 = vmatprep.subr.bf16.mxu1 %v3527_v50  ;;  %3274 = vmatpush3.bf16.msra.mxu0 %v3528_v17  ;;  %v1113_v42 = vrot.slane %v1112_v15, 1  ;;  %v1213_v13 = vsub.f32 %v4283_v16, %v4389_v14  ;;  %v1216_v22 = vsub.f32 %v4303_v57, %v4422_v21  ;;  %v4540_v32 = vmul.f32 0.125, %v1002_v39  ;;  %v3535_v21 = vld [vmem:[%s4221_s10 + $0x1e8] sm:$0xff]  }
 0x1e7   : > { %3275 = vmatprep.subr.bf16.mxu0 %v3530_v46  ;;  %v1030_v33 = vmul.f32 %v4338_v34, %v4338_v34  ;;  %v4544_v8 = vmul.f32 0.125, %v984_v37  ;;  %v1011_v45 = vrot.slane %v1010_v12, 2  ;;  %v1322_v16 = vrot.slane %v4508_v41, %v4352_v2 }
 0x1e8   : > { %v3627_v0 = vpop.eup %3626  ;;  %v1114_v40 = vadd.f32 %v1113_v42, %v1112_v15  ;;  %v1261_v14 = vmul.f32 %v3625_v31, %v1213_v13  ;;  %v1183_v54 = vsub.f32 %v1151_v3, %v1167_v20  ;;  %v1218_v57 = vsub.f32 %v4312_v63, %v4469_v38  ;;  %v3537_v15 = vld [vmem:[%s4221_s10 + $0x1a8] sm:$0xff]  }
 0x1e9   : > { %3296 = vmatpush3.bf16.msra.mxu1 %v3529_v60  ;;  %v1121_v62 = vrot.slane %v1030_v33, 4  ;;  %v1359_v50 = vmul.f32 %v1294_v7, %v1259_v5  ;;  %v1153_v17 = vmul.f32 0.125, %v1096_v26  ;;  %v1012_v1 = vadd.f32 %v1011_v45, %v1010_v12 }
 0x1ea   : > { %3297 = vmatprep.subr.bf16.mxu1 %v3531_v56  ;;  %3276 = vmatpush3.bf16.msra.mxu0 %v3532_v36  ;;  %v1422_v46 = vrot.slane %v4513_v24, %v4352_v2  ;;  %v1264_v23 = vmul.f32 %v3627_v0, %v1216_v22  ;;  %v1156_v39 = vmul.f32 0.125, %v1114_v40  ;;  %v1172_v63 = vmul.f32 %v4540_v32, %v4540_v32  ;;  %v3539_v56 = vld [vmem:[%s4221_s10 + $0x1f0] sm:$0xff]  }
 0x1eb   : > { %3277 = vmatprep.subr.bf16.mxu0 %v3534_v47  ;;  %v1122_v38 = vadd.f32 %v1121_v62, %v1030_v33  ;;  %v1169_v7 = vmul.f32 %v4544_v8, %v4544_v8  ;;  %v991_v37 = vrot.slane %v4326_v25, 4  ;;  %v1027_v60 = vmul.f32 %v4326_v25, %v4326_v25  ;;  %v3540_v36 = vld [vmem:[%s4221_s10 + $0x130] sm:$0xff]   ;;  %v3542_v47 = vld [vmem:[%s4221_s10 + $0x178] sm:$0xff]  }
 0x1ec   : > { %v3629_v4 = vpop.eup %3628  ;;  %v1013_v2 = vrot.slane %v1012_v1, 1  ;;  %v1361_v19 = vmul.f32 %v1302_v59, %v1261_v14  ;;  %v1199_v31 = vmax.f32 %v1183_v54, 0.0  ;;  %v1003_v5 = vrot.slane %v4334_v30, 4  ;;  %v3541_v14 = vld [vmem:[%s4221_s10 + $0x1b0] sm:$0xff]  }
 0x1ed   : > { %3298 = vmatpush3.bf16.msra.mxu1 %v3533_v55  ;;  %v1266_v3 = vmul.f32 %v3629_v4, %v1218_v57  ;;  %v1123_v20 = vrot.slane %v1122_v38, 2  ;;  %v1029_v26 = vmul.f32 %v4334_v30, %v4334_v30  ;;  %v1459_v59 = vadd.f32 %v1394_v10, %v1359_v50  ;;  %v3543_v57 = vld [vmem:[%s4221_s10 + $0x1f8] sm:$0xff]  }
 0x1ee   : > { %3299 = vmatprep.subr.bf16.mxu1 %v3535_v21  ;;  %3278 = vmatpush3.bf16.msra.mxu0 %v3536_v43  ;;  %v1014_v42 = vadd.f32 %v1013_v2, %v1012_v1  ;;  %v1188_v12 = vsub.f32 %v1156_v39, %v1172_v63  ;;  %v1364_v22 = vmul.f32 %v1314_v11, %v1264_v23  ;;  %v1103_v40 = vrot.slane %v1027_v60, 4  ;;  %v3544_v21 = vld [vmem:[%s4221_s10 + $0x138] sm:$0xff]  }
 0x1ef   : > { %3279 = vmatprep.subr.bf16.mxu0 %v3538_v6  ;;  %v1124_v13 = vadd.f32 %v1123_v20, %v1122_v38  ;;  %v1366_v33 = vmul.f32 %v1322_v16, %v1266_v3  ;;  %v1185_v0 = vsub.f32 %v1153_v17, %v1169_v7  ;;  %v992_v55 = vadd.f32 %v991_v37, %v4326_v25  ;;  %v3546_v17 = vld [vmem:[%s4221_s10 + $0x240] sm:$0xff]  }
 0x1f0   : > { %v4574_v45 = vmul.f32 0.125, %v1014_v42  ;;  %v1461_v10 = vadd.f32 %v1402_v44, %v1361_v19  ;;  %v1464_v11 = vadd.f32 %v1414_v51, %v1364_v22  ;;  %v1004_v62 = vadd.f32 %v1003_v5, %v4334_v30  ;;  %v3547_v7 = vld [vmem:[%s4221_s10 + $0x2c0] sm:$0xff]   ;;  %v3550_v19 = vld [vmem:[%s4221_s10 + $0x248] sm:$0xff]  }
 0x1f1   : > { %3300 = vmatpush3.bf16.msra.mxu1 %v3537_v15  ;;  %v1125_v54 = vrot.slane %v1124_v13, 1  ;;  %v1466_v16 = vadd.f32 %v1422_v46, %v1366_v33  ;;  %v1115_v43 = vrot.slane %v1029_v26, 4  ;;  %v1475_v50 = vmax.f32 %v1459_v59, 0.0  ;;  %v3548_v37 = vld [vmem:[%s4221_s10 + $0x200] sm:$0xff]   ;;  %v3552_v22 = vld [vmem:[%s4221_s10 + $0x208] sm:$0xff]  }
 0x1f2   : > { %3301 = vmatprep.subr.bf16.mxu1 %v3539_v56  ;;  %3280 = vmatpush3.bf16.msra.mxu0 %v3540_v36  ;;  %v1204_v1 = vmax.f32 %v1188_v12, 0.0  ;;  %v1174_v52 = vmul.f32 %v4574_v45, %v4574_v45  ;;  %v1480_v23 = vmax.f32 %v1464_v11, 0.0  ;;  %v1231_v44 = vadd.f32 1e-05, %v1199_v31  ;;  %v3549_v36 = vld [vmem:[%s4221_s10 + $0x280] sm:$0xff]  }
 0x1f3   : > { %3281 = vmatprep.subr.bf16.mxu0 %v3542_v47  ;;  %v1126_v6 = vadd.f32 %v1125_v54, %v1124_v13  ;;  %v1201_v39 = vmax.f32 %v1185_v0, 0.0  ;;  %v1482_v51 = vmax.f32 %v1466_v16, 0.0  ;;  %v993_v46 = vrot.slane %v992_v55, 2  ;;  %v3551_v13 = vld [vmem:[%s4221_s10 + $0x2c8] sm:$0xff]  }
 0x1f4   : > { %v1104_v63 = vadd.f32 %v1103_v40, %v1027_v60  ;;  %v1477_v4 = vmax.f32 %v1461_v10, 0.0  ;;  %v1753_v2 = vpack.c.bf16 %v1475_v50, %v1475_v50  ;;  %v1758_v15 = vpack.c.bf16 %v1480_v23, %v1480_v23  ;;  %v3558_v10 = vld [vmem:[%s4221_s10 + $0x258] sm:$0xff]   ;;  %v3562_v23 = vld [vmem:[%s4221_s10 + $0x260] sm:$0xff]  }
 0x1f5   : > { %3302 = vmatpush3.bf16.msra.mxu1 %v3541_v14  ;;  %v1158_v38 = vmul.f32 0.125, %v1126_v6  ;;  %v1236_v3 = vadd.f32 1e-05, %v1204_v1  ;;  %v1005_v31 = vrot.slane %v1004_v62, 2  ;;  %v1116_v20 = vadd.f32 %v1115_v43, %v1029_v26  ;;  %v3554_v26 = vld [vmem:[%s4221_s10 + $0x250] sm:$0xff]   ;;  %v3560_v1 = vld [vmem:[%s4221_s10 + $0x218] sm:$0xff]  }
 0x1f6   : > { %3303 = vmatprep.subr.bf16.mxu1 %v3543_v57  ;;  %3282 = vmatpush3.bf16.msra.mxu0 %v3544_v21  ;;  %3630 = vrsqrt.f32 %v1231_v44  ;;  %v1233_v60 = vadd.f32 1e-05, %v1201_v39  ;;  %v1760_v5 = vpack.c.bf16 %v1482_v51, %v1482_v51  ;;  %v994_v42 = vadd.f32 %v993_v46, %v992_v55  ;;  %v3553_v55 = vld [vmem:[%s4221_s10 + $0x288] sm:$0xff]   ;;  %v3555_v57 = vld [vmem:[%s4221_s10 + $0x2d0] sm:$0xff]   ;;  %v3561_v46 = vld [vmem:[%s4221_s10 + $0x298] sm:$0xff]  }
 0x1f7   : > { %3311 = vmatprep.subr.bf16.mxu0 %v3546_v17  ;;  %v1190_v56 = vsub.f32 %v1158_v38, %v1174_v52  ;;  %v1105_v47 = vrot.slane %v1104_v63, 2  ;;  %v1755_v12 = vpack.c.bf16 %v1477_v4, %v1477_v4  ;;  %3632 = vrsqrt.f32 %v1236_v3  ;;  %v3556_v21 = vld [vmem:[%s4221_s10 + $0x210] sm:$0xff]   ;;  %v3559_v17 = vld [vmem:[%s4221_s10 + $0x2d8] sm:$0xff]  }
 0x1f8   : > { %v1006_v33 = vadd.f32 %v1005_v31, %v1004_v62  ;;  %v1117_v0 = vrot.slane %v1116_v20, 2  ;;  %3634 = vrsqrt.f32 %v1233_v60  ;;  %v995_v14 = vrot.slane %v994_v42, 1  ;;  %v3557_v62 = vld [vmem:[%s4221_s10 + $0x290] sm:$0xff]  }
 0x1f9   : > { %3304 = vmatpush3.bf16.msra.mxu1 %v3545_v61  ;;  %2646 = vmatmul.mubr.bf16.vlgmr.msra.gmra.mrb[20].mxu0 %v1753_v2  ;;  %v1206_v59 = vmax.f32 %v1190_v56, 0.0  ;;  %v1106_v54 = vadd.f32 %v1105_v47, %v1104_v63  ;;  %v1215_v52 = vsub.f32 %v4299_v53, %v4500_v48  ;;  %v1220_v61 = vsub.f32 %v4332_v29, %v4540_v32  ;;  %v3563_v48 = vld [vmem:[%s4221_s10 + $0x2e0] sm:$0xff]  }
 0x1fa   : > { %3333 = vmatprep.subr.bf16.mxu1 %v3547_v7  ;;  %3312 = vmatpush3.bf16.msra.mxu0 %v3548_v37  ;;  %v1007_v11 = vrot.slane %v1006_v33, 1  ;;  %v1118_v16 = vadd.f32 %v1117_v0, %v1116_v20  ;;  %v996_v43 = vadd.f32 %v995_v14, %v994_v42  ;;  %v1222_v51 = vsub.f32 %v4338_v34, %v4574_v45  ;;  %v3564_v7 = vld [vmem:[%s4221_s10 + $0x220] sm:$0xff]   ;;  %v3566_v34 = vld [vmem:[%s4221_s10 + $0x268] sm:$0xff]  }
 0x1fb   : > { %2725 = vmatprep.mubr.bf16.mxu0 %v1758_v15  ;;  %3313 = vmatprep.subr.bf16.mxu0 %v3550_v19  ;;  %v1238_v40 = vadd.f32 1e-05, %v1206_v59  ;;  %v1107_v50 = vrot.slane %v1106_v54, 1  ;;  %v1217_v38 = vsub.f32 %v4305_v58, %v4544_v8  ;;  %v1310_v32 = vrot.slane %v4508_v41, %v4323_v18  ;;  %v3565_v19 = vld [vmem:[%s4221_s10 + $0x2a0] sm:$0xff]   ;;  %v3568_v42 = vld [vmem:[%s4221_s10 + $0x228] sm:$0xff]   ;;  %v3570_v59 = vld [vmem:[%s4221_s10 + $0x270] sm:$0xff]  }
 0x1fc   : > { %2686 = vmatmul.mubr.bf16.vlgmr.msra.gmra.mrb[20].mxu1 %v1755_v12  ;;  %v1008_v44 = vadd.f32 %v1007_v11, %v1006_v33  ;;  %v1119_v39 = vrot.slane %v1118_v16, 1  ;;  %v4614_v53 = vmul.f32 0.125, %v996_v43  ;;  %v1330_v3 = vrot.slane %v4508_v41, %v4384_v9 }
 0x1fd   : > { %3334 = vmatpush3.bf16.msra.mxu1 %v3549_v36  ;;  %2765 = vmatprep.mubr.bf16.mxu1 %v1760_v5  ;;  %3636 = vrsqrt.f32 %v1238_v40  ;;  %v1108_v4 = vadd.f32 %v1107_v50, %v1106_v54  ;;  %v1338_v31 = vrot.slane %v4508_v41, %v4400_v35  ;;  %v1318_v56 = vrot.slane %v4508_v41, %v4329_v27  ;;  %v3567_v5 = vld [vmem:[%s4221_s10 + $0x2e8] sm:$0xff]   ;;  %v3575_v50 = vld [vmem:[%s4221_s10 + $0x2f8] sm:$0xff]  }
 0x1fe   : > { %3335 = vmatprep.subr.bf16.mxu1 %v3551_v13  ;;  %3314 = vmatpush3.bf16.msra.mxu0 %v3552_v22  ;;  %v1120_v2 = vadd.f32 %v1119_v39, %v1118_v16  ;;  %v4621_v58 = vmul.f32 0.125, %v1008_v44  ;;  %v1171_v36 = vmul.f32 %v4614_v53, %v4614_v53  ;;  %v1410_v12 = vrot.slane %v4513_v24, %v4323_v18  ;;  %v3571_v18 = vld [vmem:[%s4221_s10 + $0x2f0] sm:$0xff]  }
 0x1ff   : > { %3315 = vmatprep.subr.bf16.mxu0 %v3554_v26  ;;  %v1155_v60 = vmul.f32 0.125, %v1108_v4  ;;  %v3569_v26 = vld [vmem:[%s4221_s10 + $0x2a8] sm:$0xff]   ;;  %v1430_v0 = vrot.slane %v4513_v24, %v4384_v9  ;;  %v3573_v16 = vld [vmem:[%s4221_s10 + $0x2b0] sm:$0xff]  }
 0x200   : > { %v3631_v6 = vpop.eup %3630  ;;  %v1157_v13 = vmul.f32 0.125, %v1120_v2  ;;  %v1173_v22 = vmul.f32 %v4621_v58, %v4621_v58  ;;  %v3582_v4 = vld [vmem:[%s4221_s10 + $0x348] sm:$0xff]   ;;  %v3586_v2 = vld [vmem:[%s4221_s10 + $0x350] sm:$0xff]  }
 0x201   : > { %3336 = vmatpush3.bf16.msra.mxu1 %v3553_v55  ;;  %v3633_v63 = vpop.eup %3632  ;;  %v1263_v29 = vmul.f32 %v3631_v6, %v1215_v52  ;;  %v1438_v55 = vrot.slane %v4513_v24, %v4400_v35  ;;  %v1187_v54 = vsub.f32 %v1155_v60, %v1171_v36  ;;  %v3578_v6 = vld [vmem:[%s4221_s10 + $0x340] sm:$0xff]   ;;  %v1219_v60 = vsub.f32 %v4326_v25, %v4614_v53  ;;  %v3598_v53 = vld [vmem:[%s4221_s10 + $0x368] sm:$0xff]  }
 0x202   : > { %3337 = vmatprep.subr.bf16.mxu1 %v3555_v57  ;;  %3316 = vmatpush3.bf16.msra.mxu0 %v3556_v21  ;;  %v3635_v37 = vpop.eup %3634  ;;  %v1268_v8 = vmul.f32 %v3633_v63, %v1220_v61  ;;  %v3572_v57 = vld [vmem:[%s4221_s10 + $0x230] sm:$0xff]   ;;  %v1418_v21 = vrot.slane %v4513_v24, %v4329_v27  ;;  %v1189_v9 = vsub.f32 %v1157_v13, %v1173_v22  ;;  %v3580_v63 = vld [vmem:[%s4221_s10 + $0x300] sm:$0xff]  }
 0x203   : > { %3317 = vmatprep.subr.bf16.mxu0 %v3558_v10  ;;  %v1265_v20 = vmul.f32 %v3635_v37, %v1217_v38  ;;  %v1363_v47 = vmul.f32 %v1310_v32, %v1263_v29  ;;  %v3574_v10 = vld [vmem:[%s4221_s10 + $0x278] sm:$0xff]   ;;  %v1203_v43 = vmax.f32 %v1187_v54, 0.0  ;;  %v3581_v37 = vld [vmem:[%s4221_s10 + $0x380] sm:$0xff]   ;;  %v1326_v25 = vrot.slane %v4508_v41, %v4343_v49  ;;  %v3601_v54 = vld [vmem:[%s4221_s10 + $0x3a8] sm:$0xff]  }
 0x204   : > { %v1368_v33 = vmul.f32 %v1330_v3, %v1268_v8  ;;  %v1205_v52 = vmax.f32 %v1189_v9, 0.0  ;;  %v3585_v8 = vld [vmem:[%s4221_s10 + $0x388] sm:$0xff]   ;;  %v3590_v3 = vld [vmem:[%s4221_s10 + $0x358] sm:$0xff]   ;;  %v3594_v36 = vld [vmem:[%s4221_s10 + $0x360] sm:$0xff]  }
 0x205   : > { %3338 = vmatpush3.bf16.msra.mxu1 %v3557_v62  ;;  %v1365_v14 = vmul.f32 %v1318_v56, %v1265_v20  ;;  %v1463_v11 = vadd.f32 %v1410_v12, %v1363_v47  ;;  %v1235_v61 = vadd.f32 1e-05, %v1203_v43  ;;  %v3591_v20 = vld [vmem:[%s4221_s10 + $0x3d8] sm:$0xff]   ;;  %v1221_v47 = vsub.f32 %v4334_v30, %v4621_v58  ;;  %v3596_v12 = vld [vmem:[%s4221_s10 + $0x320] sm:$0xff]   ;;  %v3599_v58 = vld [vmem:[%s4221_s10 + $0x3e8] sm:$0xff]  }
 0x206   : > { %3339 = vmatprep.subr.bf16.mxu1 %v3559_v17  ;;  %3318 = vmatpush3.bf16.msra.mxu0 %v3560_v1  ;;  %v1468_v35 = vadd.f32 %v1430_v0, %v1368_v33  ;;  %v3576_v17 = vld [vmem:[%s4221_s10 + $0x238] sm:$0xff]   ;;  %v1334_v30 = vrot.slane %v4508_v41, %v4497_v28  ;;  %v3600_v0 = vld [vmem:[%s4221_s10 + $0x328] sm:$0xff]   ;;  %v3603_v41 = vld [vmem:[%s4221_s10 + $0x3f0] sm:$0xff]  }
 0x207   : > { %3319 = vmatprep.subr.bf16.mxu0 %v3562_v23  ;;  %v3637_v45 = vpop.eup %3636  ;;  %v1465_v1 = vadd.f32 %v1418_v21, %v1365_v14  ;;  %v1479_v27 = vmax.f32 %v1463_v11, 0.0  ;;  %v3577_v23 = vld [vmem:[%s4221_s10 + $0x2b8] sm:$0xff]   ;;  %3638 = vrsqrt.f32 %v1235_v61  ;;  %v1426_v14 = vrot.slane %v4513_v24, %v4343_v49  ;;  %v3605_v9 = vld [vmem:[%s4221_s10 + $0x3b0] sm:$0xff]  }
 0x208   : > { %v1270_v15 = vmul.f32 %v3637_v45, %v1222_v51  ;;  %v1484_v44 = vmax.f32 %v1468_v35, 0.0  ;;  %v3584_v45 = vld [vmem:[%s4221_s10 + $0x308] sm:$0xff]   ;;  %v3592_v56 = vld [vmem:[%s4221_s10 + $0x318] sm:$0xff]   ;;  %v1434_v21 = vrot.slane %v4513_v24, %v4497_v28 }
 0x209   : > { %3340 = vmatpush3.bf16.msra.mxu1 %v3561_v46  ;;  %v1481_v51 = vmax.f32 %v1465_v1, 0.0  ;;  %v3579_v46 = vld [vmem:[%s4221_s10 + $0x3c0] sm:$0xff]   ;;  %v1757_v38 = vpack.c.bf16 %v1479_v27, %v1479_v27  ;;  %v3607_v49 = vld [vmem:[%s4221_s10 + $0x3f8] sm:$0xff]  }
 0x20a   : > { %3341 = vmatprep.subr.bf16.mxu1 %v3563_v48  ;;  %3320 = vmatpush3.bf16.msra.mxu0 %v3564_v7  ;;  %v1370_v40 = vmul.f32 %v1338_v31, %v1270_v15  ;;  %v1237_v48 = vadd.f32 1e-05, %v1205_v52  ;;  %v1762_v7 = vpack.c.bf16 %v1484_v44, %v1484_v44  ;;  %v3587_v15 = vld [vmem:[%s4221_s10 + $0x3d0] sm:$0xff]   ;;  %v3609_v43 = vld [vmem:[%s4221_s10 + $0x3b8] sm:$0xff]  }
 0x20b   : > { %3321 = vmatprep.subr.bf16.mxu0 %v3566_v34  ;;  %v1759_v32 = vpack.c.bf16 %v1481_v51, %v1481_v51  ;;  %v3583_v34 = vld [vmem:[%s4221_s10 + $0x3c8] sm:$0xff]   ;;  %v3589_v31 = vld [vmem:[%s4221_s10 + $0x390] sm:$0xff]  }
 0x20c   : > { %v1470_v62 = vadd.f32 %v1438_v55, %v1370_v40  ;;  %3640 = vrsqrt.f32 %v1237_v48  ;;  %v3602_v55 = vld [vmem:[%s4221_s10 + $0x370] sm:$0xff]  }
 0x20d   : > { %3342 = vmatpush3.bf16.msra.mxu1 %v3565_v19  ;;  %v3588_v19 = vld [vmem:[%s4221_s10 + $0x310] sm:$0xff]  }
 0x20e   : > { %3343 = vmatprep.subr.bf16.mxu1 %v3567_v5  ;;  %3322 = vmatpush3.bf16.msra.mxu0 %v3568_v42  ;;  %v1486_v39 = vmax.f32 %v1470_v62, 0.0  ;;  %v3593_v42 = vld [vmem:[%s4221_s10 + $0x398] sm:$0xff]  }
 0x20f   : > { %3323 = vmatprep.subr.bf16.mxu0 %v3570_v59  ;;  %v3595_v59 = vld [vmem:[%s4221_s10 + $0x3e0] sm:$0xff]  }
 0x210   : > { %v1764_v29 = vpack.c.bf16 %v1486_v39, %v1486_v39 }
 0x211   : > { %3344 = vmatpush3.bf16.msra.mxu1 %v3569_v26  ;;  %v3639_v5 = vpop.eup %3638  ;;  %v3597_v26 = vld [vmem:[%s4221_s10 + $0x3a0] sm:$0xff]  }
 0x212   : > { %3345 = vmatprep.subr.bf16.mxu1 %v3571_v18  ;;  %3324 = vmatpush3.bf16.msra.mxu0 %v3572_v57  ;;  %v1267_v22 = vmul.f32 %v3639_v5, %v1219_v60  ;;  %v3604_v57 = vld [vmem:[%s4221_s10 + $0x330] sm:$0xff]  }
 0x213   : > { %3325 = vmatprep.subr.bf16.mxu0 %v3574_v10  ;;  %v3606_v10 = vld [vmem:[%s4221_s10 + $0x378] sm:$0xff]  }
 0x214   : > { %v1367_v40 = vmul.f32 %v1326_v25, %v1267_v22 }
 0x215   : > { %3346 = vmatpush3.bf16.msra.mxu1 %v3573_v16  ;;  %v3608_v16 = vld [vmem:[%s4221_s10 + $0x338] sm:$0xff]  }
 0x216   : > { %3347 = vmatprep.subr.bf16.mxu1 %v3575_v50  ;;  %3326 = vmatpush3.bf16.msra.mxu0 %v3576_v17  ;;  %v3641_v13 = vpop.eup %3640  ;;  %v1467_v11 = vadd.f32 %v1426_v14, %v1367_v40  ;;  %v1748_v40 = vld [vmem:[#allocation11] sm:$0xff] }
 0x217   : > { %3355 = vmatprep.subr.bf16.mxu0 %v3578_v6  ;;  %v1269_v33 = vmul.f32 %v3641_v13, %v1221_v47 }
 0x218   : > { %v1483_v62 = vmax.f32 %v1467_v11, 0.0 }
 0x219   : > { %3348 = vmatpush3.bf16.msra.mxu1 %v3577_v23  ;;  %2726 = vmatmul.mubr.bf16.vlgmr.msra.gmra.mrb[24].mxu0 %v1757_v38  ;;  %v1369_v18 = vmul.f32 %v1334_v30, %v1269_v33 }
 0x21a   : > { %3377 = vmatprep.subr.bf16.mxu1 %v3579_v46  ;;  %3356 = vmatpush3.bf16.msra.mxu0 %v3580_v63  ;;  %v1761_v17 = vpack.c.bf16 %v1483_v62, %v1483_v62 }
 0x21b   : > { %2805 = vmatprep.mubr.bf16.mxu0 %v1762_v7  ;;  %3357 = vmatprep.subr.bf16.mxu0 %v3582_v4  ;;  %v1469_v35 = vadd.f32 %v1434_v21, %v1369_v18 }
 0x21c   : > { %2766 = vmatmul.mubr.bf16.vlgmr.msra.gmra.mrb[24].mxu1 %v1759_v32 }
 0x21d   : > { %3378 = vmatpush3.bf16.msra.mxu1 %v3581_v37  ;;  %2845 = vmatprep.mubr.bf16.mxu1 %v1764_v29  ;;  %v1485_v50 = vmax.f32 %v1469_v35, 0.0 }
 0x21e   : > { %3379 = vmatprep.subr.bf16.mxu1 %v3583_v34  ;;  %3358 = vmatpush3.bf16.msra.mxu0 %v3584_v45 }
 0x21f   : > { %3359 = vmatprep.subr.bf16.mxu0 %v3586_v2  ;;  %v1763_v28 = vpack.c.bf16 %v1485_v50, %v1485_v50 }
 0x221   : > { %3380 = vmatpush3.bf16.msra.mxu1 %v3585_v8 }
 0x222   : > { %3381 = vmatprep.subr.bf16.mxu1 %v3587_v15  ;;  %3360 = vmatpush3.bf16.msra.mxu0 %v3588_v19 }
 0x223   : > { %3361 = vmatprep.subr.bf16.mxu0 %v3590_v3 }
 0x225   : > { %3382 = vmatpush3.bf16.msra.mxu1 %v3589_v31 }
 0x226   : > { %3383 = vmatprep.subr.bf16.mxu1 %v3591_v20  ;;  %3362 = vmatpush3.bf16.msra.mxu0 %v3592_v56 }
 0x227   : > { %3363 = vmatprep.subr.bf16.mxu0 %v3594_v36 }
 0x229   : > { %3384 = vmatpush3.bf16.msra.mxu1 %v3593_v42 }
 0x22a   : > { %3385 = vmatprep.subr.bf16.mxu1 %v3595_v59  ;;  %3364 = vmatpush3.bf16.msra.mxu0 %v3596_v12 }
 0x22b   : > { %3365 = vmatprep.subr.bf16.mxu0 %v3598_v53 }
 0x22d   : > { %3386 = vmatpush3.bf16.msra.mxu1 %v3597_v26 }
 0x22e   : > { %3387 = vmatprep.subr.bf16.mxu1 %v3599_v58  ;;  %3366 = vmatpush3.bf16.msra.mxu0 %v3600_v0 }
 0x22f   : > { %3367 = vmatprep.subr.bf16.mxu0 %v3602_v55 }
 0x231   : > { %3388 = vmatpush3.bf16.msra.mxu1 %v3601_v54 }
 0x232   : > { %3389 = vmatprep.subr.bf16.mxu1 %v3603_v41  ;;  %3368 = vmatpush3.bf16.msra.mxu0 %v3604_v57 }
 0x233   : > { %3369 = vmatprep.subr.bf16.mxu0 %v3606_v10 }
 0x235   : > { %3390 = vmatpush3.bf16.msra.mxu1 %v3605_v9 }
 0x236   : > { %3391 = vmatprep.subr.bf16.mxu1 %v3607_v49  ;;  %3370 = vmatpush3.bf16.msra.mxu0 %v3608_v16 }
 0x239   : > { %3392 = vmatpush3.bf16.msra.mxu1 %v3609_v43  ;;  %2806 = vmatmul.mubr.bf16.vlgmr.msra.gmra.mrb[28].mxu0 %v1761_v17 }
 0x23c   : > { %2846 = vmatmul.mubr.bf16.vlgmr.msra.gmra.mrb[28].mxu1 %v1763_v28 }
 0x2ac   : > { %v3239_v24 = vpop.f32.mrb[16].mxu0 }
 0x2ad   : > { %v3240_v1 = vpop.f32.mrb[17].mxu0 }
 0x2ae   : > { %v3241_v27 = vadd.f32 %v3240_v1, %v3239_v24  ;;  %v3242_v6 = vpop.f32.mrb[18].mxu0 }
 0x2af   : > { %v3261_v52 = vpop.f32.mrb[16].mxu1  ;;  %v3243_v23 = vpop.f32.mrb[19].mxu0 }
 0x2b0   : > { %v3262_v44 = vpop.f32.mrb[17].mxu1 }
 0x2b1   : > { %v3263_v39 = vadd.f32 %v3262_v44, %v3261_v52  ;;  %v3264_v61 = vpop.f32.mrb[18].mxu1 }
 0x2b2   : > { %v3265_v51 = vpop.f32.mrb[19].mxu1 }
 0x2b3   : > { %v2608_v46 = vadd.f32 %v3263_v39, %v3241_v27  ;;  %v3214_v39 = vld [vmem:[%s4745_s5] ss:$0 sm:$0xff] (!%p3213_p8) }
 0x2b4   : > { %v3215_v51 = vld [vmem:[%s4746_s6] ss:$0 sm:$0xff] (!%p3213_p8) }
 0x2cc   : > { %v3283_v63 = vpop.f32.mrb[20].mxu0 }
 0x2cd   : > { %v3284_v38 = vpop.f32.mrb[21].mxu0 }
 0x2ce   : > { %v3285_v4 = vadd.f32 %v3284_v38, %v3283_v63  ;;  %v3286_v48 = vpop.f32.mrb[22].mxu0 }
 0x2cf   : > { %v3305_v7 = vpop.f32.mrb[20].mxu1  ;;  %v3287_v37 = vpop.f32.mrb[23].mxu0 }
 0x2d0   : > { %v2648_v29 = vadd.f32 %v3285_v4, %v2608_v46  ;;  %v3306_v32 = vpop.f32.mrb[21].mxu1 }
 0x2d1   : > { %v3307_v34 = vadd.f32 %v3306_v32, %v3305_v7  ;;  %v3308_v45 = vpop.f32.mrb[22].mxu1 }
 0x2d2   : > { %v3309_v2 = vpop.f32.mrb[23].mxu1 }
 0x2d3   : > { %v2688_v8 = vadd.f32 %v3307_v34, %v2648_v29 }
 0x2ec   : > { %v3327_v15 = vpop.f32.mrb[24].mxu0 }
 0x2ed   : > { %v3328_v19 = vpop.f32.mrb[25].mxu0 }
 0x2ee   : > { %v3329_v3 = vadd.f32 %v3328_v19, %v3327_v15  ;;  %v3330_v31 = vpop.f32.mrb[26].mxu0 }
 0x2ef   : > { %v3349_v20 = vpop.f32.mrb[24].mxu1  ;;  %v3331_v56 = vpop.f32.mrb[27].mxu0 }
 0x2f0   : > { %v2728_v60 = vadd.f32 %v3329_v3, %v2688_v8  ;;  %v3350_v36 = vpop.f32.mrb[25].mxu1 }
 0x2f1   : > { %v3351_v5 = vadd.f32 %v3350_v36, %v3349_v20  ;;  %v3352_v42 = vpop.f32.mrb[26].mxu1 }
 0x2f2   : > { %v3353_v47 = vpop.f32.mrb[27].mxu1 }
 0x2f3   : > { %v2768_v59 = vadd.f32 %v3351_v5, %v2728_v60 }
 0x30c   : > { %v3371_v12 = vpop.f32.mrb[28].mxu0 }
 0x30d   : > { %v3372_v13 = vpop.f32.mrb[29].mxu0 }
 0x30e   : > { %v3373_v22 = vadd.f32 %v3372_v13, %v3371_v12  ;;  %v3374_v25 = vpop.f32.mrb[30].mxu0 }
 0x30f   : > { %v3393_v53 = vpop.f32.mrb[28].mxu1  ;;  %v3375_v26 = vpop.f32.mrb[31].mxu0 }
 0x310   : > { %v2808_v33 = vadd.f32 %v3373_v22, %v2768_v59  ;;  %v3394_v30 = vpop.f32.mrb[29].mxu1 }
 0x311   : > { %v3395_v58 = vadd.f32 %v3394_v30, %v3393_v53  ;;  %v3396_v0 = vpop.f32.mrb[30].mxu1  ;;  %2858 = sbr.rel (%p3213_p8) target bundleno = 839 (0x347), region = 76 }
 0x312   : > { %v3397_v55 = vpop.f32.mrb[31].mxu1 }
 0x313   : > { %v2848_v14 = vadd.f32 %v3395_v58, %v2808_v33 }
 0x315   : > { %v2853_v54 = vadd.f32 %v2848_v14, %v1748_v40 }
 0x317   : > { %2854 = vst [vmem:[#allocation11] sm:$0xff] %v2853_v54 }
 0x31e   : > { %v2859_v18 = vld [vmem:[#allocation11] sm:$0xff] }
 0x31f   : > { %v2860_v41 = vrot.slane %v2859_v18, 4  ;;  %v2866_v57 = vmul.f32 %v2859_v18, %v2859_v18 }
 0x321   : > { %v2861_v21 = vadd.f32 %v2860_v41, %v2859_v18  ;;  %v2867_v10 = vrot.slane %v2866_v57, 4 }
 0x323   : > { %v2862_v11 = vrot.slane %v2861_v21, 2  ;;  %v2868_v9 = vadd.f32 %v2867_v10, %v2866_v57 }
 0x325   : > { %v2863_v49 = vadd.f32 %v2862_v11, %v2861_v21  ;;  %v2869_v16 = vrot.slane %v2868_v9, 2 }
 0x327   : > { %v2864_v35 = vrot.slane %v2863_v49, 1  ;;  %v2870_v62 = vadd.f32 %v2869_v16, %v2868_v9 }
 0x329   : > { %v2865_v43 = vadd.f32 %v2864_v35, %v2863_v49  ;;  %v2871_v50 = vrot.slane %v2870_v62, 1 }
 0x32b   : > { %v2872_v17 = vadd.f32 %v2871_v50, %v2870_v62  ;;  %v2873_v28 = vmul.f32 0.125, %v2865_v43 }
 0x32d   : > { %v2874_v24 = vmul.f32 0.125, %v2872_v17  ;;  %v2875_v1 = vmul.f32 %v2873_v28, %v2873_v28  ;;  %v2878_v23 = vsub.f32 %v2859_v18, %v2873_v28 }
 0x32f   : > { %v2876_v27 = vsub.f32 %v2874_v24, %v2875_v1 }
 0x331   : > { %v2877_v6 = vmax.f32 %v2876_v27, 0.0 }
 0x333   : > { %v2879_v52 = vadd.f32 1e-05, %v2877_v6 }
 0x335   : > { %3642 = vrsqrt.f32 %v2879_v52 }
 0x33f   : > { %v3643_v44 = vpop.eup %3642 }
 0x340   : > { %v2881_v61 = vmul.f32 %v3643_v44, %v2878_v23 }
 0x342   : > { %v2889_v46 = vmul.f32 %v3214_v39, %v2881_v61 }
 0x344   : > { %v2897_v63 = vadd.f32 %v3215_v51, %v2889_v46 }
 0x346   : > { %2898 = vst [vmem:[#allocation11] sm:$0xff] %v2897_v63 }
 0x347 PF: > { %p3439_p12 = scmp.eq.s32.totalorder %s3939_s28, 1  ;;  %s3879_s17 = smov [#allocation11]  }
 0x348   : > { %s2906_s27 = sshll.u32 %s3879_s17, 4  ;;  %s2907_s27 = int_to_ptr.vmem [resolvable:$true] %s2906_s27 }
 0x349   : > { %s3790_s21 = scalar_lea.vmem %s2907_s27, 128  ;;  %p3797_p5 = scmp.lt.s32.totalorder %s2907_s27, %s2907_s27 }
 0x34a   : > { %p3791_p2 = scmp.ne.s32.totalorder %s2907_s27, %s3790_s21  ;;  %p3798_p13 = scmp.lt.s32.totalorder %s3790_s21, %s3790_s21 }
 0x34c   : > { %p3792_p6 = pnand %p3791_p2, %p3439_p12  ;;  %p3799_p11 = por %p3798_p13, %p3797_p5 }
 0x34e   : > { %p3793_p7 = pneg %p3792_p6 }
 0x350   : > { %p3800_p10 = pnand %p3799_p11, %p3793_p7 }
 0x352   : > { %3803 = shalt.err (!%p3800_p10)
}
 0x353   : > { %s3804_s13 = scalar_lea.hbm %s4747_s7, 128 }
 0x354   : > { %p3805_p9 = scmp.ne.s32.totalorder %s4747_s7, %s3804_s13  ;;  %p3810_p3 = scmp.lt.u32.totalorder %s3804_s13, %s4747_s7 }
 0x356   : > { %p3806_p4 = pnand %p3805_p9, %p3439_p12 }
 0x358   : > { %p3807_p1 = pneg %p3806_p4 }
 0x35a   : > { %p3812_p0 = pnand %p3810_p3, %p3807_p1 }
 0x35c   : > { %3815 = shalt.err (!%p3812_p0)
}
 0x35d   : > { %3414 = dma.vmem_to_hbm [thread:$0]  (%p3439_p12), %s2907_s27, 128, %s4747_s7, [#allocation4]  }
 0x35e   : > { %3849 = dma.done.wait (%p3439_p12), [#allocation4], 128  }
 0x35f   : > { %3851 = vsyncadd (%p3439_p12), [#allocation4], 4294967168 }
 0x360 PF: > { %s4789_s27 = sld [smem:[#allocation17_spill]]  ;;  %s4790_s15 = sld [smem:[#allocation18_spill]] }
 0x361   : > { %s4791_s24 = smov %s3858_s25  ;;  %s4792_s25 = smov %s3862_s26 }
 0x366   : > { %p22_p8 = scmp.ge.s32.totalorder %s4789_s27, 4   ;;  %s4793_s26 = smov %s4790_s15 }
 0x368   :  { %24 = sbr.rel (!%p22_p8) target bundleno = 10 (0xa), region = 127 }
 0x36f   :  { %2919 = vsyncpa [#allocation3], 1 }
 0x370   :  { %2921 = vsyncpa [#allocation3 + $0x1], 1 }
 0x371   :  { %2922 = vsyncpa [#allocation6], 1 }
 0x372   :  { %2924 = vsyncpa [#allocation6 + $0x1], 1 }
 0x373   :  { %2925 = vsyncpa [#allocation9], 1 }
 0x374   :  { %2927 = vsyncpa [#allocation9 + $0x1], 1 }
 0x375   :  { %2928 = vsyncpa [#allocation4], 1 }
 0x376   :  { %2930 = vsyncpa [#allocation4 + $0x1], 1 }

// kernel: tpu_custom_call.1
= control target key start
LH: loop header
LB: loop body
LE: loop exit
PB: predicated region body
PF: predicated region fallthrough
CT: control target
= control target key end

     0   :  { %s4740_s0 = inlined_call_operand.hbm [shape: bf16[8,32], index: 0, kind: input, shape index: {}]   ;;  %s4741_s1 = inlined_call_operand.hbm [shape: bf16[32,4096], index: 1, kind: input, shape index: {}]   ;;  %s4742_s2 = inlined_call_operand.hbm [shape: f32[1,4096], index: 2, kind: input, shape index: {}]   ;;  %s4743_s3 = inlined_call_operand.hbm [shape: f32[1,4096], index: 3, kind: input, shape index: {}]   ;;  %s4744_s4 = inlined_call_operand.hbm [shape: bf16[4096,128], index: 4, kind: input, shape index: {}]   ;;  %s4745_s5 = inlined_call_operand.vmem [shape: f32[1,128], index: 5, kind: input, shape index: {}]   ;;  %s4746_s6 = inlined_call_operand.vmem [shape: f32[1,128], index: 6, kind: input, shape index: {}]   ;;  %s4747_s7 = inlined_call_operand.hbm [shape: f32[8,128], index: 7, kind: output, shape index: {}]  }
   0x1   :  { %4760 = sst [smem:[#allocation19_spill]] %s4741_s1 }
   0x2   :  { %4761 = sst [smem:[#allocation20_spill]] %s4744_s4 }
   0x3   :  { %12 = vsyncpa [#allocation3], 0 }
   0x4   :  { %13 = vsyncpa [#allocation6], 0 }
   0x5   :  { %15 = vsyncpa [#allocation6 + $0x1], 0 }
   0x6   :  { %16 = vsyncpa [#allocation9], 0 }
   0x7   :  { %18 = vsyncpa [#allocation9 + $0x1], 0 }
   0x8   :  { %19 = vsyncpa [#allocation4], 0  ;;  %s3920_s24 = smov 0   ;;  %s3922_s25 = smov 0  }
   0x9   :  { %s3924_s26 = smov 0   ;;  %s3926_s27 = smov 0  }
   0xa LB: > { %s3939_s28 = sadd.s32 4294967295, %s3866_s27   ;;  %s3942_s29 = sadd.s32 1, %s3866_s27   ;;  %s3866_s27 = sphi %s3926_s27, %s4789_s27   ;;  %s3862_s26 = sphi %s3924_s26, %s4793_s26   ;;  %s3858_s25 = sphi %s3922_s25, %s4792_s25   ;;  %s3854_s24 = sphi %s3920_s24, %s4791_s24  }
   0xb   : > { %4762 = sst [smem:[#allocation17_spill]] %s3942_s29  ;;  %s50_s30 = ssub.s32 %s3866_s27, %s3942_s29 }
   0xc   : > { %s53_s8 = sadd.s32 1, %s3862_s26  ;;  %p51_p0 = scmp.eq.s32.totalorder %s50_s30, 0 }
   0xd   : > { %p60_p1 = scmp.ne.s32.totalorder %s3862_s26, %s3858_s25  ;;  %p61_p2 = scmp.eq.s32.totalorder %s3866_s27, 0 }
   0xe   : > { %p66_p3 = scmp.ne.s32.totalorder %s3858_s25, %s3854_s24  ;;  %p4748_p5 = scmp.eq.s32.totalorder %s3939_s28, 0 }
   0xf   : > { %s3952_s9 = scalar_select %p51_p0, %s3862_s26, %s53_s8  }
  0x10   : > { %p3954_p4 = por %p61_p2, %p60_p1  ;;  %p3023_p6 = scmp.ge.s32.totalorder %s3866_s27, 1 }
  0x11   : > { %4763 = sst [smem:[#allocation18_spill]] %s3952_s9  ;;  %p213_p7 = scmp.lt.s32.totalorder %s3866_s27, 3 }
  0x12   : > { %p3963_p8 = por %p4748_p5, %p66_p3  ;;  %s3868_s13 = smov [#allocation10]  }
  0x13   : > { %p3968_p10 = pnand %p3023_p6, %p213_p7  ;;  %s236_s14 = sshll.u32 %s3868_s13, 4  ;;  %s237_s14 = int_to_ptr.vmem [resolvable:$true] %s236_s14 }
  0x14   : > { %s4765_s11 = scalar_select %p3963_p8, 1, 0 }
  0x15   : > { %s4766_s12 = scalar_select %p3968_p10, 1, 0 }
  0x16   : > { %p3417_p11 = pneg %p3968_p10  ;;  %p3436_p13 = scmp.lt.s32.totalorder %s3866_s27, 2 }
  0x17   : > { %s258_s17 = sand.u32 1, %s3862_s26   ;;  %s4769_s4 = sld [smem:[#allocation20_spill]] }
  0x18   : > { %p3976_p12 = pnand %p3417_p11, %p4748_p5  ;;  %p3985_p0 = pnand %p3436_p13, %p3954_p4 }
  0x1a   : > { %s4767_s15 = scalar_select %p3976_p12, 1, 0 }
  0x1b   : > { %s4768_s18 = scalar_select %p3985_p0, 1, 0 }
  0x1c   : > { %p4754_p2 = pneg %p3976_p12 }
  0x1d   : > { %s3644_s21 = scalar_lea.hbm %s4769_s4, 32768 }
  0x1e   : > { %p3645_p1 = scmp.ne.s32.totalorder %s4769_s4, %s3644_s21  ;;  %p3651_p4 = scmp.lt.u32.totalorder %s3644_s21, %s4769_s4 }
  0x20   : > { %p3647_p3 = pnand %p4754_p2, %p3645_p1 }
  0x22   : > { %p3648_p6 = pneg %p3647_p3 }
  0x24   : > { %p3653_p7 = pnand %p3651_p4, %p3648_p6 }
  0x26   : > { %3656 = shalt.err (!%p3653_p7)
}
  0x27   : > { %s3657_s8 = scalar_lea.vmem %s237_s14, 32768  ;;  %p3665_p5 = scmp.lt.s32.totalorder %s237_s14, %s237_s14 }
  0x28   : > { %p3658_p11 = scmp.ne.s32.totalorder %s237_s14, %s3657_s8  ;;  %p3666_p8 = scmp.lt.s32.totalorder %s3657_s8, %s3657_s8 }
  0x2a   : > { %p3660_p13 = pnand %p3658_p11, %p4754_p2  ;;  %p3667_p10 = por %p3666_p8, %p3665_p5 }
  0x2c   : > { %p3661_p9 = pneg %p3660_p13 }
  0x2e   : > { %p3668_p0 = pnand %p3667_p10, %p3661_p9 }
  0x30   : > { %3671 = shalt.err (!%p3668_p0)
}
  0x31   : > { %s3869_s10 = smov 64   ;;  %s3870_s13 = smov 4  }
  0x32   : > { %3423 = dma.hbm_to_vmem [thread:$0]  (!%p3976_p12), %s4769_s4, 32768, %s237_s14, [#allocation9], %s3869_s10, %s3869_s10, %s3870_s13  }
  0x33   : > { %s3027_s21 = sshll.u32 %s258_s17, 8  ;;  %s3220_s22 = sshll.u32 %s3866_s27, 10 }
  0x34   : > { %s4770_s1 = sld [smem:[#allocation19_spill]]  ;;  %s260_s8 = scalar_lea.vmem [#allocation5], %s3027_s21 }
  0x35   : > { %s267_s16 = sshll.u32 %s260_s8, 4  ;;  %s4771_s9 = sand.u32 1, %s3866_s27   ;;  %s4021_s16 = int_to_ptr.vmem [resolvable:$true] %s267_s16 }
  0x36   : > { %s4025_s29 = scalar_lea.sflag [#allocation6], %s4771_s9  ;;  %p4772_p8 = scmp.ne.s32.totalorder %s4768_s18, 0 }
  0x38   : > { %p4031_p9 = pneg %p4772_p8 }
  0x3a   : > { %s4019_s30 = scalar_lea.hbm %s4770_s1, %s3220_s22  ;;  %s3677_s21 = scalar_lea.hbm %s4770_s1, 8192 }
  0x3b   : > { %s3672_s14 = scalar_lea.hbm %s4019_s30, 4096  ;;  %p3678_p1 = scmp.lt.u32.totalorder %s4019_s30, %s4770_s1 }
  0x3c   : > { %p3673_p5 = scmp.ne.s32.totalorder %s4019_s30, %s3672_s14  ;;  %p3679_p3 = scmp.lt.u32.totalorder %s3677_s21, %s3672_s14 }
  0x3d   : > { %s4773_s13 = scalar_select %p4031_p9, 1, 0 }
  0x3e   : > { %p3675_p10 = pnand %p4031_p9, %p3673_p5  ;;  %p3680_p6 = por %p3679_p3, %p3678_p1 }
  0x3f   : > { %p3681_p4 = scmp.lt.u32.totalorder %s3672_s14, %s4019_s30 }
  0x40   : > { %p3676_p0 = pneg %p3675_p10 }
  0x41   : > { %p3682_p7 = por %p3681_p4, %p3680_p6 }
  0x43   : > { %p3683_p11 = pnand %p3682_p7, %p3676_p0 }
  0x45   : > { %3686 = shalt.err (!%p3683_p11)
}
  0x46   : > { %s3687_s9 = scalar_lea.vmem %s4021_s16, 4096  ;;  %s3871_s24 = smov [#allocation5]  }
  0x47   : > { %p3688_p13 = scmp.ne.s32.totalorder %s4021_s16, %s3687_s9  ;;  %s3692_s8 = sshll.u32 %s3871_s24, 4  ;;  %s3693_s8 = int_to_ptr.vmem [resolvable:$false] %s3692_s8 }
  0x48   : > { %s3694_s19 = scalar_lea.vmem %s3693_s8, 8192  ;;  %p3695_p2 = scmp.lt.s32.totalorder %s4021_s16, %s3693_s8 }
  0x49   : > { %p3690_p5 = pnand %p3688_p13, %p4031_p9  ;;  %p3696_p12 = scmp.lt.s32.totalorder %s3694_s19, %s3687_s9 }
  0x4b   : > { %p3691_p10 = pneg %p3690_p5  ;;  %p3697_p1 = por %p3696_p12, %p3695_p2 }
  0x4d   : > { %p3698_p3 = pnand %p3697_p1, %p3691_p10 }
  0x4f   : > { %3701 = shalt.err (!%p3698_p3)
}
  0x50   : > { %s3872_s14 = smov 2048   ;;  %s3873_s20 = smov 1024  }
  0x51   : > { %3427 = dma.hbm_to_vmem [thread:$0]  (!%p4772_p8), %s4019_s30, 4096, %s4021_s16, %s4025_s29, %s3872_s14, %s3873_s20, %s3869_s10  }
  0x52   : > { %s4058_s21 = sshll.u32 %s258_s17, 4  ;;  %s3874_s22 = smov [#allocation2]  }
  0x53   : > { %s226_s23 = sshll.u32 %s3874_s22, 4  ;;  %s3221_s9 = sshll.u32 %s3866_s27, 8  ;;  %s227_s23 = int_to_ptr.vmem [resolvable:$true] %s226_s23 }
  0x54   : > { %s3702_s19 = scalar_lea.hbm %s4740_s0, 64  ;;  %p4774_p2 = scmp.ne.s32.totalorder %s4767_s15, 0 }
  0x55   : > { %p3703_p12 = scmp.ne.s32.totalorder %s4740_s0, %s3702_s19  ;;  %p3709_p7 = scmp.lt.u32.totalorder %s3702_s19, %s4740_s0 }
  0x56   : > { %p4775_p0 = pneg %p4774_p2 }
  0x58   : > { %p3705_p6 = pnand %p3703_p12, %p4775_p0 }
  0x5a   : > { %p3706_p4 = pneg %p3705_p6 }
  0x5c   : > { %p3711_p11 = pnand %p3709_p7, %p3706_p4 }
  0x5e   : > { %3714 = shalt.err (!%p3711_p11)
}
  0x5f   : > { %s3715_s17 = scalar_lea.vmem %s227_s23, 64  ;;  %p4776_p5 = pmov %p4775_p0 }
  0x60   : > { %p3716_p13 = scmp.ne.s32.totalorder %s227_s23, %s3715_s17  ;;  %p3723_p3 = scmp.lt.s32.totalorder %s227_s23, %s227_s23 }
  0x61   : > { %p3724_p8 = scmp.lt.s32.totalorder %s3715_s17, %s3715_s17 }
  0x62   : > { %p3718_p10 = pnand %p3716_p13, %p4776_p5 }
  0x63   : > { %p3725_p9 = por %p3724_p8, %p3723_p3 }
  0x64   : > { %p3719_p1 = pneg %p3718_p10 }
  0x66   : > { %p3726_p0 = pnand %p3725_p9, %p3719_p1 }
  0x68   : > { %3729 = shalt.err (!%p3726_p0)
}
  0x69   : > { %3420 = dma.hbm_to_vmem [thread:$0]  (!%p4774_p2), %s4740_s0, 64, %s227_s23, [#allocation3]  }
  0x6a   : > { %s4086_s20 = scalar_lea.hbm %s4742_s2, %s3221_s9  ;;  %s281_s22 = scalar_lea.vmem [#allocation7], %s4058_s21 }
  0x6b   : > { %s289_s24 = sshll.u32 %s281_s22, 4  ;;  %s3730_s15 = scalar_lea.hbm %s4086_s20, 256  ;;  %s290_s24 = int_to_ptr.vmem [resolvable:$true] %s289_s24 }
  0x6c   : > { %p3731_p8 = scmp.ne.s32.totalorder %s4086_s20, %s3730_s15  ;;  %p4777_p9 = scmp.ne.s32.totalorder %s4773_s13, 0 }
  0x6d   : > { %s3735_s19 = scalar_lea.hbm %s4742_s2, 512  ;;  %p3736_p2 = scmp.lt.u32.totalorder %s4086_s20, %s4742_s2 }
  0x6e   : > { %p3733_p12 = pnand %p3731_p8, %p4777_p9  ;;  %p3737_p4 = scmp.lt.u32.totalorder %s3735_s19, %s3730_s15 }
  0x6f   : > { %p3739_p11 = scmp.lt.u32.totalorder %s3730_s15, %s4086_s20 }
  0x70   : > { %p3734_p6 = pneg %p3733_p12  ;;  %p3738_p7 = por %p3737_p4, %p3736_p2 }
  0x72   : > { %p3740_p13 = por %p3739_p11, %p3738_p7 }
  0x74   : > { %p3741_p5 = pnand %p3740_p13, %p3734_p6 }
  0x76   : > { %3744 = shalt.err (!%p3741_p5)
}
  0x77   : > { %s3745_s17 = scalar_lea.vmem %s290_s24, 256  ;;  %s3875_s1 = smov [#allocation7]  }
  0x78   : > { %p3746_p10 = scmp.ne.s32.totalorder %s290_s24, %s3745_s17  ;;  %s3750_s4 = sshll.u32 %s3875_s1, 4  ;;  %s3751_s4 = int_to_ptr.vmem [resolvable:$false] %s3750_s4 }
  0x79   : > { %s3752_s30 = scalar_lea.vmem %s3751_s4, 512  ;;  %p3753_p0 = scmp.lt.s32.totalorder %s290_s24, %s3751_s4 }
  0x7a   : > { %p3748_p1 = pnand %p3746_p10, %p4777_p9  ;;  %p3754_p8 = scmp.lt.s32.totalorder %s3752_s30, %s3745_s17 }
  0x7c   : > { %p3749_p3 = pneg %p3748_p1  ;;  %p3755_p12 = por %p3754_p8, %p3753_p0 }
  0x7e   : > { %p3756_p2 = pnand %p3755_p12, %p3749_p3 }
  0x80   : > { %3759 = shalt.err (!%p3756_p2)
}
  0x81   : > { %p4778_p4 = scmp.ne.s32.totalorder %s4768_s18, 0  ;;  %s4112_s15 = scalar_lea.hbm %s4743_s3, %s3221_s9 }
  0x82   : > { %s300_s8 = scalar_lea.vmem [#allocation8], %s4058_s21  ;;  %s4779_s19 = sand.u32 1, %s3866_s27  }
  0x83   : > { %3430 = dma.hbm_to_vmem [thread:$0]  (!%p4778_p4), %s4086_s20, 256, %s290_s24, %s4025_s29  }
  0x84   : > { %s308_s23 = sshll.u32 %s300_s8, 4  ;;  %s297_s16 = scalar_lea.sflag [#allocation9], %s4779_s19  ;;  %s309_s23 = int_to_ptr.vmem [resolvable:$true] %s308_s23 }
  0x85   : > { %s3760_s10 = scalar_lea.hbm %s4112_s15, 256  ;;  %s3765_s24 = scalar_lea.hbm %s4743_s3, 512 }
  0x86   : > { %p3761_p6 = scmp.ne.s32.totalorder %s4112_s15, %s3760_s10  ;;  %p3766_p13 = scmp.lt.u32.totalorder %s4112_s15, %s4743_s3 }
  0x87   : > { %p3767_p5 = scmp.lt.u32.totalorder %s3765_s24, %s3760_s10  ;;  %p3769_p1 = scmp.lt.u32.totalorder %s3760_s10, %s4112_s15 }
  0x88   : > { %p3763_p7 = pnand %p3761_p6, %p4777_p9 }
  0x89   : > { %p3768_p10 = por %p3767_p5, %p3766_p13 }
  0x8a   : > { %p3764_p11 = pneg %p3763_p7 }
  0x8b   : > { %p3770_p3 = por %p3769_p1, %p3768_p10 }
  0x8d   : > { %p3771_p0 = pnand %p3770_p3, %p3764_p11 }
  0x8f   : > { %3774 = shalt.err (!%p3771_p0)
}
  0x90   : > { %s3775_s27 = scalar_lea.vmem %s309_s23, 256  ;;  %s3876_s21 = smov [#allocation8]  }
  0x91   : > { %p3776_p8 = scmp.ne.s32.totalorder %s309_s23, %s3775_s27  ;;  %s3780_s1 = sshll.u32 %s3876_s21, 4  ;;  %s3781_s1 = int_to_ptr.vmem [resolvable:$false] %s3780_s1 }
  0x92   : > { %s3782_s4 = scalar_lea.vmem %s3781_s1, 512  ;;  %p3783_p6 = scmp.lt.s32.totalorder %s309_s23, %s3781_s1 }
  0x93   : > { %p3778_p12 = pnand %p3776_p8, %p4777_p9  ;;  %p3784_p7 = scmp.lt.s32.totalorder %s3782_s4, %s3775_s27 }
  0x95   : > { %p3779_p2 = pneg %p3778_p12  ;;  %p3785_p4 = por %p3784_p7, %p3783_p6 }
  0x97   : > { %p3786_p5 = pnand %p3785_p4, %p3779_p2 }
  0x99   : > { %3789 = shalt.err (!%p3786_p5)
}
  0x9a   : > { %p4780_p13 = scmp.ne.s32.totalorder %s4768_s18, 0  ;;  %p4781_p11 = scmp.ne.s32.totalorder %s4766_s12, 0 }
  0x9b   : > { %p4782_p10 = scmp.eq.s32.totalorder (!%p4781_p11), %s3939_s28, 0 }
  0x9c   : > { %3433 = dma.hbm_to_vmem [thread:$0]  (!%p4780_p13), %s4112_s15, 256, %s309_s23, %s297_s16  }
  0x9d   : > { %317 = sbr.rel (%p4781_p11) target bundleno = 864 (0x360), region = 48 }
  0xa4   : > { %3833 = dma.done.wait (%p4782_p10), [#allocation3], 64   ;;  %p4783_p9 = pmov %p4782_p10 }
  0xa5   : > { %s323_s13 = sand.u32 1, %s3939_s28   ;;  %s325_s30 = sand.u32 1, %s3858_s25  }
  0xa6   : > { %3835 = vsyncadd (%p4783_p9), [#allocation3], 4294967232  ;;  %s3038_s14 = sshll.u32 %s325_s30, 8  ;;  %s324_s22 = scalar_lea.sflag [#allocation6], %s323_s13 }
  0xa7   : > { %s4142_s8 = scalar_lea.vmem [#allocation5], %s3038_s14  ;;  %p4784_p4 = scmp.ne.s32.totalorder %s4765_s11, 0 }
  0xa9   : > { %3837 = dma.done.wait (%p4784_p4), %s324_s22, 4352  }
  0xaa   : > { %3839 = vsyncadd (%p4784_p4), %s324_s22, 4294962944  ;;  %s4148_s12 = sshll.u32 %s325_s30, 4  ;;  %s342_s15 = scalar_lea.sflag [#allocation9], %s323_s13 }
  0xab   : > { %s336_s18 = scalar_lea.vmem [#allocation7], %s4148_s12  ;;  %s345_s23 = scalar_lea.vmem [#allocation8], %s4148_s12 }
  0xac   : > { %3841 = dma.done.wait (%p4784_p4), %s342_s15, 256  }
  0xad   : > { %3843 = vsyncadd (%p4784_p4), %s342_s15, 4294967040  ;;  %p4785_p1 = pmov %p4783_p9 }
  0xaf   : > { %3845 = dma.done.wait (%p4785_p1), [#allocation9], 32768   ;;  %p4786_p3 = pmov %p4785_p1 }
  0xb0   : > { %p4787_p0 = scmp.ne.s32.totalorder %s3939_s28, 0 }
  0xb1   : > { %3847 = vsyncadd (%p4786_p3), [#allocation9], 4294934528  ;;  %v3877_v0 = vmov (!%p4787_p0), 0.0  }
  0xb2   : > { %392 = sbr.rel (%p4787_p0) target bundleno = 185 (0xb9), region = 72  ;;  %393 = vst [vmem:[#allocation11] sm:$0xff] (!%p4787_p0), %v3877_v0 }
  0xb9 PF: > { %v395_v1 = vld [vmem:[%s4142_s8] sm:$0xff]  ;;  %v396_v3 = vld [vmem:[%s4142_s8 + $0x8] sm:$0xff]  ;;  %v3878_v9 = vmov 0   ;;  %v397_v16 = vld [vmem:[%s4142_s8 + $0x10] sm:$0xff]  ;;  %vm587_vm0 = vcmask 261120   ;;  %s3083_s11 = sshll.u32 %s3939_s28, 11 }
  0xba   : > { %v403_v2 = vld [vmem:[%s4142_s8 + $0x40] sm:$0xff]  ;;  %v404_v5 = vld [vmem:[%s4142_s8 + $0x48] sm:$0xff]  ;;  %623 = vmatprep.mubr.bf16.mxu0 %v3878_v9  ;;  %664 = vmatprep.mubr.bf16.mxu1 %v3878_v9  ;;  %v405_v17 = vld [vmem:[%s4142_s8 + $0x50] sm:$0xff]  ;;  %s1488_s19 = sshra.s32 %s3083_s11, 3  ;;  %p3213_p8 = scmp.ne.s32.totalorder %s3939_s28, 1 }
  0xbb   : > { %v3044_v4 = vcombine.high %v395_v1, %v403_v2  ;;  %v3043_v6 = vcombine.low %v395_v1, %v403_v2  ;;  %v411_v7 = vld [vmem:[%s4142_s8 + $0x80] sm:$0xff]  ;;  %v3046_v10 = vcombine.high %v396_v3, %v404_v5  ;;  %v3045_v11 = vcombine.low %v396_v3, %v404_v5  ;;  %v412_v13 = vld [vmem:[%s4142_s8 + $0x88] sm:$0xff]  ;;  %v398_v18 = vld [vmem:[%s4142_s8 + $0x18] sm:$0xff]  ;;  %s3084_s16 = sshll.u32 %s1488_s19, 2 }
  0xbc   : > { %v419_v8 = vld [vmem:[%s4142_s8 + $0xc0] sm:$0xff]  ;;  %v420_v14 = vld [vmem:[%s4142_s8 + $0xc8] sm:$0xff]  ;;  %v406_v20 = vld [vmem:[%s4142_s8 + $0x58] sm:$0xff]  ;;  %v3048_v22 = vcombine.high %v397_v16, %v405_v17  ;;  %v3047_v29 = vcombine.low %v397_v16, %v405_v17  ;;  %s4221_s10 = scalar_lea.vmem [#allocation10], %s3084_s16 }
  0xbd   : > { %v3060_v12 = vcombine.high %v411_v7, %v419_v8  ;;  %591 = vmatprep.subr.bf16.mxu0 %v3044_v4  ;;  %v3062_v15 = vcombine.high %v412_v13, %v420_v14  ;;  %632 = vmatprep.subr.bf16.mxu1 %v3046_v10  ;;  %v3059_v19 = vcombine.low %v411_v7, %v419_v8  ;;  %v413_v24 = vld [vmem:[%s4142_s8 + $0x90] sm:$0xff]  ;;  %v414_v26 = vld [vmem:[%s4142_s8 + $0x98] sm:$0xff]  ;;  %v399_v33 = vld [vmem:[%s4142_s8 + $0x20] sm:$0xff] }
  0xbe   : > { %592 = vmatpush1.bf16.msra.mxu0 %v3043_v6  ;;  %633 = vmatpush1.bf16.msra.mxu1 %v3045_v11  ;;  %v3061_v21 = vcombine.low %v412_v13, %v420_v14  ;;  %v3050_v23 = vcombine.high %v398_v18, %v406_v20  ;;  %v421_v25 = vld [vmem:[%s4142_s8 + $0xd0] sm:$0xff]  ;;  %v422_v27 = vld [vmem:[%s4142_s8 + $0xd8] sm:$0xff]  ;;  %v3049_v30 = vcombine.low %v398_v18, %v406_v20  ;;  %v407_v34 = vld [vmem:[%s4142_s8 + $0x60] sm:$0xff] }
  0xbf   : > { %593 = vmatprep.subr.bf16.mxu0 %v3060_v12  ;;  %634 = vmatprep.subr.bf16.mxu1 %v3062_v15  ;;  %v4180_v28 = vld [vmem:[#allocation2] sm:$0xf]  ;;  %v3064_v31 = vcombine.high %v413_v24, %v421_v25  ;;  %v3066_v32 = vcombine.high %v414_v26, %v422_v27  ;;  %v400_v35 = vld [vmem:[%s4142_s8 + $0x28] sm:$0xff]  ;;  %v3063_v37 = vcombine.low %v413_v24, %v421_v25  ;;  %v415_v41 = vld [vmem:[%s4142_s8 + $0xa0] sm:$0xff] }
  0xc0   : > { %v408_v36 = vld [vmem:[%s4142_s8 + $0x68] sm:$0xff]  ;;  %v3065_v38 = vcombine.low %v414_v26, %v422_v27  ;;  %v3052_v39 = vcombine.high %v399_v33, %v407_v34  ;;  %v423_v42 = vld [vmem:[%s4142_s8 + $0xe0] sm:$0xff]  ;;  %v3051_v45 = vcombine.low %v399_v33, %v407_v34  ;;  %v401_v49 = vld [vmem:[%s4142_s8 + $0x30] sm:$0xff] }
  0xc1   : > { %v3054_v40 = vcombine.high %v400_v35, %v408_v36  ;;  %v416_v43 = vld [vmem:[%s4142_s8 + $0xa8] sm:$0xff]  ;;  %v3053_v46 = vcombine.low %v400_v35, %v408_v36  ;;  %v3068_v47 = vcombine.high %v415_v41, %v423_v42  ;;  %v409_v50 = vld [vmem:[%s4142_s8 + $0x70] sm:$0xff]  ;;  %v402_v51 = vld [vmem:[%s4142_s8 + $0x38] sm:$0xff]  ;;  %v3067_v53 = vcombine.low %v415_v41, %v423_v42 }
  0xc2   : > { %594 = vmatpush1.bf16.msra.mxu0 %v3059_v19  ;;  %635 = vmatpush1.bf16.msra.mxu1 %v3061_v21  ;;  %v424_v44 = vld [vmem:[%s4142_s8 + $0xe8] sm:$0xff]  ;;  %v410_v52 = vld [vmem:[%s4142_s8 + $0x78] sm:$0xff]  ;;  %v3056_v55 = vcombine.high %v401_v49, %v409_v50  ;;  %v417_v57 = vld [vmem:[%s4142_s8 + $0xb0] sm:$0xff]  ;;  %v3055_v61 = vcombine.low %v401_v49, %v409_v50 }
  0xc3   : > { %673 = vmatprep.subr.bf16.mxu0 %v3048_v22  ;;  %714 = vmatprep.subr.bf16.mxu1 %v3050_v23  ;;  %v3070_v48 = vcombine.high %v416_v43, %v424_v44  ;;  %v3069_v54 = vcombine.low %v416_v43, %v424_v44  ;;  %v3058_v56 = vcombine.high %v402_v51, %v410_v52  ;;  %v425_v58 = vld [vmem:[%s4142_s8 + $0xf0] sm:$0xff]  ;;  %v418_v59 = vld [vmem:[%s4142_s8 + $0xb8] sm:$0xff]  ;;  %v3486_v7 = vld [vmem:[%s4221_s10 + $0x48] sm:$0xff]  }
  0xc4   : > { %v426_v60 = vld [vmem:[%s4142_s8 + $0xf8] sm:$0xff]  ;;  %v3057_v62 = vcombine.low %v402_v51, %v410_v52  ;;  %v3072_v63 = vcombine.high %v417_v57, %v425_v58  ;;  %v3071_v1 = vcombine.low %v417_v57, %v425_v58  ;;  %v3487_v8 = vld [vmem:[%s4221_s10 + $0xc8] sm:$0xff]   ;;  %v3490_v11 = vld [vmem:[%s4221_s10 + $0x50] sm:$0xff]  }
  0xc5   : > { %3075 = vmatmul.mubr.msk.bf16.vlgmr.msra.gmra.mrb[0].mxu0 %vm587_vm0, %v4180_v28  ;;  %3076 = vmatmul.mubr.msk.bf16.vlgmr.msra.gmra.mrb[0].mxu1 %vm587_vm0, %v4180_v28  ;;  %v3074_v0 = vcombine.high %v418_v59, %v426_v60  ;;  %v3073_v2 = vcombine.low %v418_v59, %v426_v60  ;;  %v3482_v3 = vld [vmem:[%s4221_s10 + $0x40] sm:$0xff]   ;;  %v3489_v10 = vld [vmem:[%s4221_s10 + $0x88] sm:$0xff]   ;;  %v3491_v12 = vld [vmem:[%s4221_s10 + $0xd0] sm:$0xff]  }
  0xc6   : > { %674 = vmatpush1.bf16.msra.mxu0 %v3047_v29  ;;  %715 = vmatpush1.bf16.msra.mxu1 %v3049_v30  ;;  %v3483_v4 = vld [vmem:[%s4221_s10 + $0xc0] sm:$0xff]   ;;  %v3492_v13 = vld [vmem:[%s4221_s10 + $0x10] sm:$0xff]   ;;  %v3494_v15 = vld [vmem:[%s4221_s10 + $0x58] sm:$0xff]  }
  0xc7   : > { %675 = vmatprep.subr.bf16.mxu0 %v3064_v31  ;;  %716 = vmatprep.subr.bf16.mxu1 %v3066_v32  ;;  %v3484_v5 = vld [vmem:[%s4221_s10] sm:$0xff]   ;;  %v3493_v14 = vld [vmem:[%s4221_s10 + $0x90] sm:$0xff]   ;;  %v3495_v16 = vld [vmem:[%s4221_s10 + $0xd8] sm:$0xff]  }
  0xc8   : > { %705 = vmatprep.mubr.bf16.mxu0 %v3878_v9  ;;  %746 = vmatprep.mubr.bf16.mxu1 %v3878_v9  ;;  %v3485_v6 = vld [vmem:[%s4221_s10 + $0x80] sm:$0xff]   ;;  %v3496_v17 = vld [vmem:[%s4221_s10 + $0x18] sm:$0xff]   ;;  %v3502_v23 = vld [vmem:[%s4221_s10 + $0x68] sm:$0xff]  }
  0xc9   : > { %v3497_v18 = vld [vmem:[%s4221_s10 + $0x98] sm:$0xff]   ;;  %v3498_v19 = vld [vmem:[%s4221_s10 + $0x60] sm:$0xff]   ;;  %v3503_v24 = vld [vmem:[%s4221_s10 + $0xe8] sm:$0xff]  }
  0xca   : > { %676 = vmatpush1.bf16.msra.mxu0 %v3063_v37  ;;  %717 = vmatpush1.bf16.msra.mxu1 %v3065_v38  ;;  %v3499_v20 = vld [vmem:[%s4221_s10 + $0xe0] sm:$0xff]   ;;  %v3504_v25 = vld [vmem:[%s4221_s10 + $0x28] sm:$0xff]   ;;  %v3506_v27 = vld [vmem:[%s4221_s10 + $0x70] sm:$0xff]  }
  0xcb   : > { %755 = vmatprep.subr.bf16.mxu0 %v3052_v39  ;;  %796 = vmatprep.subr.bf16.mxu1 %v3054_v40  ;;  %v3500_v21 = vld [vmem:[%s4221_s10 + $0x20] sm:$0xff]   ;;  %v3505_v26 = vld [vmem:[%s4221_s10 + $0xa8] sm:$0xff]   ;;  %v3508_v29 = vld [vmem:[%s4221_s10 + $0x30] sm:$0xff]  }
  0xcc   : > { %v3501_v22 = vld [vmem:[%s4221_s10 + $0xa0] sm:$0xff]   ;;  %v3509_v30 = vld [vmem:[%s4221_s10 + $0xb0] sm:$0xff]   ;;  %v3510_v31 = vld [vmem:[%s4221_s10 + $0x78] sm:$0xff]  }
  0xcd   : > { %3077 = vmatmul.mubr.msk.bf16.vlgmr.msra.gmra.mrb[4].mxu0 %vm587_vm0, %v4180_v28  ;;  %3078 = vmatmul.mubr.msk.bf16.vlgmr.msra.gmra.mrb[4].mxu1 %vm587_vm0, %v4180_v28  ;;  %v3511_v32 = vld [vmem:[%s4221_s10 + $0xf8] sm:$0xff]   ;;  %v3514_v35 = vld [vmem:[%s4221_s10 + $0x140] sm:$0xff]  }
  0xce   : > { %756 = vmatpush1.bf16.msra.mxu0 %v3051_v45  ;;  %797 = vmatpush1.bf16.msra.mxu1 %v3053_v46  ;;  %v3512_v33 = vld [vmem:[%s4221_s10 + $0x38] sm:$0xff]   ;;  %v3515_v36 = vld [vmem:[%s4221_s10 + $0x1c0] sm:$0xff]  }
  0xcf   : > { %757 = vmatprep.subr.bf16.mxu0 %v3068_v47  ;;  %798 = vmatprep.subr.bf16.mxu1 %v3070_v48  ;;  %v3513_v34 = vld [vmem:[%s4221_s10 + $0xb8] sm:$0xff]  }
  0xd0   : > { %787 = vmatprep.mubr.bf16.mxu0 %v3878_v9  ;;  %828 = vmatprep.mubr.bf16.mxu1 %v3878_v9 }
  0xd2   : > { %758 = vmatpush1.bf16.msra.mxu0 %v3067_v53  ;;  %799 = vmatpush1.bf16.msra.mxu1 %v3069_v54 }
  0xd3   : > { %837 = vmatprep.subr.bf16.mxu0 %v3056_v55  ;;  %878 = vmatprep.subr.bf16.mxu1 %v3058_v56 }
  0xd5   : > { %3079 = vmatmul.mubr.msk.bf16.vlgmr.msra.gmra.mrb[8].mxu0 %vm587_vm0, %v4180_v28  ;;  %3080 = vmatmul.mubr.msk.bf16.vlgmr.msra.gmra.mrb[8].mxu1 %vm587_vm0, %v4180_v28 }
  0xd6   : > { %838 = vmatpush1.bf16.msra.mxu0 %v3055_v61  ;;  %879 = vmatpush1.bf16.msra.mxu1 %v3057_v62 }
  0xd7   : > { %839 = vmatprep.subr.bf16.mxu0 %v3072_v63  ;;  %880 = vmatprep.subr.bf16.mxu1 %v3074_v0 }
  0xd8   : > { %869 = vmatprep.mubr.bf16.mxu0 %v3878_v9  ;;  %910 = vmatprep.mubr.bf16.mxu1 %v3878_v9  ;;  %v3488_v9 = vld [vmem:[%s4221_s10 + $0x8] sm:$0xff]  }
  0xda   : > { %840 = vmatpush1.bf16.msra.mxu0 %v3071_v1  ;;  %881 = vmatpush1.bf16.msra.mxu1 %v3073_v2 }
  0xdb   : > { %3223 = vmatprep.subr.bf16.mxu0 %v3482_v3  ;;  %3245 = vmatprep.subr.bf16.mxu1 %v3483_v4 }
  0xdd   : > { %3081 = vmatmul.mubr.msk.bf16.vlgmr.msra.gmra.mrb[12].mxu0 %vm587_vm0, %v4180_v28  ;;  %3082 = vmatmul.mubr.msk.bf16.vlgmr.msra.gmra.mrb[12].mxu1 %vm587_vm0, %v4180_v28  ;;  %v3507_v28 = vld [vmem:[%s4221_s10 + $0xf0] sm:$0xff]  }
  0xde   : > { %3224 = vmatpush3.bf16.msra.mxu0 %v3484_v5  ;;  %3246 = vmatpush3.bf16.msra.mxu1 %v3485_v6 }
  0xdf   : > { %3225 = vmatprep.subr.bf16.mxu0 %v3486_v7  ;;  %3247 = vmatprep.subr.bf16.mxu1 %v3487_v8 }
  0xe2   : > { %3226 = vmatpush3.bf16.msra.mxu0 %v3488_v9  ;;  %3248 = vmatpush3.bf16.msra.mxu1 %v3489_v10 }
  0xe3   : > { %3227 = vmatprep.subr.bf16.mxu0 %v3490_v11  ;;  %3249 = vmatprep.subr.bf16.mxu1 %v3491_v12 }
  0xe6   : > { %3228 = vmatpush3.bf16.msra.mxu0 %v3492_v13  ;;  %3250 = vmatpush3.bf16.msra.mxu1 %v3493_v14 }
  0xe7   : > { %3229 = vmatprep.subr.bf16.mxu0 %v3494_v15  ;;  %3251 = vmatprep.subr.bf16.mxu1 %v3495_v16 }
  0xea   : > { %3230 = vmatpush3.bf16.msra.mxu0 %v3496_v17  ;;  %3252 = vmatpush3.bf16.msra.mxu1 %v3497_v18 }
  0xeb   : > { %3231 = vmatprep.subr.bf16.mxu0 %v3498_v19  ;;  %3253 = vmatprep.subr.bf16.mxu1 %v3499_v20 }
  0xee   : > { %3232 = vmatpush3.bf16.msra.mxu0 %v3500_v21  ;;  %3254 = vmatpush3.bf16.msra.mxu1 %v3501_v22 }
  0xef   : > { %3233 = vmatprep.subr.bf16.mxu0 %v3502_v23  ;;  %3255 = vmatprep.subr.bf16.mxu1 %v3503_v24 }
  0xf2   : > { %3234 = vmatpush3.bf16.msra.mxu0 %v3504_v25  ;;  %3256 = vmatpush3.bf16.msra.mxu1 %v3505_v26 }
  0xf3   : > { %3235 = vmatprep.subr.bf16.mxu0 %v3506_v27  ;;  %3257 = vmatprep.subr.bf16.mxu1 %v3507_v28 }
  0xf6   : > { %3236 = vmatpush3.bf16.msra.mxu0 %v3508_v29  ;;  %3258 = vmatpush3.bf16.msra.mxu1 %v3509_v30 }
  0xf7   : > { %3237 = vmatprep.subr.bf16.mxu0 %v3510_v31  ;;  %3259 = vmatprep.subr.bf16.mxu1 %v3511_v32 }
  0xfa   : > { %3238 = vmatpush3.bf16.msra.mxu0 %v3512_v33  ;;  %3260 = vmatpush3.bf16.msra.mxu1 %v3513_v34 }
  0xfb   : > { %3267 = vmatprep.subr.bf16.mxu0 %v3514_v35  ;;  %3289 = vmatprep.subr.bf16.mxu1 %v3515_v36 }
 0x198   : > { %v4257_v37 = vpop.f32.mrb[0].mxu0  ;;  %v4262_v40 = vpop.f32.mrb[0].mxu1 }
 0x199   : > { %v919_v38 = vrot.slane %v4257_v37, 4  ;;  %v1015_v39 = vmul.f32 %v4257_v37, %v4257_v37  ;;  %v4264_v41 = vpop.f32.mrb[1].mxu0  ;;  %v931_v42 = vrot.slane %v4262_v40, 4  ;;  %v1017_v43 = vmul.f32 %v4262_v40, %v4262_v40  ;;  %v4272_v46 = vpop.f32.mrb[1].mxu1 }
 0x19a   : > { %v925_v44 = vrot.slane %v4264_v41, 4  ;;  %v1016_v45 = vmul.f32 %v4264_v41, %v4264_v41  ;;  %v629_v47 = vpop.f32.mrb[2].mxu0  ;;  %v937_v50 = vrot.slane %v4272_v46, 4  ;;  %v1018_v51 = vmul.f32 %v4272_v46, %v4272_v46  ;;  %v670_v52 = vpop.f32.mrb[2].mxu1 }
 0x19b   : > { %v920_v48 = vadd.f32 %v919_v38, %v4257_v37  ;;  %v1031_v49 = vrot.slane %v1015_v39, 4  ;;  %v630_v53 = vpop.f32.mrb[3].mxu0  ;;  %v932_v54 = vadd.f32 %v931_v42, %v4262_v40  ;;  %v1043_v55 = vrot.slane %v1017_v43, 4  ;;  %v671_v58 = vpop.f32.mrb[3].mxu1 }
 0x19c   : > { %v926_v56 = vadd.f32 %v925_v44, %v4264_v41  ;;  %v1037_v57 = vrot.slane %v1016_v45, 4  ;;  %v938_v61 = vadd.f32 %v937_v50, %v4272_v46  ;;  %v1049_v62 = vrot.slane %v1018_v51, 4 }
 0x19d   : > { %v921_v59 = vrot.slane %v920_v48, 2  ;;  %v1032_v60 = vadd.f32 %v1031_v49, %v1015_v39  ;;  %v933_v63 = vrot.slane %v932_v54, 2  ;;  %v1044_v0 = vadd.f32 %v1043_v55, %v1017_v43 }
 0x19e   : > { %v927_v1 = vrot.slane %v926_v56, 2  ;;  %v1038_v2 = vadd.f32 %v1037_v57, %v1016_v45  ;;  %v939_v5 = vrot.slane %v938_v61, 2  ;;  %v1050_v6 = vadd.f32 %v1049_v62, %v1018_v51 }
 0x19f   : > { %v922_v3 = vadd.f32 %v921_v59, %v920_v48  ;;  %v1033_v4 = vrot.slane %v1032_v60, 2  ;;  %v934_v7 = vadd.f32 %v933_v63, %v932_v54  ;;  %v1045_v8 = vrot.slane %v1044_v0, 2 }
 0x1a0   : > { %v928_v9 = vadd.f32 %v927_v1, %v926_v56  ;;  %v1039_v10 = vrot.slane %v1038_v2, 2  ;;  %v4281_v11 = vpop.f32.mrb[4].mxu0  ;;  %v940_v14 = vadd.f32 %v939_v5, %v938_v61  ;;  %v1051_v15 = vrot.slane %v1050_v6, 2  ;;  %v4283_v16 = vpop.f32.mrb[4].mxu1 }
 0x1a1   : > { %v923_v12 = vrot.slane %v922_v3, 1  ;;  %v1034_v13 = vadd.f32 %v1033_v4, %v1032_v60  ;;  %v4285_v17 = vpop.f32.mrb[5].mxu0  ;;  %v935_v18 = vrot.slane %v934_v7, 1  ;;  %v1046_v19 = vadd.f32 %v1045_v8, %v1044_v0  ;;  %v4287_v22 = vpop.f32.mrb[5].mxu1 }
 0x1a2   : > { %v929_v20 = vrot.slane %v928_v9, 1  ;;  %v1040_v21 = vadd.f32 %v1039_v10, %v1038_v2  ;;  %v711_v23 = vpop.f32.mrb[6].mxu0  ;;  %v941_v26 = vrot.slane %v940_v14, 1  ;;  %v1052_v27 = vadd.f32 %v1051_v15, %v1050_v6  ;;  %v752_v29 = vpop.f32.mrb[6].mxu1 }
 0x1a3   : > { %v924_v24 = vadd.f32 %v923_v12, %v922_v3  ;;  %v1035_v25 = vrot.slane %v1034_v13, 1  ;;  %v712_v28 = vpop.f32.mrb[7].mxu0  ;;  %v936_v30 = vadd.f32 %v935_v18, %v934_v7  ;;  %v1047_v31 = vrot.slane %v1046_v19, 1  ;;  %v753_v34 = vpop.f32.mrb[7].mxu1 }
 0x1a4   : > { %v930_v32 = vadd.f32 %v929_v20, %v928_v9  ;;  %v1041_v33 = vrot.slane %v1040_v21, 1  ;;  %v942_v38 = vadd.f32 %v941_v26, %v940_v14  ;;  %v1053_v39 = vrot.slane %v1052_v27, 1 }
 0x1a5   : > { %v1036_v35 = vadd.f32 %v1035_v25, %v1034_v13  ;;  %v4289_v36 = vmul.f32 0.125, %v924_v24  ;;  %v1048_v42 = vadd.f32 %v1047_v31, %v1046_v19  ;;  %v4291_v43 = vmul.f32 0.125, %v936_v30 }
 0x1a6   : > { %v1042_v44 = vadd.f32 %v1041_v33, %v1040_v21  ;;  %v4293_v45 = vmul.f32 0.125, %v930_v32  ;;  %v1275_v49 = vlaneseq  ;;  %v1054_v56 = vadd.f32 %v1053_v39, %v1052_v27 }
 0x1a7   : > { %v1143_v47 = vmul.f32 0.125, %v1036_v35  ;;  %v1159_v48 = vmul.f32 %v4289_v36, %v4289_v36  ;;  %v1145_v50 = vmul.f32 0.125, %v1048_v42  ;;  %v1161_v51 = vmul.f32 %v4291_v43, %v4291_v43 }
 0x1a8   : > { %v1144_v52 = vmul.f32 0.125, %v1042_v44  ;;  %v4299_v53 = vpop.f32.mrb[8].mxu0  ;;  %v1160_v55 = vmul.f32 %v4293_v45, %v4293_v45  ;;  %v4305_v58 = vpop.f32.mrb[8].mxu1  ;;  %v4307_v60 = vmul.f32 0.125, %v942_v38  ;;  %v943_v61 = vrot.slane %v4281_v11, 4 }
 0x1a9   : > { %v1175_v54 = vsub.f32 %v1143_v47, %v1159_v48  ;;  %v4303_v57 = vpop.f32.mrb[9].mxu0  ;;  %v1177_v59 = vsub.f32 %v1145_v50, %v1161_v51  ;;  %v1019_v62 = vmul.f32 %v4281_v11, %v4281_v11  ;;  %v4312_v63 = vpop.f32.mrb[9].mxu1  ;;  %v4314_v1 = vshrl.u32 %v1275_v49, 7 }
 0x1aa   : > { %v793_v0 = vpop.f32.mrb[10].mxu0  ;;  %v1176_v2 = vsub.f32 %v1144_v52, %v1160_v55  ;;  %v834_v4 = vpop.f32.mrb[10].mxu1  ;;  %v944_v6 = vadd.f32 %v943_v61, %v4281_v11  ;;  %v955_v8 = vrot.slane %v4283_v16, 4  ;;  %v1021_v12 = vmul.f32 %v4283_v16, %v4283_v16 }
 0x1ab   : > { %v794_v3 = vpop.f32.mrb[11].mxu0  ;;  %v1191_v5 = vmax.f32 %v1175_v54, 0.0  ;;  %v1055_v7 = vrot.slane %v1019_v62, 4  ;;  %v835_v9 = vpop.f32.mrb[11].mxu1  ;;  %v1193_v10 = vmax.f32 %v1177_v59, 0.0  ;;  %v1146_v14 = vmul.f32 0.125, %v1054_v56 }
 0x1ac   : > { %v1192_v13 = vmax.f32 %v1176_v2, 0.0  ;;  %v1162_v15 = vmul.f32 %v4307_v60, %v4307_v60  ;;  %v4323_v18 = vsub.s32 0, %v4314_v1  ;;  %v945_v19 = vrot.slane %v944_v6, 2  ;;  %v4356_v3 = vld [vmem:[%s336_s18] sm:$0xff] }
 0x1ad   : > { %v1056_v20 = vadd.f32 %v1055_v7, %v1019_v62  ;;  %v1223_v21 = vadd.f32 1e-05, %v1191_v5  ;;  %v956_v23 = vadd.f32 %v955_v8, %v4283_v16  ;;  %v1067_v24 = vrot.slane %v1021_v12, 4 }
 0x1ae   : > { %v1225_v26 = vadd.f32 1e-05, %v1193_v10  ;;  %v4329_v27 = vsub.s32 2, %v4314_v1  ;;  %v949_v28 = vrot.slane %v4285_v17, 4  ;;  %v1224_v31 = vadd.f32 1e-05, %v1192_v13 }
 0x1af   : > { %v1178_v32 = vsub.f32 %v1146_v14, %v1162_v15  ;;  %v1020_v33 = vmul.f32 %v4285_v17, %v4285_v17  ;;  %v946_v38 = vadd.f32 %v945_v19, %v944_v6  ;;  %v1057_v39 = vrot.slane %v1056_v20, 2 }
 0x1b0   : > { %v4326_v25 = vpop.f32.mrb[12].mxu0  ;;  %v4334_v30 = vpop.f32.mrb[12].mxu1  ;;  %v950_v42 = vadd.f32 %v949_v28, %v4285_v17  ;;  %v961_v44 = vrot.slane %v4287_v22, 4  ;;  %v4343_v49 = vsub.s32 4, %v4314_v1  ;;  %v957_v50 = vrot.slane %v956_v23, 2 }
 0x1b1   : > { %v4332_v29 = vpop.f32.mrb[13].mxu0  ;;  %v4338_v34 = vpop.f32.mrb[13].mxu1  ;;  %v1068_v51 = vadd.f32 %v1067_v24, %v1021_v12  ;;  %v1061_v52 = vrot.slane %v1020_v33, 4  ;;  %v1022_v59 = vmul.f32 %v4287_v22, %v4287_v22  ;;  %v4349_v61 = vsub.s32 1, %v4314_v1 }
 0x1b2   : > { %v875_v35 = vpop.f32.mrb[14].mxu0  ;;  %v916_v48 = vpop.f32.mrb[14].mxu1  ;;  %v951_v55 = vrot.slane %v950_v42, 2  ;;  %v962_v56 = vadd.f32 %v961_v44, %v4287_v22  ;;  %v1194_v62 = vmax.f32 %v1178_v32, 0.0  ;;  %v4352_v2 = vsub.s32 3, %v4314_v1 }
 0x1b3   : > { %v876_v47 = vpop.f32.mrb[15].mxu0  ;;  %v917_v54 = vpop.f32.mrb[15].mxu1  ;;  %v1062_v0 = vadd.f32 %v1061_v52, %v1020_v33  ;;  %v947_v4 = vrot.slane %v946_v38, 1  ;;  %v1058_v5 = vadd.f32 %v1057_v39, %v1056_v20  ;;  %v958_v8 = vadd.f32 %v957_v50, %v956_v23  ;;  %v4368_v52 = vld [vmem:[%s345_s23] sm:$0xff] }
 0x1b4   : > { %v952_v6 = vadd.f32 %v951_v55, %v950_v42  ;;  %v963_v7 = vrot.slane %v962_v56, 2  ;;  %v1069_v9 = vrot.slane %v1068_v51, 2  ;;  %v1073_v10 = vrot.slane %v1022_v59, 4 }
 0x1b5   : > { %v1063_v13 = vrot.slane %v1062_v0, 2  ;;  %v1278_v15 = vrot.slane %v4356_v3, %v4323_v18  ;;  %v1286_v19 = vrot.slane %v4356_v3, %v4329_v27  ;;  %v948_v24 = vadd.f32 %v947_v4, %v946_v38 }
 0x1b6   : > { %v953_v12 = vrot.slane %v952_v6, 1  ;;  %v964_v14 = vadd.f32 %v963_v7, %v962_v56  ;;  %v1059_v28 = vrot.slane %v1058_v5, 1  ;;  %v959_v20 = vrot.slane %v958_v8, 1 }
 0x1b7   : > { %v1064_v33 = vadd.f32 %v1063_v13, %v1062_v0  ;;  %v1070_v35 = vadd.f32 %v1069_v9, %v1068_v51  ;;  %v1282_v23 = vrot.slane %v4356_v3, %v4349_v61  ;;  %3610 = vrsqrt.f32 %v1223_v21 }
 0x1b8   : > { %v954_v32 = vadd.f32 %v953_v12, %v952_v6  ;;  %v965_v39 = vrot.slane %v964_v14, 1  ;;  %v1226_v42 = vadd.f32 1e-05, %v1194_v62  ;;  %3612 = vrsqrt.f32 %v1225_v26 }
 0x1b9   : > { %v1065_v44 = vrot.slane %v1064_v33, 1  ;;  %v1074_v50 = vadd.f32 %v1073_v10, %v1022_v59  ;;  %v1290_v38 = vrot.slane %v4356_v3, %v4352_v2  ;;  %v1060_v54 = vadd.f32 %v1059_v28, %v1058_v5 }
 0x1ba   : > { %v4364_v47 = vmul.f32 0.125, %v954_v32  ;;  %v966_v48 = vadd.f32 %v965_v39, %v964_v14  ;;  %v4372_v51 = vmul.f32 0.125, %v948_v24  ;;  %3614 = vrsqrt.f32 %v1224_v31 }
 0x1bb   : > { %v1066_v55 = vadd.f32 %v1065_v44, %v1064_v33  ;;  %v960_v56 = vadd.f32 %v959_v20, %v958_v8  ;;  %v1071_v62 = vrot.slane %v1070_v35, 1  ;;  %v1075_v0 = vrot.slane %v1074_v50, 2 }
 0x1bc   : > { %v1164_v21 = vmul.f32 %v4364_v47, %v4364_v47  ;;  %3616 = vrsqrt.f32 %v1226_v42  ;;  %v973_v59 = vrot.slane %v4303_v57, 4  ;;  %v1382_v4 = vrot.slane %v4368_v52, %v4349_v61 }
 0x1bd   : > { %v1148_v26 = vmul.f32 0.125, %v1066_v55  ;;  %v1076_v6 = vadd.f32 %v1075_v0, %v1074_v50  ;;  %v4379_v7 = vmul.f32 0.125, %v966_v48  ;;  %v1390_v5 = vrot.slane %v4368_v52, %v4352_v2 }
 0x1be   : > { %v4384_v9 = vsub.s32 5, %v4314_v1  ;;  %v1147_v31 = vmul.f32 0.125, %v1060_v54  ;;  %v1163_v8 = vmul.f32 %v4372_v51, %v4372_v51  ;;  %v974_v12 = vadd.f32 %v973_v59, %v4303_v57 }
 0x1bf   : > { %v1180_v10 = vsub.f32 %v1148_v26, %v1164_v21  ;;  %v1072_v13 = vadd.f32 %v1071_v62, %v1070_v35  ;;  %v4389_v14 = vmul.f32 0.125, %v960_v56  ;;  %v1077_v24 = vrot.slane %v1076_v6, 1 }
 0x1c0   : > { %v1024_v28 = vmul.f32 %v4303_v57, %v4303_v57  ;;  %v975_v33 = vrot.slane %v974_v12, 2  ;;  %v1378_v20 = vrot.slane %v4368_v52, %v4323_v18  ;;  %v1166_v44 = vmul.f32 %v4379_v7, %v4379_v7 }
 0x1c1   : > { %v1196_v32 = vmax.f32 %v1180_v10, 0.0  ;;  %v1078_v42 = vadd.f32 %v1077_v24, %v1076_v6  ;;  %v4400_v35 = vsub.s32 7, %v4314_v1  ;;  %v3611_v50 = vpop.eup %3610  ;;  %v1207_v54 = vsub.f32 %v4257_v37, %v4289_v36 }
 0x1c2   : > { %v1085_v48 = vrot.slane %v1024_v28, 4  ;;  %v1179_v55 = vsub.f32 %v1147_v31, %v1163_v8  ;;  %v976_v56 = vadd.f32 %v975_v33, %v974_v12  ;;  %v3613_v62 = vpop.eup %3612  ;;  %v1149_v0 = vmul.f32 0.125, %v1072_v13 }
 0x1c3   : > { %v1228_v21 = vadd.f32 1e-05, %v1196_v32  ;;  %v1165_v26 = vmul.f32 %v4389_v14, %v4389_v14  ;;  %v1150_v59 = vmul.f32 0.125, %v1078_v42  ;;  %v1209_v10 = vsub.f32 %v4262_v40, %v4291_v43 }
 0x1c4   : > { %v1086_v6 = vadd.f32 %v1085_v48, %v1024_v28  ;;  %v1208_v24 = vsub.f32 %v4264_v41, %v4293_v45  ;;  %v1210_v39 = vsub.f32 %v4272_v46, %v4307_v60  ;;  %v977_v37 = vrot.slane %v976_v56, 1  ;;  %v3615_v36 = vpop.eup %3614 }
 0x1c5   : > { %v1255_v31 = vmul.f32 %v3611_v50, %v1207_v54  ;;  %v1182_v8 = vsub.f32 %v1150_v59, %v1166_v44  ;;  %v967_v12 = vrot.slane %v4299_v53, 4  ;;  %v1257_v33 = vmul.f32 %v3613_v62, %v1209_v10 }
 0x1c6   : > { %v1087_v13 = vrot.slane %v1086_v6, 2  ;;  %v3617_v32 = vpop.eup %3616  ;;  %v1195_v42 = vmax.f32 %v1179_v55, 0.0  ;;  %3618 = vrsqrt.f32 %v1228_v21  ;;  %v978_v28 = vadd.f32 %v977_v37, %v976_v56 }
 0x1c7   : > { %v1181_v48 = vsub.f32 %v1149_v0, %v1165_v26  ;;  %v1198_v40 = vmax.f32 %v1182_v8, 0.0  ;;  %v1023_v41 = vmul.f32 %v4299_v53, %v4299_v53  ;;  %v1256_v45 = vmul.f32 %v3615_v36, %v1208_v24 }
 0x1c8   : > { %v1088_v43 = vadd.f32 %v1087_v13, %v1086_v6  ;;  %v1298_v46 = vrot.slane %v4356_v3, %v4384_v9  ;;  %v1398_v60 = vrot.slane %v4368_v52, %v4384_v9  ;;  %v1306_v44 = vrot.slane %v4356_v3, %v4400_v35 }
 0x1c9   : > { %v1258_v50 = vmul.f32 %v3617_v32, %v1210_v39  ;;  %v1230_v54 = vadd.f32 1e-05, %v1198_v40  ;;  %v968_v55 = vadd.f32 %v967_v12, %v4299_v53  ;;  %v4422_v21 = vmul.f32 0.125, %v978_v28 }
 0x1ca   : > { %v1355_v56 = vmul.f32 %v1278_v15, %v1255_v31  ;;  %v1357_v62 = vmul.f32 %v1286_v19, %v1257_v33  ;;  %v1089_v0 = vrot.slane %v1088_v43, 1  ;;  %v1406_v26 = vrot.slane %v4368_v52, %v4400_v35 }
 0x1cb   : > { %v1227_v59 = vadd.f32 1e-05, %v1195_v42  ;;  %v1197_v6 = vmax.f32 %v1181_v48, 0.0  ;;  %3620 = vrsqrt.f32 %v1230_v54  ;;  %v1079_v39 = vrot.slane %v1023_v41, 4 }
 0x1cc   : > { %v1090_v10 = vadd.f32 %v1089_v0, %v1088_v43  ;;  %v1025_v24 = vmul.f32 %v4305_v58, %v4305_v58  ;;  %v985_v37 = vrot.slane %v4312_v63, 4  ;;  %v1026_v15 = vmul.f32 %v4312_v63, %v4312_v63 }
 0x1cd   : > { %v969_v36 = vrot.slane %v968_v55, 2  ;;  %v1168_v19 = vmul.f32 %v4422_v21, %v4422_v21  ;;  %v1356_v31 = vmul.f32 %v1282_v23, %v1256_v45  ;;  %v1358_v8 = vmul.f32 %v1290_v38, %v1258_v50 }
 0x1ce   : > { %v1152_v12 = vmul.f32 0.125, %v1090_v10  ;;  %v979_v13 = vrot.slane %v4305_v58, 4  ;;  %v986_v32 = vadd.f32 %v985_v37, %v4312_v63  ;;  %v1097_v33 = vrot.slane %v1026_v15, 4 }
 0x1cf   : > { %3622 = vrsqrt.f32 %v1227_v59  ;;  %v1229_v42 = vadd.f32 1e-05, %v1197_v6  ;;  %v1212_v28 = vsub.f32 %v4285_v17, %v4364_v47  ;;  %v1214_v48 = vsub.f32 %v4287_v22, %v4379_v7 }
 0x1d0   : > { %v3619_v40 = vpop.eup %3618  ;;  %v1080_v23 = vadd.f32 %v1079_v39, %v1023_v41  ;;  %v1091_v43 = vrot.slane %v1025_v24, 4  ;;  %v987_v45 = vrot.slane %v986_v32, 2  ;;  %v1098_v54 = vadd.f32 %v1097_v33, %v1026_v15 }
 0x1d1   : > { %v1184_v38 = vsub.f32 %v1152_v12, %v1168_v19  ;;  %v1456_v50 = vadd.f32 %v1382_v4, %v1356_v31  ;;  %v1458_v0 = vadd.f32 %v1390_v5, %v1358_v8  ;;  %v1455_v17 = vadd.f32 %v1378_v20, %v1355_v56  ;;  %v3516_v8 = vld [vmem:[%s4221_s10 + $0x100] sm:$0xff]  }
 0x1d2   : > { %v970_v47 = vadd.f32 %v969_v36, %v968_v55  ;;  %v980_v22 = vadd.f32 %v979_v13, %v4305_v58  ;;  %v988_v7 = vadd.f32 %v987_v45, %v986_v32  ;;  %v1099_v41 = vrot.slane %v1098_v54, 2 }
 0x1d3   : > { %v1260_v59 = vmul.f32 %v3619_v40, %v1212_v28  ;;  %v1472_v6 = vmax.f32 %v1456_v50, 0.0  ;;  %v1474_v39 = vmax.f32 %v1458_v0, 0.0  ;;  %v1471_v10 = vmax.f32 %v1455_v17, 0.0  ;;  %v3518_v28 = vld [vmem:[%s4221_s10 + $0x148] sm:$0xff]  }
 0x1d4   : > { %v1081_v4 = vrot.slane %v1080_v23, 2  ;;  %v989_v37 = vrot.slane %v988_v7, 1  ;;  %v1100_v15 = vadd.f32 %v1099_v41, %v1098_v54  ;;  %v4788_v5 = vrot.slane %v4368_v52, %v4329_v27  ;;  %v3519_v41 = vld [vmem:[%s4221_s10 + $0x1c8] sm:$0xff]  }
 0x1d5   : > { %v3621_v31 = vpop.eup %3620  ;;  %v1200_v20 = vmax.f32 %v1184_v38, 0.0  ;;  %v1092_v55 = vadd.f32 %v1091_v43, %v1025_v24  ;;  %v1750_v56 = vpack.c.bf16 %v1472_v6, %v1472_v6  ;;  %v1752_v36 = vpack.c.bf16 %v1474_v39, %v1474_v39  ;;  %v3520_v6 = vld [vmem:[%s4221_s10 + $0x108] sm:$0xff]  }
 0x1d6   : > { %v1457_v19 = vadd.f32 %v4788_v5, %v1357_v62  ;;  %v1262_v12 = vmul.f32 %v3621_v31, %v1214_v48  ;;  %v990_v13 = vadd.f32 %v989_v37, %v988_v7  ;;  %v1101_v32 = vrot.slane %v1100_v15, 1  ;;  %v3517_v48 = vld [vmem:[%s4221_s10 + $0x180] sm:$0xff]   ;;  %v3521_v31 = vld [vmem:[%s4221_s10 + $0x188] sm:$0xff]  }
 0x1d7   : > { %v1749_v33 = vpack.c.bf16 %v1471_v10, %v1471_v10  ;;  %v971_v40 = vrot.slane %v970_v47, 1  ;;  %v981_v45 = vrot.slane %v980_v22, 2  ;;  %2565 = vmatprep.mubr.bf16.mxu0 %v1750_v56  ;;  %2605 = vmatprep.mubr.bf16.mxu1 %v1752_v36  ;;  %v1360_v62 = vmul.f32 %v1298_v46, %v1260_v59 }
 0x1d8   : > { %v1473_v54 = vmax.f32 %v1457_v19, 0.0  ;;  %v1082_v24 = vadd.f32 %v1081_v4, %v1080_v23  ;;  %v1102_v43 = vadd.f32 %v1101_v32, %v1100_v15  ;;  %v4469_v38 = vmul.f32 0.125, %v990_v13  ;;  %v3526_v32 = vld [vmem:[%s4221_s10 + $0x158] sm:$0xff]  }
 0x1d9   : > { %2566 = vmatmul.mubr.bf16.vlgmr.msra.gmra.mrb[16].mxu0 %v1749_v33  ;;  %v1362_v50 = vmul.f32 %v1306_v44, %v1262_v12  ;;  %v4475_v0 = vpop.eup %3622  ;;  %v1093_v17 = vrot.slane %v1092_v55, 2  ;;  %v1460_v46 = vadd.f32 %v1398_v60, %v1360_v62  ;;  %v997_v23 = vrot.slane %v4332_v29, 4  ;;  %v3522_v44 = vld [vmem:[%s4221_s10 + $0x150] sm:$0xff]  }
 0x1da   : > { %v1751_v7 = vpack.c.bf16 %v1473_v54, %v1473_v54  ;;  %3268 = vmatpush3.bf16.msra.mxu0 %v3516_v8  ;;  %v1232_v59 = vadd.f32 1e-05, %v1200_v20  ;;  %v1154_v39 = vmul.f32 0.125, %v1102_v43  ;;  %v1170_v10 = vmul.f32 %v4469_v38, %v4469_v38  ;;  %v3525_v54 = vld [vmem:[%s4221_s10 + $0x190] sm:$0xff]  }
 0x1db   : > { %3269 = vmatprep.subr.bf16.mxu0 %v3518_v28  ;;  %v1462_v4 = vadd.f32 %v1406_v26, %v1362_v50  ;;  %3624 = vrsqrt.f32 %v1229_v42  ;;  %v972_v37 = vadd.f32 %v971_v40, %v970_v47  ;;  %v1476_v60 = vmax.f32 %v1460_v46, 0.0  ;;  %v3523_v42 = vld [vmem:[%s4221_s10 + $0x1d0] sm:$0xff]   ;;  %v3527_v50 = vld [vmem:[%s4221_s10 + $0x1d8] sm:$0xff]   ;;  %v3530_v46 = vld [vmem:[%s4221_s10 + $0x160] sm:$0xff]  }
 0x1dc   : > { %2606 = vmatmul.mubr.bf16.vlgmr.msra.gmra.mrb[16].mxu1 %v1751_v7  ;;  %v998_v15 = vadd.f32 %v997_v23, %v4332_v29  ;;  %v982_v5 = vadd.f32 %v981_v45, %v980_v22  ;;  %v1186_v19 = vsub.f32 %v1154_v39, %v1170_v10  ;;  %v1028_v56 = vmul.f32 %v4332_v29, %v4332_v29  ;;  %v3524_v47 = vld [vmem:[%s4221_s10 + $0x110] sm:$0xff]  }
 0x1dd   : > { %3290 = vmatpush3.bf16.msra.mxu1 %v3517_v48  ;;  %v1478_v20 = vmax.f32 %v1462_v4, 0.0  ;;  %v1083_v36 = vrot.slane %v1082_v24, 1  ;;  %v1094_v8 = vadd.f32 %v1093_v17, %v1092_v55  ;;  %v1754_v26 = vpack.c.bf16 %v1476_v60, %v1476_v60  ;;  %v3528_v17 = vld [vmem:[%s4221_s10 + $0x118] sm:$0xff]  }
 0x1de   : > { %3291 = vmatprep.subr.bf16.mxu1 %v3519_v41  ;;  %3270 = vmatpush3.bf16.msra.mxu0 %v3520_v6  ;;  %v999_v12 = vrot.slane %v998_v15, 2  ;;  %3626 = vrsqrt.f32 %v1232_v59  ;;  %v1202_v13 = vmax.f32 %v1186_v19, 0.0  ;;  %v1109_v33 = vrot.slane %v1028_v56, 4  ;;  %v4508_v41 = vld [vmem:[%s336_s18 + $0x8] sm:$0xff] }
 0x1df   : > { %3271 = vmatprep.subr.bf16.mxu0 %v3522_v44  ;;  %v1756_v22 = vpack.c.bf16 %v1478_v20, %v1478_v20  ;;  %v4497_v28 = vsub.s32 6, %v4314_v1  ;;  %2645 = vmatprep.mubr.bf16.mxu0 %v1754_v26  ;;  %v983_v40 = vrot.slane %v982_v5, 1  ;;  %v1084_v43 = vadd.f32 %v1083_v36, %v1082_v24  ;;  %v4513_v24 = vld [vmem:[%s345_s23 + $0x8] sm:$0xff] }
 0x1e0   : > { %v1000_v55 = vadd.f32 %v999_v12, %v998_v15  ;;  %v1234_v45 = vadd.f32 1e-05, %v1202_v13  ;;  %v1110_v62 = vadd.f32 %v1109_v33, %v1028_v56  ;;  %v4500_v48 = vmul.f32 0.125, %v972_v37  ;;  %v3529_v60 = vld [vmem:[%s4221_s10 + $0x198] sm:$0xff]   ;;  %v3531_v56 = vld [vmem:[%s4221_s10 + $0x1e0] sm:$0xff]  }
 0x1e1   : > { %3292 = vmatpush3.bf16.msra.mxu1 %v3521_v31  ;;  %2685 = vmatprep.mubr.bf16.mxu1 %v1756_v22  ;;  %v1294_v7 = vrot.slane %v4356_v3, %v4343_v49  ;;  %v1095_v6 = vrot.slane %v1094_v8, 1  ;;  %v1302_v59 = vrot.slane %v4356_v3, %v4497_v28  ;;  %v1394_v10 = vrot.slane %v4368_v52, %v4343_v49  ;;  %v3532_v36 = vld [vmem:[%s4221_s10 + $0x120] sm:$0xff]  }
 0x1e2   : > { %3293 = vmatprep.subr.bf16.mxu1 %v3523_v42  ;;  %3272 = vmatpush3.bf16.msra.mxu0 %v3524_v47  ;;  %v1001_v1 = vrot.slane %v1000_v55, 1  ;;  %3628 = vrsqrt.f32 %v1234_v45  ;;  %v1111_v23 = vrot.slane %v1110_v62, 2  ;;  %v1402_v44 = vrot.slane %v4368_v52, %v4497_v28  ;;  %v3534_v47 = vld [vmem:[%s4221_s10 + $0x168] sm:$0xff]  }
 0x1e3   : > { %3273 = vmatprep.subr.bf16.mxu0 %v3526_v32  ;;  %v1211_v4 = vsub.f32 %v4281_v11, %v4372_v51  ;;  %v984_v37 = vadd.f32 %v983_v40, %v982_v5  ;;  %v1009_v19 = vrot.slane %v4338_v34, 4  ;;  %v1151_v3 = vmul.f32 0.125, %v1084_v43  ;;  %v3536_v43 = vld [vmem:[%s4221_s10 + $0x128] sm:$0xff]  }
 0x1e4   : > { %v1002_v39 = vadd.f32 %v1001_v1, %v1000_v55  ;;  %v1112_v15 = vadd.f32 %v1111_v23, %v1110_v62  ;;  %v1167_v20 = vmul.f32 %v4500_v48, %v4500_v48  ;;  %v1314_v11 = vrot.slane %v4508_v41, %v4349_v61  ;;  %v3533_v55 = vld [vmem:[%s4221_s10 + $0x1a0] sm:$0xff]  }
 0x1e5   : > { %3294 = vmatpush3.bf16.msra.mxu1 %v3525_v54  ;;  %v3625_v31 = vpop.eup %3624  ;;  %v1414_v51 = vrot.slane %v4513_v24, %v4349_v61  ;;  %v1259_v5 = vmul.f32 %v4475_v0, %v1211_v4  ;;  %v1096_v26 = vadd.f32 %v1095_v6, %v1094_v8  ;;  %v1010_v12 = vadd.f32 %v1009_v19, %v4338_v34  ;;  %v3538_v6 = vld [vmem:[%s4221_s10 + $0x170] sm:$0xff]   ;;  %v3545_v61 = vld [vmem:[%s4221_s10 + $0x1b8] sm:$0xff]  }
 0x1e6   : > { %3295 = vmatprep.subr.bf16.mxu1 %v3527_v50  ;;  %3274 = vmatpush3.bf16.msra.mxu0 %v3528_v17  ;;  %v1113_v42 = vrot.slane %v1112_v15, 1  ;;  %v1213_v13 = vsub.f32 %v4283_v16, %v4389_v14  ;;  %v1216_v22 = vsub.f32 %v4303_v57, %v4422_v21  ;;  %v4540_v32 = vmul.f32 0.125, %v1002_v39  ;;  %v3535_v21 = vld [vmem:[%s4221_s10 + $0x1e8] sm:$0xff]  }
 0x1e7   : > { %3275 = vmatprep.subr.bf16.mxu0 %v3530_v46  ;;  %v1030_v33 = vmul.f32 %v4338_v34, %v4338_v34  ;;  %v4544_v8 = vmul.f32 0.125, %v984_v37  ;;  %v1011_v45 = vrot.slane %v1010_v12, 2  ;;  %v1322_v16 = vrot.slane %v4508_v41, %v4352_v2 }
 0x1e8   : > { %v3627_v0 = vpop.eup %3626  ;;  %v1114_v40 = vadd.f32 %v1113_v42, %v1112_v15  ;;  %v1261_v14 = vmul.f32 %v3625_v31, %v1213_v13  ;;  %v1183_v54 = vsub.f32 %v1151_v3, %v1167_v20  ;;  %v1218_v57 = vsub.f32 %v4312_v63, %v4469_v38  ;;  %v3537_v15 = vld [vmem:[%s4221_s10 + $0x1a8] sm:$0xff]  }
 0x1e9   : > { %3296 = vmatpush3.bf16.msra.mxu1 %v3529_v60  ;;  %v1121_v62 = vrot.slane %v1030_v33, 4  ;;  %v1359_v50 = vmul.f32 %v1294_v7, %v1259_v5  ;;  %v1153_v17 = vmul.f32 0.125, %v1096_v26  ;;  %v1012_v1 = vadd.f32 %v1011_v45, %v1010_v12 }
 0x1ea   : > { %3297 = vmatprep.subr.bf16.mxu1 %v3531_v56  ;;  %3276 = vmatpush3.bf16.msra.mxu0 %v3532_v36  ;;  %v1422_v46 = vrot.slane %v4513_v24, %v4352_v2  ;;  %v1264_v23 = vmul.f32 %v3627_v0, %v1216_v22  ;;  %v1156_v39 = vmul.f32 0.125, %v1114_v40  ;;  %v1172_v63 = vmul.f32 %v4540_v32, %v4540_v32  ;;  %v3539_v56 = vld [vmem:[%s4221_s10 + $0x1f0] sm:$0xff]  }
 0x1eb   : > { %3277 = vmatprep.subr.bf16.mxu0 %v3534_v47  ;;  %v1122_v38 = vadd.f32 %v1121_v62, %v1030_v33  ;;  %v1169_v7 = vmul.f32 %v4544_v8, %v4544_v8  ;;  %v991_v37 = vrot.slane %v4326_v25, 4  ;;  %v1027_v60 = vmul.f32 %v4326_v25, %v4326_v25  ;;  %v3540_v36 = vld [vmem:[%s4221_s10 + $0x130] sm:$0xff]   ;;  %v3542_v47 = vld [vmem:[%s4221_s10 + $0x178] sm:$0xff]  }
 0x1ec   : > { %v3629_v4 = vpop.eup %3628  ;;  %v1013_v2 = vrot.slane %v1012_v1, 1  ;;  %v1361_v19 = vmul.f32 %v1302_v59, %v1261_v14  ;;  %v1199_v31 = vmax.f32 %v1183_v54, 0.0  ;;  %v1003_v5 = vrot.slane %v4334_v30, 4  ;;  %v3541_v14 = vld [vmem:[%s4221_s10 + $0x1b0] sm:$0xff]  }
 0x1ed   : > { %3298 = vmatpush3.bf16.msra.mxu1 %v3533_v55  ;;  %v1266_v3 = vmul.f32 %v3629_v4, %v1218_v57  ;;  %v1123_v20 = vrot.slane %v1122_v38, 2  ;;  %v1029_v26 = vmul.f32 %v4334_v30, %v4334_v30  ;;  %v1459_v59 = vadd.f32 %v1394_v10, %v1359_v50  ;;  %v3543_v57 = vld [vmem:[%s4221_s10 + $0x1f8] sm:$0xff]  }
 0x1ee   : > { %3299 = vmatprep.subr.bf16.mxu1 %v3535_v21  ;;  %3278 = vmatpush3.bf16.msra.mxu0 %v3536_v43  ;;  %v1014_v42 = vadd.f32 %v1013_v2, %v1012_v1  ;;  %v1188_v12 = vsub.f32 %v1156_v39, %v1172_v63  ;;  %v1364_v22 = vmul.f32 %v1314_v11, %v1264_v23  ;;  %v1103_v40 = vrot.slane %v1027_v60, 4  ;;  %v3544_v21 = vld [vmem:[%s4221_s10 + $0x138] sm:$0xff]  }
 0x1ef   : > { %3279 = vmatprep.subr.bf16.mxu0 %v3538_v6  ;;  %v1124_v13 = vadd.f32 %v1123_v20, %v1122_v38  ;;  %v1366_v33 = vmul.f32 %v1322_v16, %v1266_v3  ;;  %v1185_v0 = vsub.f32 %v1153_v17, %v1169_v7  ;;  %v992_v55 = vadd.f32 %v991_v37, %v4326_v25  ;;  %v3546_v17 = vld [vmem:[%s4221_s10 + $0x240] sm:$0xff]  }
 0x1f0   : > { %v4574_v45 = vmul.f32 0.125, %v1014_v42  ;;  %v1461_v10 = vadd.f32 %v1402_v44, %v1361_v19  ;;  %v1464_v11 = vadd.f32 %v1414_v51, %v1364_v22  ;;  %v1004_v62 = vadd.f32 %v1003_v5, %v4334_v30  ;;  %v3547_v7 = vld [vmem:[%s4221_s10 + $0x2c0] sm:$0xff]   ;;  %v3550_v19 = vld [vmem:[%s4221_s10 + $0x248] sm:$0xff]  }
 0x1f1   : > { %3300 = vmatpush3.bf16.msra.mxu1 %v3537_v15  ;;  %v1125_v54 = vrot.slane %v1124_v13, 1  ;;  %v1466_v16 = vadd.f32 %v1422_v46, %v1366_v33  ;;  %v1115_v43 = vrot.slane %v1029_v26, 4  ;;  %v1475_v50 = vmax.f32 %v1459_v59, 0.0  ;;  %v3548_v37 = vld [vmem:[%s4221_s10 + $0x200] sm:$0xff]   ;;  %v3552_v22 = vld [vmem:[%s4221_s10 + $0x208] sm:$0xff]  }
 0x1f2   : > { %3301 = vmatprep.subr.bf16.mxu1 %v3539_v56  ;;  %3280 = vmatpush3.bf16.msra.mxu0 %v3540_v36  ;;  %v1204_v1 = vmax.f32 %v1188_v12, 0.0  ;;  %v1174_v52 = vmul.f32 %v4574_v45, %v4574_v45  ;;  %v1480_v23 = vmax.f32 %v1464_v11, 0.0  ;;  %v1231_v44 = vadd.f32 1e-05, %v1199_v31  ;;  %v3549_v36 = vld [vmem:[%s4221_s10 + $0x280] sm:$0xff]  }
 0x1f3   : > { %3281 = vmatprep.subr.bf16.mxu0 %v3542_v47  ;;  %v1126_v6 = vadd.f32 %v1125_v54, %v1124_v13  ;;  %v1201_v39 = vmax.f32 %v1185_v0, 0.0  ;;  %v1482_v51 = vmax.f32 %v1466_v16, 0.0  ;;  %v993_v46 = vrot.slane %v992_v55, 2  ;;  %v3551_v13 = vld [vmem:[%s4221_s10 + $0x2c8] sm:$0xff]  }
 0x1f4   : > { %v1104_v63 = vadd.f32 %v1103_v40, %v1027_v60  ;;  %v1477_v4 = vmax.f32 %v1461_v10, 0.0  ;;  %v1753_v2 = vpack.c.bf16 %v1475_v50, %v1475_v50  ;;  %v1758_v15 = vpack.c.bf16 %v1480_v23, %v1480_v23  ;;  %v3558_v10 = vld [vmem:[%s4221_s10 + $0x258] sm:$0xff]   ;;  %v3562_v23 = vld [vmem:[%s4221_s10 + $0x260] sm:$0xff]  }
 0x1f5   : > { %3302 = vmatpush3.bf16.msra.mxu1 %v3541_v14  ;;  %v1158_v38 = vmul.f32 0.125, %v1126_v6  ;;  %v1236_v3 = vadd.f32 1e-05, %v1204_v1  ;;  %v1005_v31 = vrot.slane %v1004_v62, 2  ;;  %v1116_v20 = vadd.f32 %v1115_v43, %v1029_v26  ;;  %v3554_v26 = vld [vmem:[%s4221_s10 + $0x250] sm:$0xff]   ;;  %v3560_v1 = vld [vmem:[%s4221_s10 + $0x218] sm:$0xff]  }
 0x1f6   : > { %3303 = vmatprep.subr.bf16.mxu1 %v3543_v57  ;;  %3282 = vmatpush3.bf16.msra.mxu0 %v3544_v21  ;;  %3630 = vrsqrt.f32 %v1231_v44  ;;  %v1233_v60 = vadd.f32 1e-05, %v1201_v39  ;;  %v1760_v5 = vpack.c.bf16 %v1482_v51, %v1482_v51  ;;  %v994_v42 = vadd.f32 %v993_v46, %v992_v55  ;;  %v3553_v55 = vld [vmem:[%s4221_s10 + $0x288] sm:$0xff]   ;;  %v3555_v57 = vld [vmem:[%s4221_s10 + $0x2d0] sm:$0xff]   ;;  %v3561_v46 = vld [vmem:[%s4221_s10 + $0x298] sm:$0xff]  }
 0x1f7   : > { %3311 = vmatprep.subr.bf16.mxu0 %v3546_v17  ;;  %v1190_v56 = vsub.f32 %v1158_v38, %v1174_v52  ;;  %v1105_v47 = vrot.slane %v1104_v63, 2  ;;  %v1755_v12 = vpack.c.bf16 %v1477_v4, %v1477_v4  ;;  %3632 = vrsqrt.f32 %v1236_v3  ;;  %v3556_v21 = vld [vmem:[%s4221_s10 + $0x210] sm:$0xff]   ;;  %v3559_v17 = vld [vmem:[%s4221_s10 + $0x2d8] sm:$0xff]  }
 0x1f8   : > { %v1006_v33 = vadd.f32 %v1005_v31, %v1004_v62  ;;  %v1117_v0 = vrot.slane %v1116_v20, 2  ;;  %3634 = vrsqrt.f32 %v1233_v60  ;;  %v995_v14 = vrot.slane %v994_v42, 1  ;;  %v3557_v62 = vld [vmem:[%s4221_s10 + $0x290] sm:$0xff]  }
 0x1f9   : > { %3304 = vmatpush3.bf16.msra.mxu1 %v3545_v61  ;;  %2646 = vmatmul.mubr.bf16.vlgmr.msra.gmra.mrb[20].mxu0 %v1753_v2  ;;  %v1206_v59 = vmax.f32 %v1190_v56, 0.0  ;;  %v1106_v54 = vadd.f32 %v1105_v47, %v1104_v63  ;;  %v1215_v52 = vsub.f32 %v4299_v53, %v4500_v48  ;;  %v1220_v61 = vsub.f32 %v4332_v29, %v4540_v32  ;;  %v3563_v48 = vld [vmem:[%s4221_s10 + $0x2e0] sm:$0xff]  }
 0x1fa   : > { %3333 = vmatprep.subr.bf16.mxu1 %v3547_v7  ;;  %3312 = vmatpush3.bf16.msra.mxu0 %v3548_v37  ;;  %v1007_v11 = vrot.slane %v1006_v33, 1  ;;  %v1118_v16 = vadd.f32 %v1117_v0, %v1116_v20  ;;  %v996_v43 = vadd.f32 %v995_v14, %v994_v42  ;;  %v1222_v51 = vsub.f32 %v4338_v34, %v4574_v45  ;;  %v3564_v7 = vld [vmem:[%s4221_s10 + $0x220] sm:$0xff]   ;;  %v3566_v34 = vld [vmem:[%s4221_s10 + $0x268] sm:$0xff]  }
 0x1fb   : > { %2725 = vmatprep.mubr.bf16.mxu0 %v1758_v15  ;;  %3313 = vmatprep.subr.bf16.mxu0 %v3550_v19  ;;  %v1238_v40 = vadd.f32 1e-05, %v1206_v59  ;;  %v1107_v50 = vrot.slane %v1106_v54, 1  ;;  %v1217_v38 = vsub.f32 %v4305_v58, %v4544_v8  ;;  %v1310_v32 = vrot.slane %v4508_v41, %v4323_v18  ;;  %v3565_v19 = vld [vmem:[%s4221_s10 + $0x2a0] sm:$0xff]   ;;  %v3568_v42 = vld [vmem:[%s4221_s10 + $0x228] sm:$0xff]   ;;  %v3570_v59 = vld [vmem:[%s4221_s10 + $0x270] sm:$0xff]  }
 0x1fc   : > { %2686 = vmatmul.mubr.bf16.vlgmr.msra.gmra.mrb[20].mxu1 %v1755_v12  ;;  %v1008_v44 = vadd.f32 %v1007_v11, %v1006_v33  ;;  %v1119_v39 = vrot.slane %v1118_v16, 1  ;;  %v4614_v53 = vmul.f32 0.125, %v996_v43  ;;  %v1330_v3 = vrot.slane %v4508_v41, %v4384_v9 }
 0x1fd   : > { %3334 = vmatpush3.bf16.msra.mxu1 %v3549_v36  ;;  %2765 = vmatprep.mubr.bf16.mxu1 %v1760_v5  ;;  %3636 = vrsqrt.f32 %v1238_v40  ;;  %v1108_v4 = vadd.f32 %v1107_v50, %v1106_v54  ;;  %v1338_v31 = vrot.slane %v4508_v41, %v4400_v35  ;;  %v1318_v56 = vrot.slane %v4508_v41, %v4329_v27  ;;  %v3567_v5 = vld [vmem:[%s4221_s10 + $0x2e8] sm:$0xff]   ;;  %v3575_v50 = vld [vmem:[%s4221_s10 + $0x2f8] sm:$0xff]  }
 0x1fe   : > { %3335 = vmatprep.subr.bf16.mxu1 %v3551_v13  ;;  %3314 = vmatpush3.bf16.msra.mxu0 %v3552_v22  ;;  %v1120_v2 = vadd.f32 %v1119_v39, %v1118_v16  ;;  %v4621_v58 = vmul.f32 0.125, %v1008_v44  ;;  %v1171_v36 = vmul.f32 %v4614_v53, %v4614_v53  ;;  %v1410_v12 = vrot.slane %v4513_v24, %v4323_v18  ;;  %v3571_v18 = vld [vmem:[%s4221_s10 + $0x2f0] sm:$0xff]  }
 0x1ff   : > { %3315 = vmatprep.subr.bf16.mxu0 %v3554_v26  ;;  %v1155_v60 = vmul.f32 0.125, %v1108_v4  ;;  %v3569_v26 = vld [vmem:[%s4221_s10 + $0x2a8] sm:$0xff]   ;;  %v1430_v0 = vrot.slane %v4513_v24, %v4384_v9  ;;  %v3573_v16 = vld [vmem:[%s4221_s10 + $0x2b0] sm:$0xff]  }
 0x200   : > { %v3631_v6 = vpop.eup %3630  ;;  %v1157_v13 = vmul.f32 0.125, %v1120_v2  ;;  %v1173_v22 = vmul.f32 %v4621_v58, %v4621_v58  ;;  %v3582_v4 = vld [vmem:[%s4221_s10 + $0x348] sm:$0xff]   ;;  %v3586_v2 = vld [vmem:[%s4221_s10 + $0x350] sm:$0xff]  }
 0x201   : > { %3336 = vmatpush3.bf16.msra.mxu1 %v3553_v55  ;;  %v3633_v63 = vpop.eup %3632  ;;  %v1263_v29 = vmul.f32 %v3631_v6, %v1215_v52  ;;  %v1438_v55 = vrot.slane %v4513_v24, %v4400_v35  ;;  %v1187_v54 = vsub.f32 %v1155_v60, %v1171_v36  ;;  %v3578_v6 = vld [vmem:[%s4221_s10 + $0x340] sm:$0xff]   ;;  %v1219_v60 = vsub.f32 %v4326_v25, %v4614_v53  ;;  %v3598_v53 = vld [vmem:[%s4221_s10 + $0x368] sm:$0xff]  }
 0x202   : > { %3337 = vmatprep.subr.bf16.mxu1 %v3555_v57  ;;  %3316 = vmatpush3.bf16.msra.mxu0 %v3556_v21  ;;  %v3635_v37 = vpop.eup %3634  ;;  %v1268_v8 = vmul.f32 %v3633_v63, %v1220_v61  ;;  %v3572_v57 = vld [vmem:[%s4221_s10 + $0x230] sm:$0xff]   ;;  %v1418_v21 = vrot.slane %v4513_v24, %v4329_v27  ;;  %v1189_v9 = vsub.f32 %v1157_v13, %v1173_v22  ;;  %v3580_v63 = vld [vmem:[%s4221_s10 + $0x300] sm:$0xff]  }
 0x203   : > { %3317 = vmatprep.subr.bf16.mxu0 %v3558_v10  ;;  %v1265_v20 = vmul.f32 %v3635_v37, %v1217_v38  ;;  %v1363_v47 = vmul.f32 %v1310_v32, %v1263_v29  ;;  %v3574_v10 = vld [vmem:[%s4221_s10 + $0x278] sm:$0xff]   ;;  %v1203_v43 = vmax.f32 %v1187_v54, 0.0  ;;  %v3581_v37 = vld [vmem:[%s4221_s10 + $0x380] sm:$0xff]   ;;  %v1326_v25 = vrot.slane %v4508_v41, %v4343_v49  ;;  %v3601_v54 = vld [vmem:[%s4221_s10 + $0x3a8] sm:$0xff]  }
 0x204   : > { %v1368_v33 = vmul.f32 %v1330_v3, %v1268_v8  ;;  %v1205_v52 = vmax.f32 %v1189_v9, 0.0  ;;  %v3585_v8 = vld [vmem:[%s4221_s10 + $0x388] sm:$0xff]   ;;  %v3590_v3 = vld [vmem:[%s4221_s10 + $0x358] sm:$0xff]   ;;  %v3594_v36 = vld [vmem:[%s4221_s10 + $0x360] sm:$0xff]  }
 0x205   : > { %3338 = vmatpush3.bf16.msra.mxu1 %v3557_v62  ;;  %v1365_v14 = vmul.f32 %v1318_v56, %v1265_v20  ;;  %v1463_v11 = vadd.f32 %v1410_v12, %v1363_v47  ;;  %v1235_v61 = vadd.f32 1e-05, %v1203_v43  ;;  %v3591_v20 = vld [vmem:[%s4221_s10 + $0x3d8] sm:$0xff]   ;;  %v1221_v47 = vsub.f32 %v4334_v30, %v4621_v58  ;;  %v3596_v12 = vld [vmem:[%s4221_s10 + $0x320] sm:$0xff]   ;;  %v3599_v58 = vld [vmem:[%s4221_s10 + $0x3e8] sm:$0xff]  }
 0x206   : > { %3339 = vmatprep.subr.bf16.mxu1 %v3559_v17  ;;  %3318 = vmatpush3.bf16.msra.mxu0 %v3560_v1  ;;  %v1468_v35 = vadd.f32 %v1430_v0, %v1368_v33  ;;  %v3576_v17 = vld [vmem:[%s4221_s10 + $0x238] sm:$0xff]   ;;  %v1334_v30 = vrot.slane %v4508_v41, %v4497_v28  ;;  %v3600_v0 = vld [vmem:[%s4221_s10 + $0x328] sm:$0xff]   ;;  %v3603_v41 = vld [vmem:[%s4221_s10 + $0x3f0] sm:$0xff]  }
 0x207   : > { %3319 = vmatprep.subr.bf16.mxu0 %v3562_v23  ;;  %v3637_v45 = vpop.eup %3636  ;;  %v1465_v1 = vadd.f32 %v1418_v21, %v1365_v14  ;;  %v1479_v27 = vmax.f32 %v1463_v11, 0.0  ;;  %v3577_v23 = vld [vmem:[%s4221_s10 + $0x2b8] sm:$0xff]   ;;  %3638 = vrsqrt.f32 %v1235_v61  ;;  %v1426_v14 = vrot.slane %v4513_v24, %v4343_v49  ;;  %v3605_v9 = vld [vmem:[%s4221_s10 + $0x3b0] sm:$0xff]  }
 0x208   : > { %v1270_v15 = vmul.f32 %v3637_v45, %v1222_v51  ;;  %v1484_v44 = vmax.f32 %v1468_v35, 0.0  ;;  %v3584_v45 = vld [vmem:[%s4221_s10 + $0x308] sm:$0xff]   ;;  %v3592_v56 = vld [vmem:[%s4221_s10 + $0x318] sm:$0xff]   ;;  %v1434_v21 = vrot.slane %v4513_v24, %v4497_v28 }
 0x209   : > { %3340 = vmatpush3.bf16.msra.mxu1 %v3561_v46  ;;  %v1481_v51 = vmax.f32 %v1465_v1, 0.0  ;;  %v3579_v46 = vld [vmem:[%s4221_s10 + $0x3c0] sm:$0xff]   ;;  %v1757_v38 = vpack.c.bf16 %v1479_v27, %v1479_v27  ;;  %v3607_v49 = vld [vmem:[%s4221_s10 + $0x3f8] sm:$0xff]  }
 0x20a   : > { %3341 = vmatprep.subr.bf16.mxu1 %v3563_v48  ;;  %3320 = vmatpush3.bf16.msra.mxu0 %v3564_v7  ;;  %v1370_v40 = vmul.f32 %v1338_v31, %v1270_v15  ;;  %v1237_v48 = vadd.f32 1e-05, %v1205_v52  ;;  %v1762_v7 = vpack.c.bf16 %v1484_v44, %v1484_v44  ;;  %v3587_v15 = vld [vmem:[%s4221_s10 + $0x3d0] sm:$0xff]   ;;  %v3609_v43 = vld [vmem:[%s4221_s10 + $0x3b8] sm:$0xff]  }
 0x20b   : > { %3321 = vmatprep.subr.bf16.mxu0 %v3566_v34  ;;  %v1759_v32 = vpack.c.bf16 %v1481_v51, %v1481_v51  ;;  %v3583_v34 = vld [vmem:[%s4221_s10 + $0x3c8] sm:$0xff]   ;;  %v3589_v31 = vld [vmem:[%s4221_s10 + $0x390] sm:$0xff]  }
 0x20c   : > { %v1470_v62 = vadd.f32 %v1438_v55, %v1370_v40  ;;  %3640 = vrsqrt.f32 %v1237_v48  ;;  %v3602_v55 = vld [vmem:[%s4221_s10 + $0x370] sm:$0xff]  }
 0x20d   : > { %3342 = vmatpush3.bf16.msra.mxu1 %v3565_v19  ;;  %v3588_v19 = vld [vmem:[%s4221_s10 + $0x310] sm:$0xff]  }
 0x20e   : > { %3343 = vmatprep.subr.bf16.mxu1 %v3567_v5  ;;  %3322 = vmatpush3.bf16.msra.mxu0 %v3568_v42  ;;  %v1486_v39 = vmax.f32 %v1470_v62, 0.0  ;;  %v3593_v42 = vld [vmem:[%s4221_s10 + $0x398] sm:$0xff]  }
 0x20f   : > { %3323 = vmatprep.subr.bf16.mxu0 %v3570_v59  ;;  %v3595_v59 = vld [vmem:[%s4221_s10 + $0x3e0] sm:$0xff]  }
 0x210   : > { %v1764_v29 = vpack.c.bf16 %v1486_v39, %v1486_v39 }
 0x211   : > { %3344 = vmatpush3.bf16.msra.mxu1 %v3569_v26  ;;  %v3639_v5 = vpop.eup %3638  ;;  %v3597_v26 = vld [vmem:[%s4221_s10 + $0x3a0] sm:$0xff]  }
 0x212   : > { %3345 = vmatprep.subr.bf16.mxu1 %v3571_v18  ;;  %3324 = vmatpush3.bf16.msra.mxu0 %v3572_v57  ;;  %v1267_v22 = vmul.f32 %v3639_v5, %v1219_v60  ;;  %v3604_v57 = vld [vmem:[%s4221_s10 + $0x330] sm:$0xff]  }
 0x213   : > { %3325 = vmatprep.subr.bf16.mxu0 %v3574_v10  ;;  %v3606_v10 = vld [vmem:[%s4221_s10 + $0x378] sm:$0xff]  }
 0x214   : > { %v1367_v40 = vmul.f32 %v1326_v25, %v1267_v22 }
 0x215   : > { %3346 = vmatpush3.bf16.msra.mxu1 %v3573_v16  ;;  %v3608_v16 = vld [vmem:[%s4221_s10 + $0x338] sm:$0xff]  }
 0x216   : > { %3347 = vmatprep.subr.bf16.mxu1 %v3575_v50  ;;  %3326 = vmatpush3.bf16.msra.mxu0 %v3576_v17  ;;  %v3641_v13 = vpop.eup %3640  ;;  %v1467_v11 = vadd.f32 %v1426_v14, %v1367_v40  ;;  %v1748_v40 = vld [vmem:[#allocation11] sm:$0xff] }
 0x217   : > { %3355 = vmatprep.subr.bf16.mxu0 %v3578_v6  ;;  %v1269_v33 = vmul.f32 %v3641_v13, %v1221_v47 }
 0x218   : > { %v1483_v62 = vmax.f32 %v1467_v11, 0.0 }
 0x219   : > { %3348 = vmatpush3.bf16.msra.mxu1 %v3577_v23  ;;  %2726 = vmatmul.mubr.bf16.vlgmr.msra.gmra.mrb[24].mxu0 %v1757_v38  ;;  %v1369_v18 = vmul.f32 %v1334_v30, %v1269_v33 }
 0x21a   : > { %3377 = vmatprep.subr.bf16.mxu1 %v3579_v46  ;;  %3356 = vmatpush3.bf16.msra.mxu0 %v3580_v63  ;;  %v1761_v17 = vpack.c.bf16 %v1483_v62, %v1483_v62 }
 0x21b   : > { %2805 = vmatprep.mubr.bf16.mxu0 %v1762_v7  ;;  %3357 = vmatprep.subr.bf16.mxu0 %v3582_v4  ;;  %v1469_v35 = vadd.f32 %v1434_v21, %v1369_v18 }
 0x21c   : > { %2766 = vmatmul.mubr.bf16.vlgmr.msra.gmra.mrb[24].mxu1 %v1759_v32 }
 0x21d   : > { %3378 = vmatpush3.bf16.msra.mxu1 %v3581_v37  ;;  %2845 = vmatprep.mubr.bf16.mxu1 %v1764_v29  ;;  %v1485_v50 = vmax.f32 %v1469_v35, 0.0 }
 0x21e   : > { %3379 = vmatprep.subr.bf16.mxu1 %v3583_v34  ;;  %3358 = vmatpush3.bf16.msra.mxu0 %v3584_v45 }
 0x21f   : > { %3359 = vmatprep.subr.bf16.mxu0 %v3586_v2  ;;  %v1763_v28 = vpack.c.bf16 %v1485_v50, %v1485_v50 }
 0x221   : > { %3380 = vmatpush3.bf16.msra.mxu1 %v3585_v8 }
 0x222   : > { %3381 = vmatprep.subr.bf16.mxu1 %v3587_v15  ;;  %3360 = vmatpush3.bf16.msra.mxu0 %v3588_v19 }
 0x223   : > { %3361 = vmatprep.subr.bf16.mxu0 %v3590_v3 }
 0x225   : > { %3382 = vmatpush3.bf16.msra.mxu1 %v3589_v31 }
 0x226   : > { %3383 = vmatprep.subr.bf16.mxu1 %v3591_v20  ;;  %3362 = vmatpush3.bf16.msra.mxu0 %v3592_v56 }
 0x227   : > { %3363 = vmatprep.subr.bf16.mxu0 %v3594_v36 }
 0x229   : > { %3384 = vmatpush3.bf16.msra.mxu1 %v3593_v42 }
 0x22a   : > { %3385 = vmatprep.subr.bf16.mxu1 %v3595_v59  ;;  %3364 = vmatpush3.bf16.msra.mxu0 %v3596_v12 }
 0x22b   : > { %3365 = vmatprep.subr.bf16.mxu0 %v3598_v53 }
 0x22d   : > { %3386 = vmatpush3.bf16.msra.mxu1 %v3597_v26 }
 0x22e   : > { %3387 = vmatprep.subr.bf16.mxu1 %v3599_v58  ;;  %3366 = vmatpush3.bf16.msra.mxu0 %v3600_v0 }
 0x22f   : > { %3367 = vmatprep.subr.bf16.mxu0 %v3602_v55 }
 0x231   : > { %3388 = vmatpush3.bf16.msra.mxu1 %v3601_v54 }
 0x232   : > { %3389 = vmatprep.subr.bf16.mxu1 %v3603_v41  ;;  %3368 = vmatpush3.bf16.msra.mxu0 %v3604_v57 }
 0x233   : > { %3369 = vmatprep.subr.bf16.mxu0 %v3606_v10 }
 0x235   : > { %3390 = vmatpush3.bf16.msra.mxu1 %v3605_v9 }
 0x236   : > { %3391 = vmatprep.subr.bf16.mxu1 %v3607_v49  ;;  %3370 = vmatpush3.bf16.msra.mxu0 %v3608_v16 }
 0x239   : > { %3392 = vmatpush3.bf16.msra.mxu1 %v3609_v43  ;;  %2806 = vmatmul.mubr.bf16.vlgmr.msra.gmra.mrb[28].mxu0 %v1761_v17 }
 0x23c   : > { %2846 = vmatmul.mubr.bf16.vlgmr.msra.gmra.mrb[28].mxu1 %v1763_v28 }
 0x2ac   : > { %v3239_v24 = vpop.f32.mrb[16].mxu0 }
 0x2ad   : > { %v3240_v1 = vpop.f32.mrb[17].mxu0 }
 0x2ae   : > { %v3241_v27 = vadd.f32 %v3240_v1, %v3239_v24  ;;  %v3242_v6 = vpop.f32.mrb[18].mxu0 }
 0x2af   : > { %v3261_v52 = vpop.f32.mrb[16].mxu1  ;;  %v3243_v23 = vpop.f32.mrb[19].mxu0 }
 0x2b0   : > { %v3262_v44 = vpop.f32.mrb[17].mxu1 }
 0x2b1   : > { %v3263_v39 = vadd.f32 %v3262_v44, %v3261_v52  ;;  %v3264_v61 = vpop.f32.mrb[18].mxu1 }
 0x2b2   : > { %v3265_v51 = vpop.f32.mrb[19].mxu1 }
 0x2b3   : > { %v2608_v46 = vadd.f32 %v3263_v39, %v3241_v27  ;;  %v3214_v39 = vld [vmem:[%s4745_s5] ss:$0 sm:$0xff] (!%p3213_p8) }
 0x2b4   : > { %v3215_v51 = vld [vmem:[%s4746_s6] ss:$0 sm:$0xff] (!%p3213_p8) }
 0x2cc   : > { %v3283_v63 = vpop.f32.mrb[20].mxu0 }
 0x2cd   : > { %v3284_v38 = vpop.f32.mrb[21].mxu0 }
 0x2ce   : > { %v3285_v4 = vadd.f32 %v3284_v38, %v3283_v63  ;;  %v3286_v48 = vpop.f32.mrb[22].mxu0 }
 0x2cf   : > { %v3305_v7 = vpop.f32.mrb[20].mxu1  ;;  %v3287_v37 = vpop.f32.mrb[23].mxu0 }
 0x2d0   : > { %v2648_v29 = vadd.f32 %v3285_v4, %v2608_v46  ;;  %v3306_v32 = vpop.f32.mrb[21].mxu1 }
 0x2d1   : > { %v3307_v34 = vadd.f32 %v3306_v32, %v3305_v7  ;;  %v3308_v45 = vpop.f32.mrb[22].mxu1 }
 0x2d2   : > { %v3309_v2 = vpop.f32.mrb[23].mxu1 }
 0x2d3   : > { %v2688_v8 = vadd.f32 %v3307_v34, %v2648_v29 }
 0x2ec   : > { %v3327_v15 = vpop.f32.mrb[24].mxu0 }
 0x2ed   : > { %v3328_v19 = vpop.f32.mrb[25].mxu0 }
 0x2ee   : > { %v3329_v3 = vadd.f32 %v3328_v19, %v3327_v15  ;;  %v3330_v31 = vpop.f32.mrb[26].mxu0 }
 0x2ef   : > { %v3349_v20 = vpop.f32.mrb[24].mxu1  ;;  %v3331_v56 = vpop.f32.mrb[27].mxu0 }
 0x2f0   : > { %v2728_v60 = vadd.f32 %v3329_v3, %v2688_v8  ;;  %v3350_v36 = vpop.f32.mrb[25].mxu1 }
 0x2f1   : > { %v3351_v5 = vadd.f32 %v3350_v36, %v3349_v20  ;;  %v3352_v42 = vpop.f32.mrb[26].mxu1 }
 0x2f2   : > { %v3353_v47 = vpop.f32.mrb[27].mxu1 }
 0x2f3   : > { %v2768_v59 = vadd.f32 %v3351_v5, %v2728_v60 }
 0x30c   : > { %v3371_v12 = vpop.f32.mrb[28].mxu0 }
 0x30d   : > { %v3372_v13 = vpop.f32.mrb[29].mxu0 }
 0x30e   : > { %v3373_v22 = vadd.f32 %v3372_v13, %v3371_v12  ;;  %v3374_v25 = vpop.f32.mrb[30].mxu0 }
 0x30f   : > { %v3393_v53 = vpop.f32.mrb[28].mxu1  ;;  %v3375_v26 = vpop.f32.mrb[31].mxu0 }
 0x310   : > { %v2808_v33 = vadd.f32 %v3373_v22, %v2768_v59  ;;  %v3394_v30 = vpop.f32.mrb[29].mxu1 }
 0x311   : > { %v3395_v58 = vadd.f32 %v3394_v30, %v3393_v53  ;;  %v3396_v0 = vpop.f32.mrb[30].mxu1  ;;  %2858 = sbr.rel (%p3213_p8) target bundleno = 839 (0x347), region = 76 }
 0x312   : > { %v3397_v55 = vpop.f32.mrb[31].mxu1 }
 0x313   : > { %v2848_v14 = vadd.f32 %v3395_v58, %v2808_v33 }
 0x315   : > { %v2853_v54 = vadd.f32 %v2848_v14, %v1748_v40 }
 0x317   : > { %2854 = vst [vmem:[#allocation11] sm:$0xff] %v2853_v54 }
 0x31e   : > { %v2859_v18 = vld [vmem:[#allocation11] sm:$0xff] }
 0x31f   : > { %v2860_v41 = vrot.slane %v2859_v18, 4  ;;  %v2866_v57 = vmul.f32 %v2859_v18, %v2859_v18 }
 0x321   : > { %v2861_v21 = vadd.f32 %v2860_v41, %v2859_v18  ;;  %v2867_v10 = vrot.slane %v2866_v57, 4 }
 0x323   : > { %v2862_v11 = vrot.slane %v2861_v21, 2  ;;  %v2868_v9 = vadd.f32 %v2867_v10, %v2866_v57 }
 0x325   : > { %v2863_v49 = vadd.f32 %v2862_v11, %v2861_v21  ;;  %v2869_v16 = vrot.slane %v2868_v9, 2 }
 0x327   : > { %v2864_v35 = vrot.slane %v2863_v49, 1  ;;  %v2870_v62 = vadd.f32 %v2869_v16, %v2868_v9 }
 0x329   : > { %v2865_v43 = vadd.f32 %v2864_v35, %v2863_v49  ;;  %v2871_v50 = vrot.slane %v2870_v62, 1 }
 0x32b   : > { %v2872_v17 = vadd.f32 %v2871_v50, %v2870_v62  ;;  %v2873_v28 = vmul.f32 0.125, %v2865_v43 }
 0x32d   : > { %v2874_v24 = vmul.f32 0.125, %v2872_v17  ;;  %v2875_v1 = vmul.f32 %v2873_v28, %v2873_v28  ;;  %v2878_v23 = vsub.f32 %v2859_v18, %v2873_v28 }
 0x32f   : > { %v2876_v27 = vsub.f32 %v2874_v24, %v2875_v1 }
 0x331   : > { %v2877_v6 = vmax.f32 %v2876_v27, 0.0 }
 0x333   : > { %v2879_v52 = vadd.f32 1e-05, %v2877_v6 }
 0x335   : > { %3642 = vrsqrt.f32 %v2879_v52 }
 0x33f   : > { %v3643_v44 = vpop.eup %3642 }
 0x340   : > { %v2881_v61 = vmul.f32 %v3643_v44, %v2878_v23 }
 0x342   : > { %v2889_v46 = vmul.f32 %v3214_v39, %v2881_v61 }
 0x344   : > { %v2897_v63 = vadd.f32 %v3215_v51, %v2889_v46 }
 0x346   : > { %2898 = vst [vmem:[#allocation11] sm:$0xff] %v2897_v63 }
 0x347 PF: > { %p3439_p12 = scmp.eq.s32.totalorder %s3939_s28, 1  ;;  %s3879_s17 = smov [#allocation11]  }
 0x348   : > { %s2906_s27 = sshll.u32 %s3879_s17, 4  ;;  %s2907_s27 = int_to_ptr.vmem [resolvable:$true] %s2906_s27 }
 0x349   : > { %s3790_s21 = scalar_lea.vmem %s2907_s27, 128  ;;  %p3797_p5 = scmp.lt.s32.totalorder %s2907_s27, %s2907_s27 }
 0x34a   : > { %p3791_p2 = scmp.ne.s32.totalorder %s2907_s27, %s3790_s21  ;;  %p3798_p13 = scmp.lt.s32.totalorder %s3790_s21, %s3790_s21 }
 0x34c   : > { %p3792_p6 = pnand %p3791_p2, %p3439_p12  ;;  %p3799_p11 = por %p3798_p13, %p3797_p5 }
 0x34e   : > { %p3793_p7 = pneg %p3792_p6 }
 0x350   : > { %p3800_p10 = pnand %p3799_p11, %p3793_p7 }
 0x352   : > { %3803 = shalt.err (!%p3800_p10)
}
 0x353   : > { %s3804_s13 = scalar_lea.hbm %s4747_s7, 128 }
 0x354   : > { %p3805_p9 = scmp.ne.s32.totalorder %s4747_s7, %s3804_s13  ;;  %p3810_p3 = scmp.lt.u32.totalorder %s3804_s13, %s4747_s7 }
 0x356   : > { %p3806_p4 = pnand %p3805_p9, %p3439_p12 }
 0x358   : > { %p3807_p1 = pneg %p3806_p4 }
 0x35a   : > { %p3812_p0 = pnand %p3810_p3, %p3807_p1 }
 0x35c   : > { %3815 = shalt.err (!%p3812_p0)
}
 0x35d   : > { %3414 = dma.vmem_to_hbm [thread:$0]  (%p3439_p12), %s2907_s27, 128, %s4747_s7, [#allocation4]  }
 0x35e   : > { %3849 = dma.done.wait (%p3439_p12), [#allocation4], 128  }
 0x35f   : > { %3851 = vsyncadd (%p3439_p12), [#allocation4], 4294967168 }
 0x360 PF: > { %s4789_s27 = sld [smem:[#allocation17_spill]]  ;;  %s4790_s15 = sld [smem:[#allocation18_spill]] }
 0x361   : > { %s4791_s24 = smov %s3858_s25  ;;  %s4792_s25 = smov %s3862_s26 }
 0x366   : > { %p22_p8 = scmp.ge.s32.totalorder %s4789_s27, 4   ;;  %s4793_s26 = smov %s4790_s15 }
 0x368   :  { %24 = sbr.rel (!%p22_p8) target bundleno = 10 (0xa), region = 127 }
 0x36f   :  { %2919 = vsyncpa [#allocation3], 1 }
 0x370   :  { %2921 = vsyncpa [#allocation3 + $0x1], 1 }
 0x371   :  { %2922 = vsyncpa [#allocation6], 1 }
 0x372   :  { %2924 = vsyncpa [#allocation6 + $0x1], 1 }
 0x373   :  { %2925 = vsyncpa [#allocation9], 1 }
 0x374   :  { %2927 = vsyncpa [#allocation9 + $0x1], 1 }
 0x375   :  { %2928 = vsyncpa [#allocation4], 1 }
 0x376   :  { %2930 = vsyncpa [#allocation4 + $0x1], 1 }

</bundles_post_ra>
